<compile_context>
chip_gen: v7x
topology: tpu7x:2x2x1
jax: 0.10.0
libtpu: 0.0.40
codegen_flags: <defaults>
</compile_context>

<pallas_src>
import functools

import jax
import jax.numpy as jnp
from jax.experimental import pallas as pl
from jax.experimental.pallas import tpu as pltpu


# ----------------------------------------------------------------------------
# Fused Pallas kernel: all LSTM layers + FC, single invocation (no grid).
# ----------------------------------------------------------------------------
def _fused_lstm_kernel(x_ref, wih0_ref, b0_ref, wihr_ref, br_ref, whh_ref,
                       h0_ref, c0_ref, fcw_ref, fcb_ref,
                       logits_ref, hn_ref, cn_ref,
                       gx_sc, y_sc, h_sc, c_sc):
    S, Bp, I = x_ref.shape
    L, _, H = h0_ref.shape
    G = 3 * H                                    # sigmoid slab width (i|f|o)

    # ---- layer-0 input projection for ALL timesteps: one big MXU matmul ----
    x_flat = x_ref[...].reshape(S * Bp, I)
    gx_sc[...] = (
        jnp.dot(x_flat, wih0_ref[...], preferred_element_type=jnp.float32)
        + b0_ref[...]
    ).reshape(S, Bp, 4 * H)

    for layer in range(L):                       # static unroll over layers
        if layer > 0:
            # input projection of previous layer's output (also one big matmul)
            y_flat = y_sc[...].reshape(S * Bp, H)
            gx_sc[...] = (
                jnp.dot(y_flat, wihr_ref[layer - 1],
                        preferred_element_type=jnp.float32)
                + br_ref[layer - 1]
            ).reshape(S, Bp, 4 * H)

        h_sc[...] = h0_ref[layer].astype(jnp.float32)
        c_sc[...] = c0_ref[layer].astype(jnp.float32)
        whh_t = whh_ref[layer]                   # (H, 4H), hoisted out of loop

        def step(t, carry):
            # only the recurrent matmul is on the serial path; bias already
            # folded into gx (no per-step broadcast).
            gates = gx_sc[t] + jnp.dot(h_sc[...], whh_t,
                                       preferred_element_type=jnp.float32)
            # reordered gate layout: [ i | f | o | g ]
            sig = jax.nn.sigmoid(gates[:, :G])   # one contiguous sigmoid slab
            g_g = jnp.tanh(gates[:, G:])         # one tanh slab
            c_new = sig[:, H:2 * H] * c_sc[...] + sig[:, :H] * g_g
            h_new = sig[:, 2 * H:] * jnp.tanh(c_new)
            c_sc[...] = c_new
            h_sc[...] = h_new
            y_sc[t] = h_new                      # stays in VMEM scratch
            return carry

        jax.lax.fori_loop(0, S, step, 0, unroll=True)

        hn_ref[layer] = h_sc[...].astype(hn_ref.dtype)
        cn_ref[layer] = c_sc[...].astype(cn_ref.dtype)

    # ---- fused FC on the full (S*Bp, H) slab (row reorder done in wrapper) ----
    y_flat = y_sc[...].reshape(S * Bp, H)
    logits_ref[...] = (
        jnp.dot(y_flat, fcw_ref[...], preferred_element_type=jnp.float32)
        + fcb_ref[...]
    ).astype(logits_ref.dtype)


# ----------------------------------------------------------------------------
# Parameter preprocessing (done once, not per forward call)
# ----------------------------------------------------------------------------
def _reorder_ifog(w):
    """Reorder PyTorch gate blocks (i, f, g, o) -> (i, f, o, g) along axis 0."""
    H = w.shape[0] // 4
    return jnp.concatenate([w[:2 * H], w[3 * H:], w[2 * H:3 * H]], axis=0)


def prepare_params(params, num_layers, num_hidden):
    H = num_hidden
    lstm = params["lstm"]
    w_ih0, _, b_ih0, b_hh0 = lstm[0]
    prep = {
        "wih0_t": jnp.transpose(_reorder_ifog(w_ih0)),                # (I, 4H)
        "b0": _reorder_ifog(b_ih0 + b_hh0).reshape(1, 4 * H),         # (1, 4H)
        "whh_t": jnp.stack([jnp.transpose(_reorder_ifog(w_hh))
                            for (_, w_hh, _, _) in lstm]),            # (L, H, 4H)
        "fc_w_t": jnp.transpose(params["fc_w"]),                      # (H, V)
        "fc_b": params["fc_b"].reshape(1, -1),                        # (1, V)
    }
    if num_layers > 1:
        prep["wih_rest_t"] = jnp.stack(
            [jnp.transpose(_reorder_ifog(lstm[l][0]))
             for l in range(1, num_layers)])                          # (L-1, H, 4H)
        prep["b_rest"] = jnp.stack(
            [_reorder_ifog(lstm[l][2] + lstm[l][3]).reshape(1, 4 * H)
             for l in range(1, num_layers)])                          # (L-1, 1, 4H)
    else:  # dummies, never read when num_layers == 1
        prep["wih_rest_t"] = jnp.zeros((1, H, 4 * H), jnp.float32)
        prep["b_rest"] = jnp.zeros((1, 1, 4 * H), jnp.float32)
    return prep


# ----------------------------------------------------------------------------
# Forward wrapper (matches LSTM.forward semantics, eval mode)
# ----------------------------------------------------------------------------
def lstm_model_forward(x, hidden, prep, *, num_layers, num_hidden):
    """x: (B, S, I) batch_first; hidden: ((L,B,H), (L,B,H)).
    Returns (logits (B*S, V), (h_n, c_n))."""
    h0, c0 = hidden
    B, S, _ = x.shape
    H, L = num_hidden, num_layers
    V = prep["fc_b"].shape[-1]
    Bp = ((B + 7) // 8) * 8                      # pad batch to a sublane tile
    pad = Bp - B

    x_tm = jnp.pad(jnp.transpose(x, (1, 0, 2)), ((0, 0), (0, pad), (0, 0)))
    h0p = jnp.pad(h0, ((0, 0), (0, pad), (0, 0)))
    c0p = jnp.pad(c0, ((0, 0), (0, pad), (0, 0)))

    logits_tm, hn_p, cn_p = pl.pallas_call(
        _fused_lstm_kernel,
        out_shape=(
            jax.ShapeDtypeStruct((S * Bp, V), jnp.float32),   # logits, (t,b) rows
            jax.ShapeDtypeStruct((L, Bp, H), x.dtype),        # h_n
            jax.ShapeDtypeStruct((L, Bp, H), x.dtype),        # c_n
        ),
        scratch_shapes=[
            pltpu.VMEM((S, Bp, 4 * H), jnp.float32),          # gates_x, all t
            pltpu.VMEM((S, Bp, H), jnp.float32),              # layer output y
            pltpu.VMEM((Bp, H), jnp.float32),                 # h carry
            pltpu.VMEM((Bp, H), jnp.float32),                 # c carry
        ],
    )(x_tm, prep["wih0_t"], prep["b0"], prep["wih_rest_t"], prep["b_rest"],
      prep["whh_t"], h0p, c0p, prep["fc_w_t"], prep["fc_b"])

    # kernel rows are (t, b)-ordered; reorder to PyTorch's batch-major view(-1, H)
    logits = jnp.transpose(logits_tm.reshape(S, Bp, V), (1, 0, 2))[:B]
    logits = logits.reshape(B * S, V)
    return logits, (hn_p[:, :B], cn_p[:, :B])


# ----------------------------------------------------------------------------
# Pure-JAX reference (original gate order / layouts) for correctness check
# ----------------------------------------------------------------------------
def _ref_forward(x, hidden, params, num_layers, num_hidden):
    h0, c0 = hidden
    B, S, _ = x.shape
    layer_in = x
    h_ns, c_ns = [], []
    for layer in range(num_layers):
        w_ih, w_hh, b_ih, b_hh = params["lstm"][layer]
        h = h0[layer]
        c = c0[layer]
        ys = []
        for t in range(S):
            g = layer_in[:, t, :] @ w_ih.T + b_ih + h @ w_hh.T + b_hh
            H = num_hidden
            i = jax.nn.sigmoid(g[:, 0:H])
            f = jax.nn.sigmoid(g[:, H:2 * H])
            gg = jnp.tanh(g[:, 2 * H:3 * H])
            o = jax.nn.sigmoid(g[:, 3 * H:4 * H])
            c = f * c + i * gg
            h = o * jnp.tanh(c)
            ys.append(h)
        layer_in = jnp.stack(ys, axis=1)
        h_ns.append(h)
        c_ns.append(c)
    flat = layer_in.reshape(-1, num_hidden)
    logits = flat @ params["fc_w"].T + params["fc_b"]
    return logits, (jnp.stack(h_ns), jnp.stack(c_ns))


# ----------------------------------------------------------------------------
# Main
# ----------------------------------------------------------------------------
if __name__ == "__main__":
    VOCAB = 16          # len(all_char)
    NUM_HIDDEN = 32
    NUM_LAYERS = 3
    BATCH = 2
    SEQ = 8

    key = jax.random.PRNGKey(0)
    keys = jax.random.split(key, 4 * NUM_LAYERS + 3)
    k_scale = 1.0 / jnp.sqrt(NUM_HIDDEN)

    lstm_params = []
    ki = 0
    for layer in range(NUM_LAYERS):
        in_size = VOCAB if layer == 0 else NUM_HIDDEN
        w_ih = jax.random.uniform(keys[ki + 0], (4 * NUM_HIDDEN, in_size),
                                  jnp.float32, -k_scale, k_scale)
        w_hh = jax.random.uniform(keys[ki + 1], (4 * NUM_HIDDEN, NUM_HIDDEN),
                                  jnp.float32, -k_scale, k_scale)
        b_ih = jax.random.uniform(keys[ki + 2], (4 * NUM_HIDDEN,),
                                  jnp.float32, -k_scale, k_scale)
        b_hh = jax.random.uniform(keys[ki + 3], (4 * NUM_HIDDEN,),
                                  jnp.float32, -k_scale, k_scale)
        lstm_params.append((w_ih, w_hh, b_ih, b_hh))
        ki += 4
    fc_w = jax.random.uniform(keys[ki + 0], (VOCAB, NUM_HIDDEN),
                              jnp.float32, -k_scale, k_scale)
    fc_b = jax.random.uniform(keys[ki + 1], (VOCAB,),
                              jnp.float32, -k_scale, k_scale)
    params = {"lstm": lstm_params, "fc_w": fc_w, "fc_b": fc_b}

    x = jax.random.uniform(keys[ki + 2], (BATCH, SEQ, VOCAB), jnp.float32)
    hidden = (jnp.zeros((NUM_LAYERS, BATCH, NUM_HIDDEN), jnp.float32),
              jnp.zeros((NUM_LAYERS, BATCH, NUM_HIDDEN), jnp.float32))

    prep = prepare_params(params, NUM_LAYERS, NUM_HIDDEN)
    fwd = jax.jit(functools.partial(lstm_model_forward,
                                    num_layers=NUM_LAYERS,
                                    num_hidden=NUM_HIDDEN))
    logits, (h_n, c_n) = jax.block_until_ready(fwd(x, hidden, prep))

    # Correctness check against pure-JAX reference.
    ref_logits, (ref_h, ref_c) = _ref_forward(x, hidden, params,
                                              NUM_LAYERS, NUM_HIDDEN)
    assert logits.shape == (BATCH * SEQ, VOCAB)
    assert h_n.shape == (NUM_LAYERS, BATCH, NUM_HIDDEN)
    assert jnp.allclose(logits, ref_logits, rtol=1e-4, atol=1e-4)
    assert jnp.allclose(h_n, ref_h, rtol=1e-4, atol=1e-4)
    assert jnp.allclose(c_n, ref_c, rtol=1e-4, atol=1e-4)

    print("KERNEL_OK")
</pallas_src>

<mosaic_0001>
module attributes {stable_mosaic.version = 11 : i64} {
  func.func @_fused_lstm_kernel(%arg0: memref<8x8x16xf32, #tpu.memory_space<vmem>>, %arg1: memref<16x128xf32, #tpu.memory_space<vmem>>, %arg2: memref<1x128xf32, #tpu.memory_space<vmem>>, %arg3: memref<2x32x128xf32, #tpu.memory_space<vmem>>, %arg4: memref<2x1x128xf32, #tpu.memory_space<vmem>>, %arg5: memref<3x32x128xf32, #tpu.memory_space<vmem>>, %arg6: memref<3x8x32xf32, #tpu.memory_space<vmem>>, %arg7: memref<3x8x32xf32, #tpu.memory_space<vmem>>, %arg8: memref<32x16xf32, #tpu.memory_space<vmem>>, %arg9: memref<1x16xf32, #tpu.memory_space<vmem>>, %arg10: memref<64x16xf32, #tpu.memory_space<vmem>>, %arg11: memref<3x8x32xf32, #tpu.memory_space<vmem>>, %arg12: memref<3x8x32xf32, #tpu.memory_space<vmem>>, %arg13: memref<8x8x128xf32, #tpu.memory_space<vmem>>, %arg14: memref<8x8x32xf32, #tpu.memory_space<vmem>>, %arg15: memref<8x32xf32, #tpu.memory_space<vmem>>, %arg16: memref<8x32xf32, #tpu.memory_space<vmem>>) attributes {dimension_semantics = [], scalar_prefetch = 0 : i64, scratch_operands = 4 : i64, tpu.core_type = #tpu.core_type<tc>} {
    %c0 = arith.constant 0 : index
    %c0_0 = arith.constant 0 : index
    %c0_1 = arith.constant 0 : index
    %0 = vector.load %arg0[%c0, %c0_0, %c0_1] : memref<8x8x16xf32, #tpu.memory_space<vmem>>, vector<8x8x16xf32>
    %1 = vector.shape_cast %0 : vector<8x8x16xf32> to vector<64x16xf32>
    %c0_2 = arith.constant 0 : index
    %c0_3 = arith.constant 0 : index
    %2 = vector.load %arg1[%c0_2, %c0_3] : memref<16x128xf32, #tpu.memory_space<vmem>>, vector<16x128xf32>
    %cst = arith.constant dense<0.000000e+00> : vector<64x128xf32>
    %3 = tpu.matmul %1, %2, %cst {dimension_numbers = #tpu.dot_dimension_numbers<[1], [0], [0], [1], [0, 0, 1, 1], [], []>} : vector<64x16xf32>, vector<16x128xf32>, vector<64x128xf32> -> vector<64x128xf32>
    %c0_4 = arith.constant 0 : index
    %c0_5 = arith.constant 0 : index
    %4 = vector.load %arg2[%c0_4, %c0_5] : memref<1x128xf32, #tpu.memory_space<vmem>>, vector<1x128xf32>
    %5 = vector.broadcast %4 : vector<1x128xf32> to vector<64x128xf32>
    %6 = arith.addf %3, %5 : vector<64x128xf32>
    %7 = vector.shape_cast %6 : vector<64x128xf32> to vector<8x8x128xf32>
    %c0_6 = arith.constant 0 : index
    %c0_7 = arith.constant 0 : index
    %c0_8 = arith.constant 0 : index
    %8 = vector.load %arg13[%c0_6, %c0_7, %c0_8] : memref<8x8x128xf32, #tpu.memory_space<vmem>>, vector<8x8x128xf32>
    tpu.vector_store %arg13[%c0_6, %c0_7, %c0_8], %7 {strides = array<i32>} : memref<8x8x128xf32, #tpu.memory_space<vmem>>, vector<8x8x128xf32>,
    %c0_9 = arith.constant 0 : index
    %c0_10 = arith.constant 0 : index
    %c0_11 = arith.constant 0 : index
    %9 = vector.load %arg6[%c0_9, %c0_10, %c0_11] : memref<3x8x32xf32, #tpu.memory_space<vmem>>, vector<1x8x32xf32>
    %10 = vector.shape_cast %9 : vector<1x8x32xf32> to vector<8x32xf32>
    %c0_12 = arith.constant 0 : index
    %c0_13 = arith.constant 0 : index
    %11 = vector.load %arg15[%c0_12, %c0_13] : memref<8x32xf32, #tpu.memory_space<vmem>>, vector<8x32xf32>
    tpu.vector_store %arg15[%c0_12, %c0_13], %10 {strides = array<i32>} : memref<8x32xf32, #tpu.memory_space<vmem>>, vector<8x32xf32>,
    %c0_14 = arith.constant 0 : index
    %c0_15 = arith.constant 0 : index
    %c0_16 = arith.constant 0 : index
    %12 = vector.load %arg7[%c0_14, %c0_15, %c0_16] : memref<3x8x32xf32, #tpu.memory_space<vmem>>, vector<1x8x32xf32>
    %13 = vector.shape_cast %12 : vector<1x8x32xf32> to vector<8x32xf32>
    %c0_17 = arith.constant 0 : index
    %c0_18 = arith.constant 0 : index
    %14 = vector.load %arg16[%c0_17, %c0_18] : memref<8x32xf32, #tpu.memory_space<vmem>>, vector<8x32xf32>
    tpu.vector_store %arg16[%c0_17, %c0_18], %13 {strides = array<i32>} : memref<8x32xf32, #tpu.memory_space<vmem>>, vector<8x32xf32>,
    %c0_19 = arith.constant 0 : index
    %c0_20 = arith.constant 0 : index
    %c0_21 = arith.constant 0 : index
    %15 = vector.load %arg5[%c0_19, %c0_20, %c0_21] : memref<3x32x128xf32, #tpu.memory_space<vmem>>, vector<1x32x128xf32>
    %16 = vector.shape_cast %15 : vector<1x32x128xf32> to vector<32x128xf32>
    %c0_i32 = arith.constant 0 : i32
    %17 = arith.index_cast %c0_i32 : i32 to index
    %c0_22 = arith.constant 0 : index
    %c0_23 = arith.constant 0 : index
    %18 = vector.load %arg13[%17, %c0_22, %c0_23] : memref<8x8x128xf32, #tpu.memory_space<vmem>>, vector<1x8x128xf32>
    %19 = vector.shape_cast %18 : vector<1x8x128xf32> to vector<8x128xf32>
    %c0_24 = arith.constant 0 : index
    %c0_25 = arith.constant 0 : index
    %20 = vector.load %arg15[%c0_24, %c0_25] : memref<8x32xf32, #tpu.memory_space<vmem>>, vector<8x32xf32>
    %cst_26 = arith.constant dense<0.000000e+00> : vector<8x128xf32>
    %21 = tpu.matmul %20, %16, %cst_26 {dimension_numbers = #tpu.dot_dimension_numbers<[1], [0], [0], [1], [0, 0, 1, 1], [], []>} : vector<8x32xf32>, vector<32x128xf32>, vector<8x128xf32> -> vector<8x128xf32>
    %22 = arith.addf %19, %21 : vector<8x128xf32>
    %23 = vector.extract_strided_slice %22 {offsets = [0, 0], sizes = [8, 96], strides = [1, 1]} : vector<8x128xf32> to vector<8x96xf32>
    %24 = arith.negf %23 : vector<8x96xf32>
    %25 = math.exp %24 : vector<8x96xf32>
    %cst_27 = arith.constant 1.000000e+00 : f32
    %26 = vector.broadcast %cst_27 : f32 to vector<8x96xf32>
    %27 = arith.addf %26, %25 : vector<8x96xf32>
    %28 = arith.divf %26, %27 : vector<8x96xf32>
    %29 = vector.extract_strided_slice %22 {offsets = [0, 96], sizes = [8, 32], strides = [1, 1]} : vector<8x128xf32> to vector<8x32xf32>
    %30 = math.tanh %29 : vector<8x32xf32>
    %31 = vector.extract_strided_slice %28 {offsets = [0, 32], sizes = [8, 32], strides = [1, 1]} : vector<8x96xf32> to vector<8x32xf32>
    %c0_28 = arith.constant 0 : index
    %c0_29 = arith.constant 0 : index
    %32 = vector.load %arg16[%c0_28, %c0_29] : memref<8x32xf32, #tpu.memory_space<vmem>>, vector<8x32xf32>
    %33 = arith.mulf %31, %32 : vector<8x32xf32>
    %34 = vector.extract_strided_slice %28 {offsets = [0, 0], sizes = [8, 32], strides = [1, 1]} : vector<8x96xf32> to vector<8x32xf32>
    %35 = arith.mulf %34, %30 : vector<8x32xf32>
    %36 = arith.addf %33, %35 : vector<8x32xf32>
    %37 = vector.extract_strided_slice %28 {offsets = [0, 64], sizes = [8, 32], strides = [1, 1]} : vector<8x96xf32> to vector<8x32xf32>
    %38 = math.tanh %36 : vector<8x32xf32>
    %39 = arith.mulf %37, %38 : vector<8x32xf32>
    %c0_30 = arith.constant 0 : index
    %c0_31 = arith.constant 0 : index
    %40 = vector.load %arg16[%c0_30, %c0_31] : memref<8x32xf32, #tpu.memory_space<vmem>>, vector<8x32xf32>
    tpu.vector_store %arg16[%c0_30, %c0_31], %36 {strides = array<i32>} : memref<8x32xf32, #tpu.memory_space<vmem>>, vector<8x32xf32>,
    %c0_32 = arith.constant 0 : index
    %c0_33 = arith.constant 0 : index
    %41 = vector.load %arg15[%c0_32, %c0_33] : memref<8x32xf32, #tpu.memory_space<vmem>>, vector<8x32xf32>
    tpu.vector_store %arg15[%c0_32, %c0_33], %39 {strides = array<i32>} : memref<8x32xf32, #tpu.memory_space<vmem>>, vector<8x32xf32>,
    %42 = arith.index_cast %c0_i32 : i32 to index
    %c0_34 = arith.constant 0 : index
    %c0_35 = arith.constant 0 : index
    %43 = vector.load %arg14[%42, %c0_34, %c0_35] : memref<8x8x32xf32, #tpu.memory_space<vmem>>, vector<1x8x32xf32>
    %44 = vector.shape_cast %43 : vector<1x8x32xf32> to vector<8x32xf32>
    %45 = vector.shape_cast %39 : vector<8x32xf32> to vector<1x8x32xf32>
    tpu.vector_store %arg14[%42, %c0_34, %c0_35], %45 {strides = array<i32>} : memref<8x8x32xf32, #tpu.memory_space<vmem>>, vector<1x8x32xf32>,
    %c1_i32 = arith.constant 1 : i32
    %46 = arith.index_cast %c1_i32 : i32 to index
    %c0_36 = arith.constant 0 : index
    %c0_37 = arith.constant 0 : index
    %47 = vector.load %arg13[%46, %c0_36, %c0_37] : memref<8x8x128xf32, #tpu.memory_space<vmem>>, vector<1x8x128xf32>
    %48 = vector.shape_cast %47 : vector<1x8x128xf32> to vector<8x128xf32>
    %c0_38 = arith.constant 0 : index
    %c0_39 = arith.constant 0 : index
    %49 = vector.load %arg15[%c0_38, %c0_39] : memref<8x32xf32, #tpu.memory_space<vmem>>, vector<8x32xf32>
    %cst_40 = arith.constant dense<0.000000e+00> : vector<8x128xf32>
    %50 = tpu.matmul %49, %16, %cst_40 {dimension_numbers = #tpu.dot_dimension_numbers<[1], [0], [0], [1], [0, 0, 1, 1], [], []>} : vector<8x32xf32>, vector<32x128xf32>, vector<8x128xf32> -> vector<8x128xf32>
    %51 = arith.addf %48, %50 : vector<8x128xf32>
    %52 = vector.extract_strided_slice %51 {offsets = [0, 0], sizes = [8, 96], strides = [1, 1]} : vector<8x128xf32> to vector<8x96xf32>
    %53 = arith.negf %52 : vector<8x96xf32>
    %54 = math.exp %53 : vector<8x96xf32>
    %cst_41 = arith.constant 1.000000e+00 : f32
    %55 = vector.broadcast %cst_41 : f32 to vector<8x96xf32>
    %56 = arith.addf %55, %54 : vector<8x96xf32>
    %57 = arith.divf %55, %56 : vector<8x96xf32>
    %58 = vector.extract_strided_slice %51 {offsets = [0, 96], sizes = [8, 32], strides = [1, 1]} : vector<8x128xf32> to vector<8x32xf32>
    %59 = math.tanh %58 : vector<8x32xf32>
    %60 = vector.extract_strided_slice %57 {offsets = [0, 32], sizes = [8, 32], strides = [1, 1]} : vector<8x96xf32> to vector<8x32xf32>
    %c0_42 = arith.constant 0 : index
    %c0_43 = arith.constant 0 : index
    %61 = vector.load %arg16[%c0_42, %c0_43] : memref<8x32xf32, #tpu.memory_space<vmem>>, vector<8x32xf32>
    %62 = arith.mulf %60, %61 : vector<8x32xf32>
    %63 = vector.extract_strided_slice %57 {offsets = [0, 0], sizes = [8, 32], strides = [1, 1]} : vector<8x96xf32> to vector<8x32xf32>
    %64 = arith.mulf %63, %59 : vector<8x32xf32>
    %65 = arith.addf %62, %64 : vector<8x32xf32>
    %66 = vector.extract_strided_slice %57 {offsets = [0, 64], sizes = [8, 32], strides = [1, 1]} : vector<8x96xf32> to vector<8x32xf32>
    %67 = math.tanh %65 : vector<8x32xf32>
    %68 = arith.mulf %66, %67 : vector<8x32xf32>
    %c0_44 = arith.constant 0 : index
    %c0_45 = arith.constant 0 : index
    %69 = vector.load %arg16[%c0_44, %c0_45] : memref<8x32xf32, #tpu.memory_space<vmem>>, vector<8x32xf32>
    tpu.vector_store %arg16[%c0_44, %c0_45], %65 {strides = array<i32>} : memref<8x32xf32, #tpu.memory_space<vmem>>, vector<8x32xf32>,
    %c0_46 = arith.constant 0 : index
    %c0_47 = arith.constant 0 : index
    %70 = vector.load %arg15[%c0_46, %c0_47] : memref<8x32xf32, #tpu.memory_space<vmem>>, vector<8x32xf32>
    tpu.vector_store %arg15[%c0_46, %c0_47], %68 {strides = array<i32>} : memref<8x32xf32, #tpu.memory_space<vmem>>, vector<8x32xf32>,
    %71 = arith.index_cast %c1_i32 : i32 to index
    %c0_48 = arith.constant 0 : index
    %c0_49 = arith.constant 0 : index
    %72 = vector.load %arg14[%71, %c0_48, %c0_49] : memref<8x8x32xf32, #tpu.memory_space<vmem>>, vector<1x8x32xf32>
    %73 = vector.shape_cast %72 : vector<1x8x32xf32> to vector<8x32xf32>
    %74 = vector.shape_cast %68 : vector<8x32xf32> to vector<1x8x32xf32>
    tpu.vector_store %arg14[%71, %c0_48, %c0_49], %74 {strides = array<i32>} : memref<8x8x32xf32, #tpu.memory_space<vmem>>, vector<1x8x32xf32>,
    %c2_i32 = arith.constant 2 : i32
    %75 = arith.index_cast %c2_i32 : i32 to index
    %c0_50 = arith.constant 0 : index
    %c0_51 = arith.constant 0 : index
    %76 = vector.load %arg13[%75, %c0_50, %c0_51] : memref<8x8x128xf32, #tpu.memory_space<vmem>>, vector<1x8x128xf32>
    %77 = vector.shape_cast %76 : vector<1x8x128xf32> to vector<8x128xf32>
    %c0_52 = arith.constant 0 : index
    %c0_53 = arith.constant 0 : index
    %78 = vector.load %arg15[%c0_52, %c0_53] : memref<8x32xf32, #tpu.memory_space<vmem>>, vector<8x32xf32>
    %cst_54 = arith.constant dense<0.000000e+00> : vector<8x128xf32>
    %79 = tpu.matmul %78, %16, %cst_54 {dimension_numbers = #tpu.dot_dimension_numbers<[1], [0], [0], [1], [0, 0, 1, 1], [], []>} : vector<8x32xf32>, vector<32x128xf32>, vector<8x128xf32> -> vector<8x128xf32>
    %80 = arith.addf %77, %79 : vector<8x128xf32>
    %81 = vector.extract_strided_slice %80 {offsets = [0, 0], sizes = [8, 96], strides = [1, 1]} : vector<8x128xf32> to vector<8x96xf32>
    %82 = arith.negf %81 : vector<8x96xf32>
    %83 = math.exp %82 : vector<8x96xf32>
    %cst_55 = arith.constant 1.000000e+00 : f32
    %84 = vector.broadcast %cst_55 : f32 to vector<8x96xf32>
    %85 = arith.addf %84, %83 : vector<8x96xf32>
    %86 = arith.divf %84, %85 : vector<8x96xf32>
    %87 = vector.extract_strided_slice %80 {offsets = [0, 96], sizes = [8, 32], strides = [1, 1]} : vector<8x128xf32> to vector<8x32xf32>
    %88 = math.tanh %87 : vector<8x32xf32>
    %89 = vector.extract_strided_slice %86 {offsets = [0, 32], sizes = [8, 32], strides = [1, 1]} : vector<8x96xf32> to vector<8x32xf32>
    %c0_56 = arith.constant 0 : index
    %c0_57 = arith.constant 0 : index
    %90 = vector.load %arg16[%c0_56, %c0_57] : memref<8x32xf32, #tpu.memory_space<vmem>>, vector<8x32xf32>
    %91 = arith.mulf %89, %90 : vector<8x32xf32>
    %92 = vector.extract_strided_slice %86 {offsets = [0, 0], sizes = [8, 32], strides = [1, 1]} : vector<8x96xf32> to vector<8x32xf32>
    %93 = arith.mulf %92, %88 : vector<8x32xf32>
    %94 = arith.addf %91, %93 : vector<8x32xf32>
    %95 = vector.extract_strided_slice %86 {offsets = [0, 64], sizes = [8, 32], strides = [1, 1]} : vector<8x96xf32> to vector<8x32xf32>
    %96 = math.tanh %94 : vector<8x32xf32>
    %97 = arith.mulf %95, %96 : vector<8x32xf32>
    %c0_58 = arith.constant 0 : index
    %c0_59 = arith.constant 0 : index
    %98 = vector.load %arg16[%c0_58, %c0_59] : memref<8x32xf32, #tpu.memory_space<vmem>>, vector<8x32xf32>
    tpu.vector_store %arg16[%c0_58, %c0_59], %94 {strides = array<i32>} : memref<8x32xf32, #tpu.memory_space<vmem>>, vector<8x32xf32>,
    %c0_60 = arith.constant 0 : index
    %c0_61 = arith.constant 0 : index
    %99 = vector.load %arg15[%c0_60, %c0_61] : memref<8x32xf32, #tpu.memory_space<vmem>>, vector<8x32xf32>
    tpu.vector_store %arg15[%c0_60, %c0_61], %97 {strides = array<i32>} : memref<8x32xf32, #tpu.memory_space<vmem>>, vector<8x32xf32>,
    %100 = arith.index_cast %c2_i32 : i32 to index
    %c0_62 = arith.constant 0 : index
    %c0_63 = arith.constant 0 : index
    %101 = vector.load %arg14[%100, %c0_62, %c0_63] : memref<8x8x32xf32, #tpu.memory_space<vmem>>, vector<1x8x32xf32>
    %102 = vector.shape_cast %101 : vector<1x8x32xf32> to vector<8x32xf32>
    %103 = vector.shape_cast %97 : vector<8x32xf32> to vector<1x8x32xf32>
    tpu.vector_store %arg14[%100, %c0_62, %c0_63], %103 {strides = array<i32>} : memref<8x8x32xf32, #tpu.memory_space<vmem>>, vector<1x8x32xf32>,
    %c3_i32 = arith.constant 3 : i32
    %104 = arith.index_cast %c3_i32 : i32 to index
    %c0_64 = arith.constant 0 : index
    %c0_65 = arith.constant 0 : index
    %105 = vector.load %arg13[%104, %c0_64, %c0_65] : memref<8x8x128xf32, #tpu.memory_space<vmem>>, vector<1x8x128xf32>
    %106 = vector.shape_cast %105 : vector<1x8x128xf32> to vector<8x128xf32>
    %c0_66 = arith.constant 0 : index
    %c0_67 = arith.constant 0 : index
    %107 = vector.load %arg15[%c0_66, %c0_67] : memref<8x32xf32, #tpu.memory_space<vmem>>, vector<8x32xf32>
    %cst_68 = arith.constant dense<0.000000e+00> : vector<8x128xf32>
    %108 = tpu.matmul %107, %16, %cst_68 {dimension_numbers = #tpu.dot_dimension_numbers<[1], [0], [0], [1], [0, 0, 1, 1], [], []>} : vector<8x32xf32>, vector<32x128xf32>, vector<8x128xf32> -> vector<8x128xf32>
    %109 = arith.addf %106, %108 : vector<8x128xf32>
    %110 = vector.extract_strided_slice %109 {offsets = [0, 0], sizes = [8, 96], strides = [1, 1]} : vector<8x128xf32> to vector<8x96xf32>
    %111 = arith.negf %110 : vector<8x96xf32>
    %112 = math.exp %111 : vector<8x96xf32>
    %cst_69 = arith.constant 1.000000e+00 : f32
    %113 = vector.broadcast %cst_69 : f32 to vector<8x96xf32>
    %114 = arith.addf %113, %112 : vector<8x96xf32>
    %115 = arith.divf %113, %114 : vector<8x96xf32>
    %116 = vector.extract_strided_slice %109 {offsets = [0, 96], sizes = [8, 32], strides = [1, 1]} : vector<8x128xf32> to vector<8x32xf32>
    %117 = math.tanh %116 : vector<8x32xf32>
    %118 = vector.extract_strided_slice %115 {offsets = [0, 32], sizes = [8, 32], strides = [1, 1]} : vector<8x96xf32> to vector<8x32xf32>
    %c0_70 = arith.constant 0 : index
    %c0_71 = arith.constant 0 : index
    %119 = vector.load %arg16[%c0_70, %c0_71] : memref<8x32xf32, #tpu.memory_space<vmem>>, vector<8x32xf32>
    %120 = arith.mulf %118, %119 : vector<8x32xf32>
    %121 = vector.extract_strided_slice %115 {offsets = [0, 0], sizes = [8, 32], strides = [1, 1]} : vector<8x96xf32> to vector<8x32xf32>
    %122 = arith.mulf %121, %117 : vector<8x32xf32>
    %123 = arith.addf %120, %122 : vector<8x32xf32>
    %124 = vector.extract_strided_slice %115 {offsets = [0, 64], sizes = [8, 32], strides = [1, 1]} : vector<8x96xf32> to vector<8x32xf32>
    %125 = math.tanh %123 : vector<8x32xf32>
    %126 = arith.mulf %124, %125 : vector<8x32xf32>
    %c0_72 = arith.constant 0 : index
    %c0_73 = arith.constant 0 : index
    %127 = vector.load %arg16[%c0_72, %c0_73] : memref<8x32xf32, #tpu.memory_space<vmem>>, vector<8x32xf32>
    tpu.vector_store %arg16[%c0_72, %c0_73], %123 {strides = array<i32>} : memref<8x32xf32, #tpu.memory_space<vmem>>, vector<8x32xf32>,
    %c0_74 = arith.constant 0 : index
    %c0_75 = arith.constant 0 : index
    %128 = vector.load %arg15[%c0_74, %c0_75] : memref<8x32xf32, #tpu.memory_space<vmem>>, vector<8x32xf32>
    tpu.vector_store %arg15[%c0_74, %c0_75], %126 {strides = array<i32>} : memref<8x32xf32, #tpu.memory_space<vmem>>, vector<8x32xf32>,
    %129 = arith.index_cast %c3_i32 : i32 to index
    %c0_76 = arith.constant 0 : index
    %c0_77 = arith.constant 0 : index
    %130 = vector.load %arg14[%129, %c0_76, %c0_77] : memref<8x8x32xf32, #tpu.memory_space<vmem>>, vector<1x8x32xf32>
    %131 = vector.shape_cast %130 : vector<1x8x32xf32> to vector<8x32xf32>
    %132 = vector.shape_cast %126 : vector<8x32xf32> to vector<1x8x32xf32>
    tpu.vector_store %arg14[%129, %c0_76, %c0_77], %132 {strides = array<i32>} : memref<8x8x32xf32, #tpu.memory_space<vmem>>, vector<1x8x32xf32>,
    %c4_i32 = arith.constant 4 : i32
    %133 = arith.index_cast %c4_i32 : i32 to index
    %c0_78 = arith.constant 0 : index
    %c0_79 = arith.constant 0 : index
    %134 = vector.load %arg13[%133, %c0_78, %c0_79] : memref<8x8x128xf32, #tpu.memory_space<vmem>>, vector<1x8x128xf32>
    %135 = vector.shape_cast %134 : vector<1x8x128xf32> to vector<8x128xf32>
    %c0_80 = arith.constant 0 : index
    %c0_81 = arith.constant 0 : index
    %136 = vector.load %arg15[%c0_80, %c0_81] : memref<8x32xf32, #tpu.memory_space<vmem>>, vector<8x32xf32>
    %cst_82 = arith.constant dense<0.000000e+00> : vector<8x128xf32>
    %137 = tpu.matmul %136, %16, %cst_82 {dimension_numbers = #tpu.dot_dimension_numbers<[1], [0], [0], [1], [0, 0, 1, 1], [], []>} : vector<8x32xf32>, vector<32x128xf32>, vector<8x128xf32> -> vector<8x128xf32>
    %138 = arith.addf %135, %137 : vector<8x128xf32>
    %139 = vector.extract_strided_slice %138 {offsets = [0, 0], sizes = [8, 96], strides = [1, 1]} : vector<8x128xf32> to vector<8x96xf32>
    %140 = arith.negf %139 : vector<8x96xf32>
    %141 = math.exp %140 : vector<8x96xf32>
    %cst_83 = arith.constant 1.000000e+00 : f32
    %142 = vector.broadcast %cst_83 : f32 to vector<8x96xf32>
    %143 = arith.addf %142, %141 : vector<8x96xf32>
    %144 = arith.divf %142, %143 : vector<8x96xf32>
    %145 = vector.extract_strided_slice %138 {offsets = [0, 96], sizes = [8, 32], strides = [1, 1]} : vector<8x128xf32> to vector<8x32xf32>
    %146 = math.tanh %145 : vector<8x32xf32>
    %147 = vector.extract_strided_slice %144 {offsets = [0, 32], sizes = [8, 32], strides = [1, 1]} : vector<8x96xf32> to vector<8x32xf32>
    %c0_84 = arith.constant 0 : index
    %c0_85 = arith.constant 0 : index
    %148 = vector.load %arg16[%c0_84, %c0_85] : memref<8x32xf32, #tpu.memory_space<vmem>>, vector<8x32xf32>
    %149 = arith.mulf %147, %148 : vector<8x32xf32>
    %150 = vector.extract_strided_slice %144 {offsets = [0, 0], sizes = [8, 32], strides = [1, 1]} : vector<8x96xf32> to vector<8x32xf32>
    %151 = arith.mulf %150, %146 : vector<8x32xf32>
    %152 = arith.addf %149, %151 : vector<8x32xf32>
    %153 = vector.extract_strided_slice %144 {offsets = [0, 64], sizes = [8, 32], strides = [1, 1]} : vector<8x96xf32> to vector<8x32xf32>
    %154 = math.tanh %152 : vector<8x32xf32>
    %155 = arith.mulf %153, %154 : vector<8x32xf32>
    %c0_86 = arith.constant 0 : index
    %c0_87 = arith.constant 0 : index
    %156 = vector.load %arg16[%c0_86, %c0_87] : memref<8x32xf32, #tpu.memory_space<vmem>>, vector<8x32xf32>
    tpu.vector_store %arg16[%c0_86, %c0_87], %152 {strides = array<i32>} : memref<8x32xf32, #tpu.memory_space<vmem>>, vector<8x32xf32>,
    %c0_88 = arith.constant 0 : index
    %c0_89 = arith.constant 0 : index
    %157 = vector.load %arg15[%c0_88, %c0_89] : memref<8x32xf32, #tpu.memory_space<vmem>>, vector<8x32xf32>
    tpu.vector_store %arg15[%c0_88, %c0_89], %155 {strides = array<i32>} : memref<8x32xf32, #tpu.memory_space<vmem>>, vector<8x32xf32>,
    %158 = arith.index_cast %c4_i32 : i32 to index
    %c0_90 = arith.constant 0 : index
    %c0_91 = arith.constant 0 : index
    %159 = vector.load %arg14[%158, %c0_90, %c0_91] : memref<8x8x32xf32, #tpu.memory_space<vmem>>, vector<1x8x32xf32>
    %160 = vector.shape_cast %159 : vector<1x8x32xf32> to vector<8x32xf32>
    %161 = vector.shape_cast %155 : vector<8x32xf32> to vector<1x8x32xf32>
    tpu.vector_store %arg14[%158, %c0_90, %c0_91], %161 {strides = array<i32>} : memref<8x8x32xf32, #tpu.memory_space<vmem>>, vector<1x8x32xf32>,
    %c5_i32 = arith.constant 5 : i32
    %162 = arith.index_cast %c5_i32 : i32 to index
    %c0_92 = arith.constant 0 : index
    %c0_93 = arith.constant 0 : index
    %163 = vector.load %arg13[%162, %c0_92, %c0_93] : memref<8x8x128xf32, #tpu.memory_space<vmem>>, vector<1x8x128xf32>
    %164 = vector.shape_cast %163 : vector<1x8x128xf32> to vector<8x128xf32>
    %c0_94 = arith.constant 0 : index
    %c0_95 = arith.constant 0 : index
    %165 = vector.load %arg15[%c0_94, %c0_95] : memref<8x32xf32, #tpu.memory_space<vmem>>, vector<8x32xf32>
    %cst_96 = arith.constant dense<0.000000e+00> : vector<8x128xf32>
    %166 = tpu.matmul %165, %16, %cst_96 {dimension_numbers = #tpu.dot_dimension_numbers<[1], [0], [0], [1], [0, 0, 1, 1], [], []>} : vector<8x32xf32>, vector<32x128xf32>, vector<8x128xf32> -> vector<8x128xf32>
    %167 = arith.addf %164, %166 : vector<8x128xf32>
    %168 = vector.extract_strided_slice %167 {offsets = [0, 0], sizes = [8, 96], strides = [1, 1]} : vector<8x128xf32> to vector<8x96xf32>
    %169 = arith.negf %168 : vector<8x96xf32>
    %170 = math.exp %169 : vector<8x96xf32>
    %cst_97 = arith.constant 1.000000e+00 : f32
    %171 = vector.broadcast %cst_97 : f32 to vector<8x96xf32>
    %172 = arith.addf %171, %170 : vector<8x96xf32>
    %173 = arith.divf %171, %172 : vector<8x96xf32>
    %174 = vector.extract_strided_slice %167 {offsets = [0, 96], sizes = [8, 32], strides = [1, 1]} : vector<8x128xf32> to vector<8x32xf32>
    %175 = math.tanh %174 : vector<8x32xf32>
    %176 = vector.extract_strided_slice %173 {offsets = [0, 32], sizes = [8, 32], strides = [1, 1]} : vector<8x96xf32> to vector<8x32xf32>
    %c0_98 = arith.constant 0 : index
    %c0_99 = arith.constant 0 : index
    %177 = vector.load %arg16[%c0_98, %c0_99] : memref<8x32xf32, #tpu.memory_space<vmem>>, vector<8x32xf32>
    %178 = arith.mulf %176, %177 : vector<8x32xf32>
    %179 = vector.extract_strided_slice %173 {offsets = [0, 0], sizes = [8, 32], strides = [1, 1]} : vector<8x96xf32> to vector<8x32xf32>
    %180 = arith.mulf %179, %175 : vector<8x32xf32>
    %181 = arith.addf %178, %180 : vector<8x32xf32>
    %182 = vector.extract_strided_slice %173 {offsets = [0, 64], sizes = [8, 32], strides = [1, 1]} : vector<8x96xf32> to vector<8x32xf32>
    %183 = math.tanh %181 : vector<8x32xf32>
    %184 = arith.mulf %182, %183 : vector<8x32xf32>
    %c0_100 = arith.constant 0 : index
    %c0_101 = arith.constant 0 : index
    %185 = vector.load %arg16[%c0_100, %c0_101] : memref<8x32xf32, #tpu.memory_space<vmem>>, vector<8x32xf32>
    tpu.vector_store %arg16[%c0_100, %c0_101], %181 {strides = array<i32>} : memref<8x32xf32, #tpu.memory_space<vmem>>, vector<8x32xf32>,
    %c0_102 = arith.constant 0 : index
    %c0_103 = arith.constant 0 : index
    %186 = vector.load %arg15[%c0_102, %c0_103] : memref<8x32xf32, #tpu.memory_space<vmem>>, vector<8x32xf32>
    tpu.vector_store %arg15[%c0_102, %c0_103], %184 {strides = array<i32>} : memref<8x32xf32, #tpu.memory_space<vmem>>, vector<8x32xf32>,
    %187 = arith.index_cast %c5_i32 : i32 to index
    %c0_104 = arith.constant 0 : index
    %c0_105 = arith.constant 0 : index
    %188 = vector.load %arg14[%187, %c0_104, %c0_105] : memref<8x8x32xf32, #tpu.memory_space<vmem>>, vector<1x8x32xf32>
    %189 = vector.shape_cast %188 : vector<1x8x32xf32> to vector<8x32xf32>
    %190 = vector.shape_cast %184 : vector<8x32xf32> to vector<1x8x32xf32>
    tpu.vector_store %arg14[%187, %c0_104, %c0_105], %190 {strides = array<i32>} : memref<8x8x32xf32, #tpu.memory_space<vmem>>, vector<1x8x32xf32>,
    %c6_i32 = arith.constant 6 : i32
    %191 = arith.index_cast %c6_i32 : i32 to index
    %c0_106 = arith.constant 0 : index
    %c0_107 = arith.constant 0 : index
    %192 = vector.load %arg13[%191, %c0_106, %c0_107] : memref<8x8x128xf32, #tpu.memory_space<vmem>>, vector<1x8x128xf32>
    %193 = vector.shape_cast %192 : vector<1x8x128xf32> to vector<8x128xf32>
    %c0_108 = arith.constant 0 : index
    %c0_109 = arith.constant 0 : index
    %194 = vector.load %arg15[%c0_108, %c0_109] : memref<8x32xf32, #tpu.memory_space<vmem>>, vector<8x32xf32>
    %cst_110 = arith.constant dense<0.000000e+00> : vector<8x128xf32>
    %195 = tpu.matmul %194, %16, %cst_110 {dimension_numbers = #tpu.dot_dimension_numbers<[1], [0], [0], [1], [0, 0, 1, 1], [], []>} : vector<8x32xf32>, vector<32x128xf32>, vector<8x128xf32> -> vector<8x128xf32>
    %196 = arith.addf %193, %195 : vector<8x128xf32>
    %197 = vector.extract_strided_slice %196 {offsets = [0, 0], sizes = [8, 96], strides = [1, 1]} : vector<8x128xf32> to vector<8x96xf32>
    %198 = arith.negf %197 : vector<8x96xf32>
    %199 = math.exp %198 : vector<8x96xf32>
    %cst_111 = arith.constant 1.000000e+00 : f32
    %200 = vector.broadcast %cst_111 : f32 to vector<8x96xf32>
    %201 = arith.addf %200, %199 : vector<8x96xf32>
    %202 = arith.divf %200, %201 : vector<8x96xf32>
    %203 = vector.extract_strided_slice %196 {offsets = [0, 96], sizes = [8, 32], strides = [1, 1]} : vector<8x128xf32> to vector<8x32xf32>
    %204 = math.tanh %203 : vector<8x32xf32>
    %205 = vector.extract_strided_slice %202 {offsets = [0, 32], sizes = [8, 32], strides = [1, 1]} : vector<8x96xf32> to vector<8x32xf32>
    %c0_112 = arith.constant 0 : index
    %c0_113 = arith.constant 0 : index
    %206 = vector.load %arg16[%c0_112, %c0_113] : memref<8x32xf32, #tpu.memory_space<vmem>>, vector<8x32xf32>
    %207 = arith.mulf %205, %206 : vector<8x32xf32>
    %208 = vector.extract_strided_slice %202 {offsets = [0, 0], sizes = [8, 32], strides = [1, 1]} : vector<8x96xf32> to vector<8x32xf32>
    %209 = arith.mulf %208, %204 : vector<8x32xf32>
    %210 = arith.addf %207, %209 : vector<8x32xf32>
    %211 = vector.extract_strided_slice %202 {offsets = [0, 64], sizes = [8, 32], strides = [1, 1]} : vector<8x96xf32> to vector<8x32xf32>
    %212 = math.tanh %210 : vector<8x32xf32>
    %213 = arith.mulf %211, %212 : vector<8x32xf32>
    %c0_114 = arith.constant 0 : index
    %c0_115 = arith.constant 0 : index
    %214 = vector.load %arg16[%c0_114, %c0_115] : memref<8x32xf32, #tpu.memory_space<vmem>>, vector<8x32xf32>
    tpu.vector_store %arg16[%c0_114, %c0_115], %210 {strides = array<i32>} : memref<8x32xf32, #tpu.memory_space<vmem>>, vector<8x32xf32>,
    %c0_116 = arith.constant 0 : index
    %c0_117 = arith.constant 0 : index
    %215 = vector.load %arg15[%c0_116, %c0_117] : memref<8x32xf32, #tpu.memory_space<vmem>>, vector<8x32xf32>
    tpu.vector_store %arg15[%c0_116, %c0_117], %213 {strides = array<i32>} : memref<8x32xf32, #tpu.memory_space<vmem>>, vector<8x32xf32>,
    %216 = arith.index_cast %c6_i32 : i32 to index
    %c0_118 = arith.constant 0 : index
    %c0_119 = arith.constant 0 : index
    %217 = vector.load %arg14[%216, %c0_118, %c0_119] : memref<8x8x32xf32, #tpu.memory_space<vmem>>, vector<1x8x32xf32>
    %218 = vector.shape_cast %217 : vector<1x8x32xf32> to vector<8x32xf32>
    %219 = vector.shape_cast %213 : vector<8x32xf32> to vector<1x8x32xf32>
    tpu.vector_store %arg14[%216, %c0_118, %c0_119], %219 {strides = array<i32>} : memref<8x8x32xf32, #tpu.memory_space<vmem>>, vector<1x8x32xf32>,
    %c7_i32 = arith.constant 7 : i32
    %220 = arith.index_cast %c7_i32 : i32 to index
    %c0_120 = arith.constant 0 : index
    %c0_121 = arith.constant 0 : index
    %221 = vector.load %arg13[%220, %c0_120, %c0_121] : memref<8x8x128xf32, #tpu.memory_space<vmem>>, vector<1x8x128xf32>
    %222 = vector.shape_cast %221 : vector<1x8x128xf32> to vector<8x128xf32>
    %c0_122 = arith.constant 0 : index
    %c0_123 = arith.constant 0 : index
    %223 = vector.load %arg15[%c0_122, %c0_123] : memref<8x32xf32, #tpu.memory_space<vmem>>, vector<8x32xf32>
    %cst_124 = arith.constant dense<0.000000e+00> : vector<8x128xf32>
    %224 = tpu.matmul %223, %16, %cst_124 {dimension_numbers = #tpu.dot_dimension_numbers<[1], [0], [0], [1], [0, 0, 1, 1], [], []>} : vector<8x32xf32>, vector<32x128xf32>, vector<8x128xf32> -> vector<8x128xf32>
    %225 = arith.addf %222, %224 : vector<8x128xf32>
    %226 = vector.extract_strided_slice %225 {offsets = [0, 0], sizes = [8, 96], strides = [1, 1]} : vector<8x128xf32> to vector<8x96xf32>
    %227 = arith.negf %226 : vector<8x96xf32>
    %228 = math.exp %227 : vector<8x96xf32>
    %cst_125 = arith.constant 1.000000e+00 : f32
    %229 = vector.broadcast %cst_125 : f32 to vector<8x96xf32>
    %230 = arith.addf %229, %228 : vector<8x96xf32>
    %231 = arith.divf %229, %230 : vector<8x96xf32>
    %232 = vector.extract_strided_slice %225 {offsets = [0, 96], sizes = [8, 32], strides = [1, 1]} : vector<8x128xf32> to vector<8x32xf32>
    %233 = math.tanh %232 : vector<8x32xf32>
    %234 = vector.extract_strided_slice %231 {offsets = [0, 32], sizes = [8, 32], strides = [1, 1]} : vector<8x96xf32> to vector<8x32xf32>
    %c0_126 = arith.constant 0 : index
    %c0_127 = arith.constant 0 : index
    %235 = vector.load %arg16[%c0_126, %c0_127] : memref<8x32xf32, #tpu.memory_space<vmem>>, vector<8x32xf32>
    %236 = arith.mulf %234, %235 : vector<8x32xf32>
    %237 = vector.extract_strided_slice %231 {offsets = [0, 0], sizes = [8, 32], strides = [1, 1]} : vector<8x96xf32> to vector<8x32xf32>
    %238 = arith.mulf %237, %233 : vector<8x32xf32>
    %239 = arith.addf %236, %238 : vector<8x32xf32>
    %240 = vector.extract_strided_slice %231 {offsets = [0, 64], sizes = [8, 32], strides = [1, 1]} : vector<8x96xf32> to vector<8x32xf32>
    %241 = math.tanh %239 : vector<8x32xf32>
    %242 = arith.mulf %240, %241 : vector<8x32xf32>
    %c0_128 = arith.constant 0 : index
    %c0_129 = arith.constant 0 : index
    %243 = vector.load %arg16[%c0_128, %c0_129] : memref<8x32xf32, #tpu.memory_space<vmem>>, vector<8x32xf32>
    tpu.vector_store %arg16[%c0_128, %c0_129], %239 {strides = array<i32>} : memref<8x32xf32, #tpu.memory_space<vmem>>, vector<8x32xf32>,
    %c0_130 = arith.constant 0 : index
    %c0_131 = arith.constant 0 : index
    %244 = vector.load %arg15[%c0_130, %c0_131] : memref<8x32xf32, #tpu.memory_space<vmem>>, vector<8x32xf32>
    tpu.vector_store %arg15[%c0_130, %c0_131], %242 {strides = array<i32>} : memref<8x32xf32, #tpu.memory_space<vmem>>, vector<8x32xf32>,
    %245 = arith.index_cast %c7_i32 : i32 to index
    %c0_132 = arith.constant 0 : index
    %c0_133 = arith.constant 0 : index
    %246 = vector.load %arg14[%245, %c0_132, %c0_133] : memref<8x8x32xf32, #tpu.memory_space<vmem>>, vector<1x8x32xf32>
    %247 = vector.shape_cast %246 : vector<1x8x32xf32> to vector<8x32xf32>
    %248 = vector.shape_cast %242 : vector<8x32xf32> to vector<1x8x32xf32>
    tpu.vector_store %arg14[%245, %c0_132, %c0_133], %248 {strides = array<i32>} : memref<8x8x32xf32, #tpu.memory_space<vmem>>, vector<1x8x32xf32>,
    %c8_i32 = arith.constant 8 : i32
    %c0_134 = arith.constant 0 : index
    %c0_135 = arith.constant 0 : index
    %249 = vector.load %arg15[%c0_134, %c0_135] : memref<8x32xf32, #tpu.memory_space<vmem>>, vector<8x32xf32>
    %c0_136 = arith.constant 0 : index
    %c0_137 = arith.constant 0 : index
    %c0_138 = arith.constant 0 : index
    %250 = vector.load %arg11[%c0_136, %c0_137, %c0_138] : memref<3x8x32xf32, #tpu.memory_space<vmem>>, vector<1x8x32xf32>
    %251 = vector.shape_cast %250 : vector<1x8x32xf32> to vector<8x32xf32>
    %252 = vector.shape_cast %249 : vector<8x32xf32> to vector<1x8x32xf32>
    tpu.vector_store %arg11[%c0_136, %c0_137, %c0_138], %252 {strides = array<i32>} : memref<3x8x32xf32, #tpu.memory_space<vmem>>, vector<1x8x32xf32>,
    %c0_139 = arith.constant 0 : index
    %c0_140 = arith.constant 0 : index
    %253 = vector.load %arg16[%c0_139, %c0_140] : memref<8x32xf32, #tpu.memory_space<vmem>>, vector<8x32xf32>
    %c0_141 = arith.constant 0 : index
    %c0_142 = arith.constant 0 : index
    %c0_143 = arith.constant 0 : index
    %254 = vector.load %arg12[%c0_141, %c0_142, %c0_143] : memref<3x8x32xf32, #tpu.memory_space<vmem>>, vector<1x8x32xf32>
    %255 = vector.shape_cast %254 : vector<1x8x32xf32> to vector<8x32xf32>
    %256 = vector.shape_cast %253 : vector<8x32xf32> to vector<1x8x32xf32>
    tpu.vector_store %arg12[%c0_141, %c0_142, %c0_143], %256 {strides = array<i32>} : memref<3x8x32xf32, #tpu.memory_space<vmem>>, vector<1x8x32xf32>,
    %c0_144 = arith.constant 0 : index
    %c0_145 = arith.constant 0 : index
    %c0_146 = arith.constant 0 : index
    %257 = vector.load %arg14[%c0_144, %c0_145, %c0_146] : memref<8x8x32xf32, #tpu.memory_space<vmem>>, vector<8x8x32xf32>
    %258 = vector.shape_cast %257 : vector<8x8x32xf32> to vector<64x32xf32>
    %c0_147 = arith.constant 0 : index
    %c0_148 = arith.constant 0 : index
    %c0_149 = arith.constant 0 : index
    %259 = vector.load %arg3[%c0_147, %c0_148, %c0_149] : memref<2x32x128xf32, #tpu.memory_space<vmem>>, vector<1x32x128xf32>
    %260 = vector.shape_cast %259 : vector<1x32x128xf32> to vector<32x128xf32>
    %cst_150 = arith.constant dense<0.000000e+00> : vector<64x128xf32>
    %261 = tpu.matmul %258, %260, %cst_150 {dimension_numbers = #tpu.dot_dimension_numbers<[1], [0], [0], [1], [0, 0, 1, 1], [], []>} : vector<64x32xf32>, vector<32x128xf32>, vector<64x128xf32> -> vector<64x128xf32>
    %c0_151 = arith.constant 0 : index
    %c0_152 = arith.constant 0 : index
    %c0_153 = arith.constant 0 : index
    %262 = vector.load %arg4[%c0_151, %c0_152, %c0_153] : memref<2x1x128xf32, #tpu.memory_space<vmem>>, vector<1x1x128xf32>
    %263 = vector.shape_cast %262 : vector<1x1x128xf32> to vector<1x128xf32>
    %264 = vector.broadcast %263 : vector<1x128xf32> to vector<64x128xf32>
    %265 = arith.addf %261, %264 : vector<64x128xf32>
    %266 = vector.shape_cast %265 : vector<64x128xf32> to vector<8x8x128xf32>
    %c0_154 = arith.constant 0 : index
    %c0_155 = arith.constant 0 : index
    %c0_156 = arith.constant 0 : index
    %267 = vector.load %arg13[%c0_154, %c0_155, %c0_156] : memref<8x8x128xf32, #tpu.memory_space<vmem>>, vector<8x8x128xf32>
    tpu.vector_store %arg13[%c0_154, %c0_155, %c0_156], %266 {strides = array<i32>} : memref<8x8x128xf32, #tpu.memory_space<vmem>>, vector<8x8x128xf32>,
    %c1 = arith.constant 1 : index
    %c0_157 = arith.constant 0 : index
    %c0_158 = arith.constant 0 : index
    %268 = vector.load %arg6[%c1, %c0_157, %c0_158] : memref<3x8x32xf32, #tpu.memory_space<vmem>>, vector<1x8x32xf32>
    %269 = vector.shape_cast %268 : vector<1x8x32xf32> to vector<8x32xf32>
    %c0_159 = arith.constant 0 : index
    %c0_160 = arith.constant 0 : index
    %270 = vector.load %arg15[%c0_159, %c0_160] : memref<8x32xf32, #tpu.memory_space<vmem>>, vector<8x32xf32>
    tpu.vector_store %arg15[%c0_159, %c0_160], %269 {strides = array<i32>} : memref<8x32xf32, #tpu.memory_space<vmem>>, vector<8x32xf32>,
    %c1_161 = arith.constant 1 : index
    %c0_162 = arith.constant 0 : index
    %c0_163 = arith.constant 0 : index
    %271 = vector.load %arg7[%c1_161, %c0_162, %c0_163] : memref<3x8x32xf32, #tpu.memory_space<vmem>>, vector<1x8x32xf32>
    %272 = vector.shape_cast %271 : vector<1x8x32xf32> to vector<8x32xf32>
    %c0_164 = arith.constant 0 : index
    %c0_165 = arith.constant 0 : index
    %273 = vector.load %arg16[%c0_164, %c0_165] : memref<8x32xf32, #tpu.memory_space<vmem>>, vector<8x32xf32>
    tpu.vector_store %arg16[%c0_164, %c0_165], %272 {strides = array<i32>} : memref<8x32xf32, #tpu.memory_space<vmem>>, vector<8x32xf32>,
    %c1_166 = arith.constant 1 : index
    %c0_167 = arith.constant 0 : index
    %c0_168 = arith.constant 0 : index
    %274 = vector.load %arg5[%c1_166, %c0_167, %c0_168] : memref<3x32x128xf32, #tpu.memory_space<vmem>>, vector<1x32x128xf32>
    %275 = vector.shape_cast %274 : vector<1x32x128xf32> to vector<32x128xf32>
    %c0_i32_169 = arith.constant 0 : i32
    %276 = arith.index_cast %c0_i32_169 : i32 to index
    %c0_170 = arith.constant 0 : index
    %c0_171 = arith.constant 0 : index
    %277 = vector.load %arg13[%276, %c0_170, %c0_171] : memref<8x8x128xf32, #tpu.memory_space<vmem>>, vector<1x8x128xf32>
    %278 = vector.shape_cast %277 : vector<1x8x128xf32> to vector<8x128xf32>
    %c0_172 = arith.constant 0 : index
    %c0_173 = arith.constant 0 : index
    %279 = vector.load %arg15[%c0_172, %c0_173] : memref<8x32xf32, #tpu.memory_space<vmem>>, vector<8x32xf32>
    %cst_174 = arith.constant dense<0.000000e+00> : vector<8x128xf32>
    %280 = tpu.matmul %279, %275, %cst_174 {dimension_numbers = #tpu.dot_dimension_numbers<[1], [0], [0], [1], [0, 0, 1, 1], [], []>} : vector<8x32xf32>, vector<32x128xf32>, vector<8x128xf32> -> vector<8x128xf32>
    %281 = arith.addf %278, %280 : vector<8x128xf32>
    %282 = vector.extract_strided_slice %281 {offsets = [0, 0], sizes = [8, 96], strides = [1, 1]} : vector<8x128xf32> to vector<8x96xf32>
    %283 = arith.negf %282 : vector<8x96xf32>
    %284 = math.exp %283 : vector<8x96xf32>
    %cst_175 = arith.constant 1.000000e+00 : f32
    %285 = vector.broadcast %cst_175 : f32 to vector<8x96xf32>
    %286 = arith.addf %285, %284 : vector<8x96xf32>
    %287 = arith.divf %285, %286 : vector<8x96xf32>
    %288 = vector.extract_strided_slice %281 {offsets = [0, 96], sizes = [8, 32], strides = [1, 1]} : vector<8x128xf32> to vector<8x32xf32>
    %289 = math.tanh %288 : vector<8x32xf32>
    %290 = vector.extract_strided_slice %287 {offsets = [0, 32], sizes = [8, 32], strides = [1, 1]} : vector<8x96xf32> to vector<8x32xf32>
    %c0_176 = arith.constant 0 : index
    %c0_177 = arith.constant 0 : index
    %291 = vector.load %arg16[%c0_176, %c0_177] : memref<8x32xf32, #tpu.memory_space<vmem>>, vector<8x32xf32>
    %292 = arith.mulf %290, %291 : vector<8x32xf32>
    %293 = vector.extract_strided_slice %287 {offsets = [0, 0], sizes = [8, 32], strides = [1, 1]} : vector<8x96xf32> to vector<8x32xf32>
    %294 = arith.mulf %293, %289 : vector<8x32xf32>
    %295 = arith.addf %292, %294 : vector<8x32xf32>
    %296 = vector.extract_strided_slice %287 {offsets = [0, 64], sizes = [8, 32], strides = [1, 1]} : vector<8x96xf32> to vector<8x32xf32>
    %297 = math.tanh %295 : vector<8x32xf32>
    %298 = arith.mulf %296, %297 : vector<8x32xf32>
    %c0_178 = arith.constant 0 : index
    %c0_179 = arith.constant 0 : index
    %299 = vector.load %arg16[%c0_178, %c0_179] : memref<8x32xf32, #tpu.memory_space<vmem>>, vector<8x32xf32>
    tpu.vector_store %arg16[%c0_178, %c0_179], %295 {strides = array<i32>} : memref<8x32xf32, #tpu.memory_space<vmem>>, vector<8x32xf32>,
    %c0_180 = arith.constant 0 : index
    %c0_181 = arith.constant 0 : index
    %300 = vector.load %arg15[%c0_180, %c0_181] : memref<8x32xf32, #tpu.memory_space<vmem>>, vector<8x32xf32>
    tpu.vector_store %arg15[%c0_180, %c0_181], %298 {strides = array<i32>} : memref<8x32xf32, #tpu.memory_space<vmem>>, vector<8x32xf32>,
    %301 = arith.index_cast %c0_i32_169 : i32 to index
    %c0_182 = arith.constant 0 : index
    %c0_183 = arith.constant 0 : index
    %302 = vector.load %arg14[%301, %c0_182, %c0_183] : memref<8x8x32xf32, #tpu.memory_space<vmem>>, vector<1x8x32xf32>
    %303 = vector.shape_cast %302 : vector<1x8x32xf32> to vector<8x32xf32>
    %304 = vector.shape_cast %298 : vector<8x32xf32> to vector<1x8x32xf32>
    tpu.vector_store %arg14[%301, %c0_182, %c0_183], %304 {strides = array<i32>} : memref<8x8x32xf32, #tpu.memory_space<vmem>>, vector<1x8x32xf32>,
    %c1_i32_184 = arith.constant 1 : i32
    %305 = arith.index_cast %c1_i32_184 : i32 to index
    %c0_185 = arith.constant 0 : index
    %c0_186 = arith.constant 0 : index
    %306 = vector.load %arg13[%305, %c0_185, %c0_186] : memref<8x8x128xf32, #tpu.memory_space<vmem>>, vector<1x8x128xf32>
    %307 = vector.shape_cast %306 : vector<1x8x128xf32> to vector<8x128xf32>
    %c0_187 = arith.constant 0 : index
    %c0_188 = arith.constant 0 : index
    %308 = vector.load %arg15[%c0_187, %c0_188] : memref<8x32xf32, #tpu.memory_space<vmem>>, vector<8x32xf32>
    %cst_189 = arith.constant dense<0.000000e+00> : vector<8x128xf32>
    %309 = tpu.matmul %308, %275, %cst_189 {dimension_numbers = #tpu.dot_dimension_numbers<[1], [0], [0], [1], [0, 0, 1, 1], [], []>} : vector<8x32xf32>, vector<32x128xf32>, vector<8x128xf32> -> vector<8x128xf32>
    %310 = arith.addf %307, %309 : vector<8x128xf32>
    %311 = vector.extract_strided_slice %310 {offsets = [0, 0], sizes = [8, 96], strides = [1, 1]} : vector<8x128xf32> to vector<8x96xf32>
    %312 = arith.negf %311 : vector<8x96xf32>
    %313 = math.exp %312 : vector<8x96xf32>
    %cst_190 = arith.constant 1.000000e+00 : f32
    %314 = vector.broadcast %cst_190 : f32 to vector<8x96xf32>
    %315 = arith.addf %314, %313 : vector<8x96xf32>
    %316 = arith.divf %314, %315 : vector<8x96xf32>
    %317 = vector.extract_strided_slice %310 {offsets = [0, 96], sizes = [8, 32], strides = [1, 1]} : vector<8x128xf32> to vector<8x32xf32>
    %318 = math.tanh %317 : vector<8x32xf32>
    %319 = vector.extract_strided_slice %316 {offsets = [0, 32], sizes = [8, 32], strides = [1, 1]} : vector<8x96xf32> to vector<8x32xf32>
    %c0_191 = arith.constant 0 : index
    %c0_192 = arith.constant 0 : index
    %320 = vector.load %arg16[%c0_191, %c0_192] : memref<8x32xf32, #tpu.memory_space<vmem>>, vector<8x32xf32>
    %321 = arith.mulf %319, %320 : vector<8x32xf32>
    %322 = vector.extract_strided_slice %316 {offsets = [0, 0], sizes = [8, 32], strides = [1, 1]} : vector<8x96xf32> to vector<8x32xf32>
    %323 = arith.mulf %322, %318 : vector<8x32xf32>
    %324 = arith.addf %321, %323 : vector<8x32xf32>
    %325 = vector.extract_strided_slice %316 {offsets = [0, 64], sizes = [8, 32], strides = [1, 1]} : vector<8x96xf32> to vector<8x32xf32>
    %326 = math.tanh %324 : vector<8x32xf32>
    %327 = arith.mulf %325, %326 : vector<8x32xf32>
    %c0_193 = arith.constant 0 : index
    %c0_194 = arith.constant 0 : index
    %328 = vector.load %arg16[%c0_193, %c0_194] : memref<8x32xf32, #tpu.memory_space<vmem>>, vector<8x32xf32>
    tpu.vector_store %arg16[%c0_193, %c0_194], %324 {strides = array<i32>} : memref<8x32xf32, #tpu.memory_space<vmem>>, vector<8x32xf32>,
    %c0_195 = arith.constant 0 : index
    %c0_196 = arith.constant 0 : index
    %329 = vector.load %arg15[%c0_195, %c0_196] : memref<8x32xf32, #tpu.memory_space<vmem>>, vector<8x32xf32>
    tpu.vector_store %arg15[%c0_195, %c0_196], %327 {strides = array<i32>} : memref<8x32xf32, #tpu.memory_space<vmem>>, vector<8x32xf32>,
    %330 = arith.index_cast %c1_i32_184 : i32 to index
    %c0_197 = arith.constant 0 : index
    %c0_198 = arith.constant 0 : index
    %331 = vector.load %arg14[%330, %c0_197, %c0_198] : memref<8x8x32xf32, #tpu.memory_space<vmem>>, vector<1x8x32xf32>
    %332 = vector.shape_cast %331 : vector<1x8x32xf32> to vector<8x32xf32>
    %333 = vector.shape_cast %327 : vector<8x32xf32> to vector<1x8x32xf32>
    tpu.vector_store %arg14[%330, %c0_197, %c0_198], %333 {strides = array<i32>} : memref<8x8x32xf32, #tpu.memory_space<vmem>>, vector<1x8x32xf32>,
    %c2_i32_199 = arith.constant 2 : i32
    %334 = arith.index_cast %c2_i32_199 : i32 to index
    %c0_200 = arith.constant 0 : index
    %c0_201 = arith.constant 0 : index
    %335 = vector.load %arg13[%334, %c0_200, %c0_201] : memref<8x8x128xf32, #tpu.memory_space<vmem>>, vector<1x8x128xf32>
    %336 = vector.shape_cast %335 : vector<1x8x128xf32> to vector<8x128xf32>
    %c0_202 = arith.constant 0 : index
    %c0_203 = arith.constant 0 : index
    %337 = vector.load %arg15[%c0_202, %c0_203] : memref<8x32xf32, #tpu.memory_space<vmem>>, vector<8x32xf32>
    %cst_204 = arith.constant dense<0.000000e+00> : vector<8x128xf32>
    %338 = tpu.matmul %337, %275, %cst_204 {dimension_numbers = #tpu.dot_dimension_numbers<[1], [0], [0], [1], [0, 0, 1, 1], [], []>} : vector<8x32xf32>, vector<32x128xf32>, vector<8x128xf32> -> vector<8x128xf32>
    %339 = arith.addf %336, %338 : vector<8x128xf32>
    %340 = vector.extract_strided_slice %339 {offsets = [0, 0], sizes = [8, 96], strides = [1, 1]} : vector<8x128xf32> to vector<8x96xf32>
    %341 = arith.negf %340 : vector<8x96xf32>
    %342 = math.exp %341 : vector<8x96xf32>
    %cst_205 = arith.constant 1.000000e+00 : f32
    %343 = vector.broadcast %cst_205 : f32 to vector<8x96xf32>
    %344 = arith.addf %343, %342 : vector<8x96xf32>
    %345 = arith.divf %343, %344 : vector<8x96xf32>
    %346 = vector.extract_strided_slice %339 {offsets = [0, 96], sizes = [8, 32], strides = [1, 1]} : vector<8x128xf32> to vector<8x32xf32>
    %347 = math.tanh %346 : vector<8x32xf32>
    %348 = vector.extract_strided_slice %345 {offsets = [0, 32], sizes = [8, 32], strides = [1, 1]} : vector<8x96xf32> to vector<8x32xf32>
    %c0_206 = arith.constant 0 : index
    %c0_207 = arith.constant 0 : index
    %349 = vector.load %arg16[%c0_206, %c0_207] : memref<8x32xf32, #tpu.memory_space<vmem>>, vector<8x32xf32>
    %350 = arith.mulf %348, %349 : vector<8x32xf32>
    %351 = vector.extract_strided_slice %345 {offsets = [0, 0], sizes = [8, 32], strides = [1, 1]} : vector<8x96xf32> to vector<8x32xf32>
    %352 = arith.mulf %351, %347 : vector<8x32xf32>
    %353 = arith.addf %350, %352 : vector<8x32xf32>
    %354 = vector.extract_strided_slice %345 {offsets = [0, 64], sizes = [8, 32], strides = [1, 1]} : vector<8x96xf32> to vector<8x32xf32>
    %355 = math.tanh %353 : vector<8x32xf32>
    %356 = arith.mulf %354, %355 : vector<8x32xf32>
    %c0_208 = arith.constant 0 : index
    %c0_209 = arith.constant 0 : index
    %357 = vector.load %arg16[%c0_208, %c0_209] : memref<8x32xf32, #tpu.memory_space<vmem>>, vector<8x32xf32>
    tpu.vector_store %arg16[%c0_208, %c0_209], %353 {strides = array<i32>} : memref<8x32xf32, #tpu.memory_space<vmem>>, vector<8x32xf32>,
    %c0_210 = arith.constant 0 : index
    %c0_211 = arith.constant 0 : index
    %358 = vector.load %arg15[%c0_210, %c0_211] : memref<8x32xf32, #tpu.memory_space<vmem>>, vector<8x32xf32>
    tpu.vector_store %arg15[%c0_210, %c0_211], %356 {strides = array<i32>} : memref<8x32xf32, #tpu.memory_space<vmem>>, vector<8x32xf32>,
    %359 = arith.index_cast %c2_i32_199 : i32 to index
    %c0_212 = arith.constant 0 : index
    %c0_213 = arith.constant 0 : index
    %360 = vector.load %arg14[%359, %c0_212, %c0_213] : memref<8x8x32xf32, #tpu.memory_space<vmem>>, vector<1x8x32xf32>
    %361 = vector.shape_cast %360 : vector<1x8x32xf32> to vector<8x32xf32>
    %362 = vector.shape_cast %356 : vector<8x32xf32> to vector<1x8x32xf32>
    tpu.vector_store %arg14[%359, %c0_212, %c0_213], %362 {strides = array<i32>} : memref<8x8x32xf32, #tpu.memory_space<vmem>>, vector<1x8x32xf32>,
    %c3_i32_214 = arith.constant 3 : i32
    %363 = arith.index_cast %c3_i32_214 : i32 to index
    %c0_215 = arith.constant 0 : index
    %c0_216 = arith.constant 0 : index
    %364 = vector.load %arg13[%363, %c0_215, %c0_216] : memref<8x8x128xf32, #tpu.memory_space<vmem>>, vector<1x8x128xf32>
    %365 = vector.shape_cast %364 : vector<1x8x128xf32> to vector<8x128xf32>
    %c0_217 = arith.constant 0 : index
    %c0_218 = arith.constant 0 : index
    %366 = vector.load %arg15[%c0_217, %c0_218] : memref<8x32xf32, #tpu.memory_space<vmem>>, vector<8x32xf32>
    %cst_219 = arith.constant dense<0.000000e+00> : vector<8x128xf32>
    %367 = tpu.matmul %366, %275, %cst_219 {dimension_numbers = #tpu.dot_dimension_numbers<[1], [0], [0], [1], [0, 0, 1, 1], [], []>} : vector<8x32xf32>, vector<32x128xf32>, vector<8x128xf32> -> vector<8x128xf32>
    %368 = arith.addf %365, %367 : vector<8x128xf32>
    %369 = vector.extract_strided_slice %368 {offsets = [0, 0], sizes = [8, 96], strides = [1, 1]} : vector<8x128xf32> to vector<8x96xf32>
    %370 = arith.negf %369 : vector<8x96xf32>
    %371 = math.exp %370 : vector<8x96xf32>
    %cst_220 = arith.constant 1.000000e+00 : f32
    %372 = vector.broadcast %cst_220 : f32 to vector<8x96xf32>
    %373 = arith.addf %372, %371 : vector<8x96xf32>
    %374 = arith.divf %372, %373 : vector<8x96xf32>
    %375 = vector.extract_strided_slice %368 {offsets = [0, 96], sizes = [8, 32], strides = [1, 1]} : vector<8x128xf32> to vector<8x32xf32>
    %376 = math.tanh %375 : vector<8x32xf32>
    %377 = vector.extract_strided_slice %374 {offsets = [0, 32], sizes = [8, 32], strides = [1, 1]} : vector<8x96xf32> to vector<8x32xf32>
    %c0_221 = arith.constant 0 : index
    %c0_222 = arith.constant 0 : index
    %378 = vector.load %arg16[%c0_221, %c0_222] : memref<8x32xf32, #tpu.memory_space<vmem>>, vector<8x32xf32>
    %379 = arith.mulf %377, %378 : vector<8x32xf32>
    %380 = vector.extract_strided_slice %374 {offsets = [0, 0], sizes = [8, 32], strides = [1, 1]} : vector<8x96xf32> to vector<8x32xf32>
    %381 = arith.mulf %380, %376 : vector<8x32xf32>
    %382 = arith.addf %379, %381 : vector<8x32xf32>
    %383 = vector.extract_strided_slice %374 {offsets = [0, 64], sizes = [8, 32], strides = [1, 1]} : vector<8x96xf32> to vector<8x32xf32>
    %384 = math.tanh %382 : vector<8x32xf32>
    %385 = arith.mulf %383, %384 : vector<8x32xf32>
    %c0_223 = arith.constant 0 : index
    %c0_224 = arith.constant 0 : index
    %386 = vector.load %arg16[%c0_223, %c0_224] : memref<8x32xf32, #tpu.memory_space<vmem>>, vector<8x32xf32>
    tpu.vector_store %arg16[%c0_223, %c0_224], %382 {strides = array<i32>} : memref<8x32xf32, #tpu.memory_space<vmem>>, vector<8x32xf32>,
    %c0_225 = arith.constant 0 : index
    %c0_226 = arith.constant 0 : index
    %387 = vector.load %arg15[%c0_225, %c0_226] : memref<8x32xf32, #tpu.memory_space<vmem>>, vector<8x32xf32>
    tpu.vector_store %arg15[%c0_225, %c0_226], %385 {strides = array<i32>} : memref<8x32xf32, #tpu.memory_space<vmem>>, vector<8x32xf32>,
    %388 = arith.index_cast %c3_i32_214 : i32 to index
    %c0_227 = arith.constant 0 : index
    %c0_228 = arith.constant 0 : index
    %389 = vector.load %arg14[%388, %c0_227, %c0_228] : memref<8x8x32xf32, #tpu.memory_space<vmem>>, vector<1x8x32xf32>
    %390 = vector.shape_cast %389 : vector<1x8x32xf32> to vector<8x32xf32>
    %391 = vector.shape_cast %385 : vector<8x32xf32> to vector<1x8x32xf32>
    tpu.vector_store %arg14[%388, %c0_227, %c0_228], %391 {strides = array<i32>} : memref<8x8x32xf32, #tpu.memory_space<vmem>>, vector<1x8x32xf32>,
    %c4_i32_229 = arith.constant 4 : i32
    %392 = arith.index_cast %c4_i32_229 : i32 to index
    %c0_230 = arith.constant 0 : index
    %c0_231 = arith.constant 0 : index
    %393 = vector.load %arg13[%392, %c0_230, %c0_231] : memref<8x8x128xf32, #tpu.memory_space<vmem>>, vector<1x8x128xf32>
    %394 = vector.shape_cast %393 : vector<1x8x128xf32> to vector<8x128xf32>
    %c0_232 = arith.constant 0 : index
    %c0_233 = arith.constant 0 : index
    %395 = vector.load %arg15[%c0_232, %c0_233] : memref<8x32xf32, #tpu.memory_space<vmem>>, vector<8x32xf32>
    %cst_234 = arith.constant dense<0.000000e+00> : vector<8x128xf32>
    %396 = tpu.matmul %395, %275, %cst_234 {dimension_numbers = #tpu.dot_dimension_numbers<[1], [0], [0], [1], [0, 0, 1, 1], [], []>} : vector<8x32xf32>, vector<32x128xf32>, vector<8x128xf32> -> vector<8x128xf32>
    %397 = arith.addf %394, %396 : vector<8x128xf32>
    %398 = vector.extract_strided_slice %397 {offsets = [0, 0], sizes = [8, 96], strides = [1, 1]} : vector<8x128xf32> to vector<8x96xf32>
    %399 = arith.negf %398 : vector<8x96xf32>
    %400 = math.exp %399 : vector<8x96xf32>
    %cst_235 = arith.constant 1.000000e+00 : f32
    %401 = vector.broadcast %cst_235 : f32 to vector<8x96xf32>
    %402 = arith.addf %401, %400 : vector<8x96xf32>
    %403 = arith.divf %401, %402 : vector<8x96xf32>
    %404 = vector.extract_strided_slice %397 {offsets = [0, 96], sizes = [8, 32], strides = [1, 1]} : vector<8x128xf32> to vector<8x32xf32>
    %405 = math.tanh %404 : vector<8x32xf32>
    %406 = vector.extract_strided_slice %403 {offsets = [0, 32], sizes = [8, 32], strides = [1, 1]} : vector<8x96xf32> to vector<8x32xf32>
    %c0_236 = arith.constant 0 : index
    %c0_237 = arith.constant 0 : index
    %407 = vector.load %arg16[%c0_236, %c0_237] : memref<8x32xf32, #tpu.memory_space<vmem>>, vector<8x32xf32>
    %408 = arith.mulf %406, %407 : vector<8x32xf32>
    %409 = vector.extract_strided_slice %403 {offsets = [0, 0], sizes = [8, 32], strides = [1, 1]} : vector<8x96xf32> to vector<8x32xf32>
    %410 = arith.mulf %409, %405 : vector<8x32xf32>
    %411 = arith.addf %408, %410 : vector<8x32xf32>
    %412 = vector.extract_strided_slice %403 {offsets = [0, 64], sizes = [8, 32], strides = [1, 1]} : vector<8x96xf32> to vector<8x32xf32>
    %413 = math.tanh %411 : vector<8x32xf32>
    %414 = arith.mulf %412, %413 : vector<8x32xf32>
    %c0_238 = arith.constant 0 : index
    %c0_239 = arith.constant 0 : index
    %415 = vector.load %arg16[%c0_238, %c0_239] : memref<8x32xf32, #tpu.memory_space<vmem>>, vector<8x32xf32>
    tpu.vector_store %arg16[%c0_238, %c0_239], %411 {strides = array<i32>} : memref<8x32xf32, #tpu.memory_space<vmem>>, vector<8x32xf32>,
    %c0_240 = arith.constant 0 : index
    %c0_241 = arith.constant 0 : index
    %416 = vector.load %arg15[%c0_240, %c0_241] : memref<8x32xf32, #tpu.memory_space<vmem>>, vector<8x32xf32>
    tpu.vector_store %arg15[%c0_240, %c0_241], %414 {strides = array<i32>} : memref<8x32xf32, #tpu.memory_space<vmem>>, vector<8x32xf32>,
    %417 = arith.index_cast %c4_i32_229 : i32 to index
    %c0_242 = arith.constant 0 : index
    %c0_243 = arith.constant 0 : index
    %418 = vector.load %arg14[%417, %c0_242, %c0_243] : memref<8x8x32xf32, #tpu.memory_space<vmem>>, vector<1x8x32xf32>
    %419 = vector.shape_cast %418 : vector<1x8x32xf32> to vector<8x32xf32>
    %420 = vector.shape_cast %414 : vector<8x32xf32> to vector<1x8x32xf32>
    tpu.vector_store %arg14[%417, %c0_242, %c0_243], %420 {strides = array<i32>} : memref<8x8x32xf32, #tpu.memory_space<vmem>>, vector<1x8x32xf32>,
    %c5_i32_244 = arith.constant 5 : i32
    %421 = arith.index_cast %c5_i32_244 : i32 to index
    %c0_245 = arith.constant 0 : index
    %c0_246 = arith.constant 0 : index
    %422 = vector.load %arg13[%421, %c0_245, %c0_246] : memref<8x8x128xf32, #tpu.memory_space<vmem>>, vector<1x8x128xf32>
    %423 = vector.shape_cast %422 : vector<1x8x128xf32> to vector<8x128xf32>
    %c0_247 = arith.constant 0 : index
    %c0_248 = arith.constant 0 : index
    %424 = vector.load %arg15[%c0_247, %c0_248] : memref<8x32xf32, #tpu.memory_space<vmem>>, vector<8x32xf32>
    %cst_249 = arith.constant dense<0.000000e+00> : vector<8x128xf32>
    %425 = tpu.matmul %424, %275, %cst_249 {dimension_numbers = #tpu.dot_dimension_numbers<[1], [0], [0], [1], [0, 0, 1, 1], [], []>} : vector<8x32xf32>, vector<32x128xf32>, vector<8x128xf32> -> vector<8x128xf32>
    %426 = arith.addf %423, %425 : vector<8x128xf32>
    %427 = vector.extract_strided_slice %426 {offsets = [0, 0], sizes = [8, 96], strides = [1, 1]} : vector<8x128xf32> to vector<8x96xf32>
    %428 = arith.negf %427 : vector<8x96xf32>
    %429 = math.exp %428 : vector<8x96xf32>
    %cst_250 = arith.constant 1.000000e+00 : f32
    %430 = vector.broadcast %cst_250 : f32 to vector<8x96xf32>
    %431 = arith.addf %430, %429 : vector<8x96xf32>
    %432 = arith.divf %430, %431 : vector<8x96xf32>
    %433 = vector.extract_strided_slice %426 {offsets = [0, 96], sizes = [8, 32], strides = [1, 1]} : vector<8x128xf32> to vector<8x32xf32>
    %434 = math.tanh %433 : vector<8x32xf32>
    %435 = vector.extract_strided_slice %432 {offsets = [0, 32], sizes = [8, 32], strides = [1, 1]} : vector<8x96xf32> to vector<8x32xf32>
    %c0_251 = arith.constant 0 : index
    %c0_252 = arith.constant 0 : index
    %436 = vector.load %arg16[%c0_251, %c0_252] : memref<8x32xf32, #tpu.memory_space<vmem>>, vector<8x32xf32>
    %437 = arith.mulf %435, %436 : vector<8x32xf32>
    %438 = vector.extract_strided_slice %432 {offsets = [0, 0], sizes = [8, 32], strides = [1, 1]} : vector<8x96xf32> to vector<8x32xf32>
    %439 = arith.mulf %438, %434 : vector<8x32xf32>
    %440 = arith.addf %437, %439 : vector<8x32xf32>
    %441 = vector.extract_strided_slice %432 {offsets = [0, 64], sizes = [8, 32], strides = [1, 1]} : vector<8x96xf32> to vector<8x32xf32>
    %442 = math.tanh %440 : vector<8x32xf32>
    %443 = arith.mulf %441, %442 : vector<8x32xf32>
    %c0_253 = arith.constant 0 : index
    %c0_254 = arith.constant 0 : index
    %444 = vector.load %arg16[%c0_253, %c0_254] : memref<8x32xf32, #tpu.memory_space<vmem>>, vector<8x32xf32>
    tpu.vector_store %arg16[%c0_253, %c0_254], %440 {strides = array<i32>} : memref<8x32xf32, #tpu.memory_space<vmem>>, vector<8x32xf32>,
    %c0_255 = arith.constant 0 : index
    %c0_256 = arith.constant 0 : index
    %445 = vector.load %arg15[%c0_255, %c0_256] : memref<8x32xf32, #tpu.memory_space<vmem>>, vector<8x32xf32>
    tpu.vector_store %arg15[%c0_255, %c0_256], %443 {strides = array<i32>} : memref<8x32xf32, #tpu.memory_space<vmem>>, vector<8x32xf32>,
    %446 = arith.index_cast %c5_i32_244 : i32 to index
    %c0_257 = arith.constant 0 : index
    %c0_258 = arith.constant 0 : index
    %447 = vector.load %arg14[%446, %c0_257, %c0_258] : memref<8x8x32xf32, #tpu.memory_space<vmem>>, vector<1x8x32xf32>
    %448 = vector.shape_cast %447 : vector<1x8x32xf32> to vector<8x32xf32>
    %449 = vector.shape_cast %443 : vector<8x32xf32> to vector<1x8x32xf32>
    tpu.vector_store %arg14[%446, %c0_257, %c0_258], %449 {strides = array<i32>} : memref<8x8x32xf32, #tpu.memory_space<vmem>>, vector<1x8x32xf32>,
    %c6_i32_259 = arith.constant 6 : i32
    %450 = arith.index_cast %c6_i32_259 : i32 to index
    %c0_260 = arith.constant 0 : index
    %c0_261 = arith.constant 0 : index
    %451 = vector.load %arg13[%450, %c0_260, %c0_261] : memref<8x8x128xf32, #tpu.memory_space<vmem>>, vector<1x8x128xf32>
    %452 = vector.shape_cast %451 : vector<1x8x128xf32> to vector<8x128xf32>
    %c0_262 = arith.constant 0 : index
    %c0_263 = arith.constant 0 : index
    %453 = vector.load %arg15[%c0_262, %c0_263] : memref<8x32xf32, #tpu.memory_space<vmem>>, vector<8x32xf32>
    %cst_264 = arith.constant dense<0.000000e+00> : vector<8x128xf32>
    %454 = tpu.matmul %453, %275, %cst_264 {dimension_numbers = #tpu.dot_dimension_numbers<[1], [0], [0], [1], [0, 0, 1, 1], [], []>} : vector<8x32xf32>, vector<32x128xf32>, vector<8x128xf32> -> vector<8x128xf32>
    %455 = arith.addf %452, %454 : vector<8x128xf32>
    %456 = vector.extract_strided_slice %455 {offsets = [0, 0], sizes = [8, 96], strides = [1, 1]} : vector<8x128xf32> to vector<8x96xf32>
    %457 = arith.negf %456 : vector<8x96xf32>
    %458 = math.exp %457 : vector<8x96xf32>
    %cst_265 = arith.constant 1.000000e+00 : f32
    %459 = vector.broadcast %cst_265 : f32 to vector<8x96xf32>
    %460 = arith.addf %459, %458 : vector<8x96xf32>
    %461 = arith.divf %459, %460 : vector<8x96xf32>
    %462 = vector.extract_strided_slice %455 {offsets = [0, 96], sizes = [8, 32], strides = [1, 1]} : vector<8x128xf32> to vector<8x32xf32>
    %463 = math.tanh %462 : vector<8x32xf32>
    %464 = vector.extract_strided_slice %461 {offsets = [0, 32], sizes = [8, 32], strides = [1, 1]} : vector<8x96xf32> to vector<8x32xf32>
    %c0_266 = arith.constant 0 : index
    %c0_267 = arith.constant 0 : index
    %465 = vector.load %arg16[%c0_266, %c0_267] : memref<8x32xf32, #tpu.memory_space<vmem>>, vector<8x32xf32>
    %466 = arith.mulf %464, %465 : vector<8x32xf32>
    %467 = vector.extract_strided_slice %461 {offsets = [0, 0], sizes = [8, 32], strides = [1, 1]} : vector<8x96xf32> to vector<8x32xf32>
    %468 = arith.mulf %467, %463 : vector<8x32xf32>
    %469 = arith.addf %466, %468 : vector<8x32xf32>
    %470 = vector.extract_strided_slice %461 {offsets = [0, 64], sizes = [8, 32], strides = [1, 1]} : vector<8x96xf32> to vector<8x32xf32>
    %471 = math.tanh %469 : vector<8x32xf32>
    %472 = arith.mulf %470, %471 : vector<8x32xf32>
    %c0_268 = arith.constant 0 : index
    %c0_269 = arith.constant 0 : index
    %473 = vector.load %arg16[%c0_268, %c0_269] : memref<8x32xf32, #tpu.memory_space<vmem>>, vector<8x32xf32>
    tpu.vector_store %arg16[%c0_268, %c0_269], %469 {strides = array<i32>} : memref<8x32xf32, #tpu.memory_space<vmem>>, vector<8x32xf32>,
    %c0_270 = arith.constant 0 : index
    %c0_271 = arith.constant 0 : index
    %474 = vector.load %arg15[%c0_270, %c0_271] : memref<8x32xf32, #tpu.memory_space<vmem>>, vector<8x32xf32>
    tpu.vector_store %arg15[%c0_270, %c0_271], %472 {strides = array<i32>} : memref<8x32xf32, #tpu.memory_space<vmem>>, vector<8x32xf32>,
    %475 = arith.index_cast %c6_i32_259 : i32 to index
    %c0_272 = arith.constant 0 : index
    %c0_273 = arith.constant 0 : index
    %476 = vector.load %arg14[%475, %c0_272, %c0_273] : memref<8x8x32xf32, #tpu.memory_space<vmem>>, vector<1x8x32xf32>
    %477 = vector.shape_cast %476 : vector<1x8x32xf32> to vector<8x32xf32>
    %478 = vector.shape_cast %472 : vector<8x32xf32> to vector<1x8x32xf32>
    tpu.vector_store %arg14[%475, %c0_272, %c0_273], %478 {strides = array<i32>} : memref<8x8x32xf32, #tpu.memory_space<vmem>>, vector<1x8x32xf32>,
    %c7_i32_274 = arith.constant 7 : i32
    %479 = arith.index_cast %c7_i32_274 : i32 to index
    %c0_275 = arith.constant 0 : index
    %c0_276 = arith.constant 0 : index
    %480 = vector.load %arg13[%479, %c0_275, %c0_276] : memref<8x8x128xf32, #tpu.memory_space<vmem>>, vector<1x8x128xf32>
    %481 = vector.shape_cast %480 : vector<1x8x128xf32> to vector<8x128xf32>
    %c0_277 = arith.constant 0 : index
    %c0_278 = arith.constant 0 : index
    %482 = vector.load %arg15[%c0_277, %c0_278] : memref<8x32xf32, #tpu.memory_space<vmem>>, vector<8x32xf32>
    %cst_279 = arith.constant dense<0.000000e+00> : vector<8x128xf32>
    %483 = tpu.matmul %482, %275, %cst_279 {dimension_numbers = #tpu.dot_dimension_numbers<[1], [0], [0], [1], [0, 0, 1, 1], [], []>} : vector<8x32xf32>, vector<32x128xf32>, vector<8x128xf32> -> vector<8x128xf32>
    %484 = arith.addf %481, %483 : vector<8x128xf32>
    %485 = vector.extract_strided_slice %484 {offsets = [0, 0], sizes = [8, 96], strides = [1, 1]} : vector<8x128xf32> to vector<8x96xf32>
    %486 = arith.negf %485 : vector<8x96xf32>
    %487 = math.exp %486 : vector<8x96xf32>
    %cst_280 = arith.constant 1.000000e+00 : f32
    %488 = vector.broadcast %cst_280 : f32 to vector<8x96xf32>
    %489 = arith.addf %488, %487 : vector<8x96xf32>
    %490 = arith.divf %488, %489 : vector<8x96xf32>
    %491 = vector.extract_strided_slice %484 {offsets = [0, 96], sizes = [8, 32], strides = [1, 1]} : vector<8x128xf32> to vector<8x32xf32>
    %492 = math.tanh %491 : vector<8x32xf32>
    %493 = vector.extract_strided_slice %490 {offsets = [0, 32], sizes = [8, 32], strides = [1, 1]} : vector<8x96xf32> to vector<8x32xf32>
    %c0_281 = arith.constant 0 : index
    %c0_282 = arith.constant 0 : index
    %494 = vector.load %arg16[%c0_281, %c0_282] : memref<8x32xf32, #tpu.memory_space<vmem>>, vector<8x32xf32>
    %495 = arith.mulf %493, %494 : vector<8x32xf32>
    %496 = vector.extract_strided_slice %490 {offsets = [0, 0], sizes = [8, 32], strides = [1, 1]} : vector<8x96xf32> to vector<8x32xf32>
    %497 = arith.mulf %496, %492 : vector<8x32xf32>
    %498 = arith.addf %495, %497 : vector<8x32xf32>
    %499 = vector.extract_strided_slice %490 {offsets = [0, 64], sizes = [8, 32], strides = [1, 1]} : vector<8x96xf32> to vector<8x32xf32>
    %500 = math.tanh %498 : vector<8x32xf32>
    %501 = arith.mulf %499, %500 : vector<8x32xf32>
    %c0_283 = arith.constant 0 : index
    %c0_284 = arith.constant 0 : index
    %502 = vector.load %arg16[%c0_283, %c0_284] : memref<8x32xf32, #tpu.memory_space<vmem>>, vector<8x32xf32>
    tpu.vector_store %arg16[%c0_283, %c0_284], %498 {strides = array<i32>} : memref<8x32xf32, #tpu.memory_space<vmem>>, vector<8x32xf32>,
    %c0_285 = arith.constant 0 : index
    %c0_286 = arith.constant 0 : index
    %503 = vector.load %arg15[%c0_285, %c0_286] : memref<8x32xf32, #tpu.memory_space<vmem>>, vector<8x32xf32>
    tpu.vector_store %arg15[%c0_285, %c0_286], %501 {strides = array<i32>} : memref<8x32xf32, #tpu.memory_space<vmem>>, vector<8x32xf32>,
    %504 = arith.index_cast %c7_i32_274 : i32 to index
    %c0_287 = arith.constant 0 : index
    %c0_288 = arith.constant 0 : index
    %505 = vector.load %arg14[%504, %c0_287, %c0_288] : memref<8x8x32xf32, #tpu.memory_space<vmem>>, vector<1x8x32xf32>
    %506 = vector.shape_cast %505 : vector<1x8x32xf32> to vector<8x32xf32>
    %507 = vector.shape_cast %501 : vector<8x32xf32> to vector<1x8x32xf32>
    tpu.vector_store %arg14[%504, %c0_287, %c0_288], %507 {strides = array<i32>} : memref<8x8x32xf32, #tpu.memory_space<vmem>>, vector<1x8x32xf32>,
    %c8_i32_289 = arith.constant 8 : i32
    %c0_290 = arith.constant 0 : index
    %c0_291 = arith.constant 0 : index
    %508 = vector.load %arg15[%c0_290, %c0_291] : memref<8x32xf32, #tpu.memory_space<vmem>>, vector<8x32xf32>
    %c1_292 = arith.constant 1 : index
    %c0_293 = arith.constant 0 : index
    %c0_294 = arith.constant 0 : index
    %509 = vector.load %arg11[%c1_292, %c0_293, %c0_294] : memref<3x8x32xf32, #tpu.memory_space<vmem>>, vector<1x8x32xf32>
    %510 = vector.shape_cast %509 : vector<1x8x32xf32> to vector<8x32xf32>
    %511 = vector.shape_cast %508 : vector<8x32xf32> to vector<1x8x32xf32>
    tpu.vector_store %arg11[%c1_292, %c0_293, %c0_294], %511 {strides = array<i32>} : memref<3x8x32xf32, #tpu.memory_space<vmem>>, vector<1x8x32xf32>,
    %c0_295 = arith.constant 0 : index
    %c0_296 = arith.constant 0 : index
    %512 = vector.load %arg16[%c0_295, %c0_296] : memref<8x32xf32, #tpu.memory_space<vmem>>, vector<8x32xf32>
    %c1_297 = arith.constant 1 : index
    %c0_298 = arith.constant 0 : index
    %c0_299 = arith.constant 0 : index
    %513 = vector.load %arg12[%c1_297, %c0_298, %c0_299] : memref<3x8x32xf32, #tpu.memory_space<vmem>>, vector<1x8x32xf32>
    %514 = vector.shape_cast %513 : vector<1x8x32xf32> to vector<8x32xf32>
    %515 = vector.shape_cast %512 : vector<8x32xf32> to vector<1x8x32xf32>
    tpu.vector_store %arg12[%c1_297, %c0_298, %c0_299], %515 {strides = array<i32>} : memref<3x8x32xf32, #tpu.memory_space<vmem>>, vector<1x8x32xf32>,
    %c0_300 = arith.constant 0 : index
    %c0_301 = arith.constant 0 : index
    %c0_302 = arith.constant 0 : index
    %516 = vector.load %arg14[%c0_300, %c0_301, %c0_302] : memref<8x8x32xf32, #tpu.memory_space<vmem>>, vector<8x8x32xf32>
    %517 = vector.shape_cast %516 : vector<8x8x32xf32> to vector<64x32xf32>
    %c1_303 = arith.constant 1 : index
    %c0_304 = arith.constant 0 : index
    %c0_305 = arith.constant 0 : index
    %518 = vector.load %arg3[%c1_303, %c0_304, %c0_305] : memref<2x32x128xf32, #tpu.memory_space<vmem>>, vector<1x32x128xf32>
    %519 = vector.shape_cast %518 : vector<1x32x128xf32> to vector<32x128xf32>
    %cst_306 = arith.constant dense<0.000000e+00> : vector<64x128xf32>
    %520 = tpu.matmul %517, %519, %cst_306 {dimension_numbers = #tpu.dot_dimension_numbers<[1], [0], [0], [1], [0, 0, 1, 1], [], []>} : vector<64x32xf32>, vector<32x128xf32>, vector<64x128xf32> -> vector<64x128xf32>
    %c1_307 = arith.constant 1 : index
    %c0_308 = arith.constant 0 : index
    %c0_309 = arith.constant 0 : index
    %521 = vector.load %arg4[%c1_307, %c0_308, %c0_309] : memref<2x1x128xf32, #tpu.memory_space<vmem>>, vector<1x1x128xf32>
    %522 = vector.shape_cast %521 : vector<1x1x128xf32> to vector<1x128xf32>
    %523 = vector.broadcast %522 : vector<1x128xf32> to vector<64x128xf32>
    %524 = arith.addf %520, %523 : vector<64x128xf32>
    %525 = vector.shape_cast %524 : vector<64x128xf32> to vector<8x8x128xf32>
    %c0_310 = arith.constant 0 : index
    %c0_311 = arith.constant 0 : index
    %c0_312 = arith.constant 0 : index
    %526 = vector.load %arg13[%c0_310, %c0_311, %c0_312] : memref<8x8x128xf32, #tpu.memory_space<vmem>>, vector<8x8x128xf32>
    tpu.vector_store %arg13[%c0_310, %c0_311, %c0_312], %525 {strides = array<i32>} : memref<8x8x128xf32, #tpu.memory_space<vmem>>, vector<8x8x128xf32>,
    %c2 = arith.constant 2 : index
    %c0_313 = arith.constant 0 : index
    %c0_314 = arith.constant 0 : index
    %527 = vector.load %arg6[%c2, %c0_313, %c0_314] : memref<3x8x32xf32, #tpu.memory_space<vmem>>, vector<1x8x32xf32>
    %528 = vector.shape_cast %527 : vector<1x8x32xf32> to vector<8x32xf32>
    %c0_315 = arith.constant 0 : index
    %c0_316 = arith.constant 0 : index
    %529 = vector.load %arg15[%c0_315, %c0_316] : memref<8x32xf32, #tpu.memory_space<vmem>>, vector<8x32xf32>
    tpu.vector_store %arg15[%c0_315, %c0_316], %528 {strides = array<i32>} : memref<8x32xf32, #tpu.memory_space<vmem>>, vector<8x32xf32>,
    %c2_317 = arith.constant 2 : index
    %c0_318 = arith.constant 0 : index
    %c0_319 = arith.constant 0 : index
    %530 = vector.load %arg7[%c2_317, %c0_318, %c0_319] : memref<3x8x32xf32, #tpu.memory_space<vmem>>, vector<1x8x32xf32>
    %531 = vector.shape_cast %530 : vector<1x8x32xf32> to vector<8x32xf32>
    %c0_320 = arith.constant 0 : index
    %c0_321 = arith.constant 0 : index
    %532 = vector.load %arg16[%c0_320, %c0_321] : memref<8x32xf32, #tpu.memory_space<vmem>>, vector<8x32xf32>
    tpu.vector_store %arg16[%c0_320, %c0_321], %531 {strides = array<i32>} : memref<8x32xf32, #tpu.memory_space<vmem>>, vector<8x32xf32>,
    %c2_322 = arith.constant 2 : index
    %c0_323 = arith.constant 0 : index
    %c0_324 = arith.constant 0 : index
    %533 = vector.load %arg5[%c2_322, %c0_323, %c0_324] : memref<3x32x128xf32, #tpu.memory_space<vmem>>, vector<1x32x128xf32>
    %534 = vector.shape_cast %533 : vector<1x32x128xf32> to vector<32x128xf32>
    %c0_i32_325 = arith.constant 0 : i32
    %535 = arith.index_cast %c0_i32_325 : i32 to index
    %c0_326 = arith.constant 0 : index
    %c0_327 = arith.constant 0 : index
    %536 = vector.load %arg13[%535, %c0_326, %c0_327] : memref<8x8x128xf32, #tpu.memory_space<vmem>>, vector<1x8x128xf32>
    %537 = vector.shape_cast %536 : vector<1x8x128xf32> to vector<8x128xf32>
    %c0_328 = arith.constant 0 : index
    %c0_329 = arith.constant 0 : index
    %538 = vector.load %arg15[%c0_328, %c0_329] : memref<8x32xf32, #tpu.memory_space<vmem>>, vector<8x32xf32>
    %cst_330 = arith.constant dense<0.000000e+00> : vector<8x128xf32>
    %539 = tpu.matmul %538, %534, %cst_330 {dimension_numbers = #tpu.dot_dimension_numbers<[1], [0], [0], [1], [0, 0, 1, 1], [], []>} : vector<8x32xf32>, vector<32x128xf32>, vector<8x128xf32> -> vector<8x128xf32>
    %540 = arith.addf %537, %539 : vector<8x128xf32>
    %541 = vector.extract_strided_slice %540 {offsets = [0, 0], sizes = [8, 96], strides = [1, 1]} : vector<8x128xf32> to vector<8x96xf32>
    %542 = arith.negf %541 : vector<8x96xf32>
    %543 = math.exp %542 : vector<8x96xf32>
    %cst_331 = arith.constant 1.000000e+00 : f32
    %544 = vector.broadcast %cst_331 : f32 to vector<8x96xf32>
    %545 = arith.addf %544, %543 : vector<8x96xf32>
    %546 = arith.divf %544, %545 : vector<8x96xf32>
    %547 = vector.extract_strided_slice %540 {offsets = [0, 96], sizes = [8, 32], strides = [1, 1]} : vector<8x128xf32> to vector<8x32xf32>
    %548 = math.tanh %547 : vector<8x32xf32>
    %549 = vector.extract_strided_slice %546 {offsets = [0, 32], sizes = [8, 32], strides = [1, 1]} : vector<8x96xf32> to vector<8x32xf32>
    %c0_332 = arith.constant 0 : index
    %c0_333 = arith.constant 0 : index
    %550 = vector.load %arg16[%c0_332, %c0_333] : memref<8x32xf32, #tpu.memory_space<vmem>>, vector<8x32xf32>
    %551 = arith.mulf %549, %550 : vector<8x32xf32>
    %552 = vector.extract_strided_slice %546 {offsets = [0, 0], sizes = [8, 32], strides = [1, 1]} : vector<8x96xf32> to vector<8x32xf32>
    %553 = arith.mulf %552, %548 : vector<8x32xf32>
    %554 = arith.addf %551, %553 : vector<8x32xf32>
    %555 = vector.extract_strided_slice %546 {offsets = [0, 64], sizes = [8, 32], strides = [1, 1]} : vector<8x96xf32> to vector<8x32xf32>
    %556 = math.tanh %554 : vector<8x32xf32>
    %557 = arith.mulf %555, %556 : vector<8x32xf32>
    %c0_334 = arith.constant 0 : index
    %c0_335 = arith.constant 0 : index
    %558 = vector.load %arg16[%c0_334, %c0_335] : memref<8x32xf32, #tpu.memory_space<vmem>>, vector<8x32xf32>
    tpu.vector_store %arg16[%c0_334, %c0_335], %554 {strides = array<i32>} : memref<8x32xf32, #tpu.memory_space<vmem>>, vector<8x32xf32>,
    %c0_336 = arith.constant 0 : index
    %c0_337 = arith.constant 0 : index
    %559 = vector.load %arg15[%c0_336, %c0_337] : memref<8x32xf32, #tpu.memory_space<vmem>>, vector<8x32xf32>
    tpu.vector_store %arg15[%c0_336, %c0_337], %557 {strides = array<i32>} : memref<8x32xf32, #tpu.memory_space<vmem>>, vector<8x32xf32>,
    %560 = arith.index_cast %c0_i32_325 : i32 to index
    %c0_338 = arith.constant 0 : index
    %c0_339 = arith.constant 0 : index
    %561 = vector.load %arg14[%560, %c0_338, %c0_339] : memref<8x8x32xf32, #tpu.memory_space<vmem>>, vector<1x8x32xf32>
    %562 = vector.shape_cast %561 : vector<1x8x32xf32> to vector<8x32xf32>
    %563 = vector.shape_cast %557 : vector<8x32xf32> to vector<1x8x32xf32>
    tpu.vector_store %arg14[%560, %c0_338, %c0_339], %563 {strides = array<i32>} : memref<8x8x32xf32, #tpu.memory_space<vmem>>, vector<1x8x32xf32>,
    %c1_i32_340 = arith.constant 1 : i32
    %564 = arith.index_cast %c1_i32_340 : i32 to index
    %c0_341 = arith.constant 0 : index
    %c0_342 = arith.constant 0 : index
    %565 = vector.load %arg13[%564, %c0_341, %c0_342] : memref<8x8x128xf32, #tpu.memory_space<vmem>>, vector<1x8x128xf32>
    %566 = vector.shape_cast %565 : vector<1x8x128xf32> to vector<8x128xf32>
    %c0_343 = arith.constant 0 : index
    %c0_344 = arith.constant 0 : index
    %567 = vector.load %arg15[%c0_343, %c0_344] : memref<8x32xf32, #tpu.memory_space<vmem>>, vector<8x32xf32>
    %cst_345 = arith.constant dense<0.000000e+00> : vector<8x128xf32>
    %568 = tpu.matmul %567, %534, %cst_345 {dimension_numbers = #tpu.dot_dimension_numbers<[1], [0], [0], [1], [0, 0, 1, 1], [], []>} : vector<8x32xf32>, vector<32x128xf32>, vector<8x128xf32> -> vector<8x128xf32>
    %569 = arith.addf %566, %568 : vector<8x128xf32>
    %570 = vector.extract_strided_slice %569 {offsets = [0, 0], sizes = [8, 96], strides = [1, 1]} : vector<8x128xf32> to vector<8x96xf32>
    %571 = arith.negf %570 : vector<8x96xf32>
    %572 = math.exp %571 : vector<8x96xf32>
    %cst_346 = arith.constant 1.000000e+00 : f32
    %573 = vector.broadcast %cst_346 : f32 to vector<8x96xf32>
    %574 = arith.addf %573, %572 : vector<8x96xf32>
    %575 = arith.divf %573, %574 : vector<8x96xf32>
    %576 = vector.extract_strided_slice %569 {offsets = [0, 96], sizes = [8, 32], strides = [1, 1]} : vector<8x128xf32> to vector<8x32xf32>
    %577 = math.tanh %576 : vector<8x32xf32>
    %578 = vector.extract_strided_slice %575 {offsets = [0, 32], sizes = [8, 32], strides = [1, 1]} : vector<8x96xf32> to vector<8x32xf32>
    %c0_347 = arith.constant 0 : index
    %c0_348 = arith.constant 0 : index
    %579 = vector.load %arg16[%c0_347, %c0_348] : memref<8x32xf32, #tpu.memory_space<vmem>>, vector<8x32xf32>
    %580 = arith.mulf %578, %579 : vector<8x32xf32>
    %581 = vector.extract_strided_slice %575 {offsets = [0, 0], sizes = [8, 32], strides = [1, 1]} : vector<8x96xf32> to vector<8x32xf32>
    %582 = arith.mulf %581, %577 : vector<8x32xf32>
    %583 = arith.addf %580, %582 : vector<8x32xf32>
    %584 = vector.extract_strided_slice %575 {offsets = [0, 64], sizes = [8, 32], strides = [1, 1]} : vector<8x96xf32> to vector<8x32xf32>
    %585 = math.tanh %583 : vector<8x32xf32>
    %586 = arith.mulf %584, %585 : vector<8x32xf32>
    %c0_349 = arith.constant 0 : index
    %c0_350 = arith.constant 0 : index
    %587 = vector.load %arg16[%c0_349, %c0_350] : memref<8x32xf32, #tpu.memory_space<vmem>>, vector<8x32xf32>
    tpu.vector_store %arg16[%c0_349, %c0_350], %583 {strides = array<i32>} : memref<8x32xf32, #tpu.memory_space<vmem>>, vector<8x32xf32>,
    %c0_351 = arith.constant 0 : index
    %c0_352 = arith.constant 0 : index
    %588 = vector.load %arg15[%c0_351, %c0_352] : memref<8x32xf32, #tpu.memory_space<vmem>>, vector<8x32xf32>
    tpu.vector_store %arg15[%c0_351, %c0_352], %586 {strides = array<i32>} : memref<8x32xf32, #tpu.memory_space<vmem>>, vector<8x32xf32>,
    %589 = arith.index_cast %c1_i32_340 : i32 to index
    %c0_353 = arith.constant 0 : index
    %c0_354 = arith.constant 0 : index
    %590 = vector.load %arg14[%589, %c0_353, %c0_354] : memref<8x8x32xf32, #tpu.memory_space<vmem>>, vector<1x8x32xf32>
    %591 = vector.shape_cast %590 : vector<1x8x32xf32> to vector<8x32xf32>
    %592 = vector.shape_cast %586 : vector<8x32xf32> to vector<1x8x32xf32>
    tpu.vector_store %arg14[%589, %c0_353, %c0_354], %592 {strides = array<i32>} : memref<8x8x32xf32, #tpu.memory_space<vmem>>, vector<1x8x32xf32>,
    %c2_i32_355 = arith.constant 2 : i32
    %593 = arith.index_cast %c2_i32_355 : i32 to index
    %c0_356 = arith.constant 0 : index
    %c0_357 = arith.constant 0 : index
    %594 = vector.load %arg13[%593, %c0_356, %c0_357] : memref<8x8x128xf32, #tpu.memory_space<vmem>>, vector<1x8x128xf32>
    %595 = vector.shape_cast %594 : vector<1x8x128xf32> to vector<8x128xf32>
    %c0_358 = arith.constant 0 : index
    %c0_359 = arith.constant 0 : index
    %596 = vector.load %arg15[%c0_358, %c0_359] : memref<8x32xf32, #tpu.memory_space<vmem>>, vector<8x32xf32>
    %cst_360 = arith.constant dense<0.000000e+00> : vector<8x128xf32>
    %597 = tpu.matmul %596, %534, %cst_360 {dimension_numbers = #tpu.dot_dimension_numbers<[1], [0], [0], [1], [0, 0, 1, 1], [], []>} : vector<8x32xf32>, vector<32x128xf32>, vector<8x128xf32> -> vector<8x128xf32>
    %598 = arith.addf %595, %597 : vector<8x128xf32>
    %599 = vector.extract_strided_slice %598 {offsets = [0, 0], sizes = [8, 96], strides = [1, 1]} : vector<8x128xf32> to vector<8x96xf32>
    %600 = arith.negf %599 : vector<8x96xf32>
    %601 = math.exp %600 : vector<8x96xf32>
    %cst_361 = arith.constant 1.000000e+00 : f32
    %602 = vector.broadcast %cst_361 : f32 to vector<8x96xf32>
    %603 = arith.addf %602, %601 : vector<8x96xf32>
    %604 = arith.divf %602, %603 : vector<8x96xf32>
    %605 = vector.extract_strided_slice %598 {offsets = [0, 96], sizes = [8, 32], strides = [1, 1]} : vector<8x128xf32> to vector<8x32xf32>
    %606 = math.tanh %605 : vector<8x32xf32>
    %607 = vector.extract_strided_slice %604 {offsets = [0, 32], sizes = [8, 32], strides = [1, 1]} : vector<8x96xf32> to vector<8x32xf32>
    %c0_362 = arith.constant 0 : index
    %c0_363 = arith.constant 0 : index
    %608 = vector.load %arg16[%c0_362, %c0_363] : memref<8x32xf32, #tpu.memory_space<vmem>>, vector<8x32xf32>
    %609 = arith.mulf %607, %608 : vector<8x32xf32>
    %610 = vector.extract_strided_slice %604 {offsets = [0, 0], sizes = [8, 32], strides = [1, 1]} : vector<8x96xf32> to vector<8x32xf32>
    %611 = arith.mulf %610, %606 : vector<8x32xf32>
    %612 = arith.addf %609, %611 : vector<8x32xf32>
    %613 = vector.extract_strided_slice %604 {offsets = [0, 64], sizes = [8, 32], strides = [1, 1]} : vector<8x96xf32> to vector<8x32xf32>
    %614 = math.tanh %612 : vector<8x32xf32>
    %615 = arith.mulf %613, %614 : vector<8x32xf32>
    %c0_364 = arith.constant 0 : index
    %c0_365 = arith.constant 0 : index
    %616 = vector.load %arg16[%c0_364, %c0_365] : memref<8x32xf32, #tpu.memory_space<vmem>>, vector<8x32xf32>
    tpu.vector_store %arg16[%c0_364, %c0_365], %612 {strides = array<i32>} : memref<8x32xf32, #tpu.memory_space<vmem>>, vector<8x32xf32>,
    %c0_366 = arith.constant 0 : index
    %c0_367 = arith.constant 0 : index
    %617 = vector.load %arg15[%c0_366, %c0_367] : memref<8x32xf32, #tpu.memory_space<vmem>>, vector<8x32xf32>
    tpu.vector_store %arg15[%c0_366, %c0_367], %615 {strides = array<i32>} : memref<8x32xf32, #tpu.memory_space<vmem>>, vector<8x32xf32>,
    %618 = arith.index_cast %c2_i32_355 : i32 to index
    %c0_368 = arith.constant 0 : index
    %c0_369 = arith.constant 0 : index
    %619 = vector.load %arg14[%618, %c0_368, %c0_369] : memref<8x8x32xf32, #tpu.memory_space<vmem>>, vector<1x8x32xf32>
    %620 = vector.shape_cast %619 : vector<1x8x32xf32> to vector<8x32xf32>
    %621 = vector.shape_cast %615 : vector<8x32xf32> to vector<1x8x32xf32>
    tpu.vector_store %arg14[%618, %c0_368, %c0_369], %621 {strides = array<i32>} : memref<8x8x32xf32, #tpu.memory_space<vmem>>, vector<1x8x32xf32>,
    %c3_i32_370 = arith.constant 3 : i32
    %622 = arith.index_cast %c3_i32_370 : i32 to index
    %c0_371 = arith.constant 0 : index
    %c0_372 = arith.constant 0 : index
    %623 = vector.load %arg13[%622, %c0_371, %c0_372] : memref<8x8x128xf32, #tpu.memory_space<vmem>>, vector<1x8x128xf32>
    %624 = vector.shape_cast %623 : vector<1x8x128xf32> to vector<8x128xf32>
    %c0_373 = arith.constant 0 : index
    %c0_374 = arith.constant 0 : index
    %625 = vector.load %arg15[%c0_373, %c0_374] : memref<8x32xf32, #tpu.memory_space<vmem>>, vector<8x32xf32>
    %cst_375 = arith.constant dense<0.000000e+00> : vector<8x128xf32>
    %626 = tpu.matmul %625, %534, %cst_375 {dimension_numbers = #tpu.dot_dimension_numbers<[1], [0], [0], [1], [0, 0, 1, 1], [], []>} : vector<8x32xf32>, vector<32x128xf32>, vector<8x128xf32> -> vector<8x128xf32>
    %627 = arith.addf %624, %626 : vector<8x128xf32>
    %628 = vector.extract_strided_slice %627 {offsets = [0, 0], sizes = [8, 96], strides = [1, 1]} : vector<8x128xf32> to vector<8x96xf32>
    %629 = arith.negf %628 : vector<8x96xf32>
    %630 = math.exp %629 : vector<8x96xf32>
    %cst_376 = arith.constant 1.000000e+00 : f32
    %631 = vector.broadcast %cst_376 : f32 to vector<8x96xf32>
    %632 = arith.addf %631, %630 : vector<8x96xf32>
    %633 = arith.divf %631, %632 : vector<8x96xf32>
    %634 = vector.extract_strided_slice %627 {offsets = [0, 96], sizes = [8, 32], strides = [1, 1]} : vector<8x128xf32> to vector<8x32xf32>
    %635 = math.tanh %634 : vector<8x32xf32>
    %636 = vector.extract_strided_slice %633 {offsets = [0, 32], sizes = [8, 32], strides = [1, 1]} : vector<8x96xf32> to vector<8x32xf32>
    %c0_377 = arith.constant 0 : index
    %c0_378 = arith.constant 0 : index
    %637 = vector.load %arg16[%c0_377, %c0_378] : memref<8x32xf32, #tpu.memory_space<vmem>>, vector<8x32xf32>
    %638 = arith.mulf %636, %637 : vector<8x32xf32>
    %639 = vector.extract_strided_slice %633 {offsets = [0, 0], sizes = [8, 32], strides = [1, 1]} : vector<8x96xf32> to vector<8x32xf32>
    %640 = arith.mulf %639, %635 : vector<8x32xf32>
    %641 = arith.addf %638, %640 : vector<8x32xf32>
    %642 = vector.extract_strided_slice %633 {offsets = [0, 64], sizes = [8, 32], strides = [1, 1]} : vector<8x96xf32> to vector<8x32xf32>
    %643 = math.tanh %641 : vector<8x32xf32>
    %644 = arith.mulf %642, %643 : vector<8x32xf32>
    %c0_379 = arith.constant 0 : index
    %c0_380 = arith.constant 0 : index
    %645 = vector.load %arg16[%c0_379, %c0_380] : memref<8x32xf32, #tpu.memory_space<vmem>>, vector<8x32xf32>
    tpu.vector_store %arg16[%c0_379, %c0_380], %641 {strides = array<i32>} : memref<8x32xf32, #tpu.memory_space<vmem>>, vector<8x32xf32>,
    %c0_381 = arith.constant 0 : index
    %c0_382 = arith.constant 0 : index
    %646 = vector.load %arg15[%c0_381, %c0_382] : memref<8x32xf32, #tpu.memory_space<vmem>>, vector<8x32xf32>
    tpu.vector_store %arg15[%c0_381, %c0_382], %644 {strides = array<i32>} : memref<8x32xf32, #tpu.memory_space<vmem>>, vector<8x32xf32>,
    %647 = arith.index_cast %c3_i32_370 : i32 to index
    %c0_383 = arith.constant 0 : index
    %c0_384 = arith.constant 0 : index
    %648 = vector.load %arg14[%647, %c0_383, %c0_384] : memref<8x8x32xf32, #tpu.memory_space<vmem>>, vector<1x8x32xf32>
    %649 = vector.shape_cast %648 : vector<1x8x32xf32> to vector<8x32xf32>
    %650 = vector.shape_cast %644 : vector<8x32xf32> to vector<1x8x32xf32>
    tpu.vector_store %arg14[%647, %c0_383, %c0_384], %650 {strides = array<i32>} : memref<8x8x32xf32, #tpu.memory_space<vmem>>, vector<1x8x32xf32>,
    %c4_i32_385 = arith.constant 4 : i32
    %651 = arith.index_cast %c4_i32_385 : i32 to index
    %c0_386 = arith.constant 0 : index
    %c0_387 = arith.constant 0 : index
    %652 = vector.load %arg13[%651, %c0_386, %c0_387] : memref<8x8x128xf32, #tpu.memory_space<vmem>>, vector<1x8x128xf32>
    %653 = vector.shape_cast %652 : vector<1x8x128xf32> to vector<8x128xf32>
    %c0_388 = arith.constant 0 : index
    %c0_389 = arith.constant 0 : index
    %654 = vector.load %arg15[%c0_388, %c0_389] : memref<8x32xf32, #tpu.memory_space<vmem>>, vector<8x32xf32>
    %cst_390 = arith.constant dense<0.000000e+00> : vector<8x128xf32>
    %655 = tpu.matmul %654, %534, %cst_390 {dimension_numbers = #tpu.dot_dimension_numbers<[1], [0], [0], [1], [0, 0, 1, 1], [], []>} : vector<8x32xf32>, vector<32x128xf32>, vector<8x128xf32> -> vector<8x128xf32>
    %656 = arith.addf %653, %655 : vector<8x128xf32>
    %657 = vector.extract_strided_slice %656 {offsets = [0, 0], sizes = [8, 96], strides = [1, 1]} : vector<8x128xf32> to vector<8x96xf32>
    %658 = arith.negf %657 : vector<8x96xf32>
    %659 = math.exp %658 : vector<8x96xf32>
    %cst_391 = arith.constant 1.000000e+00 : f32
    %660 = vector.broadcast %cst_391 : f32 to vector<8x96xf32>
    %661 = arith.addf %660, %659 : vector<8x96xf32>
    %662 = arith.divf %660, %661 : vector<8x96xf32>
    %663 = vector.extract_strided_slice %656 {offsets = [0, 96], sizes = [8, 32], strides = [1, 1]} : vector<8x128xf32> to vector<8x32xf32>
    %664 = math.tanh %663 : vector<8x32xf32>
    %665 = vector.extract_strided_slice %662 {offsets = [0, 32], sizes = [8, 32], strides = [1, 1]} : vector<8x96xf32> to vector<8x32xf32>
    %c0_392 = arith.constant 0 : index
    %c0_393 = arith.constant 0 : index
    %666 = vector.load %arg16[%c0_392, %c0_393] : memref<8x32xf32, #tpu.memory_space<vmem>>, vector<8x32xf32>
    %667 = arith.mulf %665, %666 : vector<8x32xf32>
    %668 = vector.extract_strided_slice %662 {offsets = [0, 0], sizes = [8, 32], strides = [1, 1]} : vector<8x96xf32> to vector<8x32xf32>
    %669 = arith.mulf %668, %664 : vector<8x32xf32>
    %670 = arith.addf %667, %669 : vector<8x32xf32>
    %671 = vector.extract_strided_slice %662 {offsets = [0, 64], sizes = [8, 32], strides = [1, 1]} : vector<8x96xf32> to vector<8x32xf32>
    %672 = math.tanh %670 : vector<8x32xf32>
    %673 = arith.mulf %671, %672 : vector<8x32xf32>
    %c0_394 = arith.constant 0 : index
    %c0_395 = arith.constant 0 : index
    %674 = vector.load %arg16[%c0_394, %c0_395] : memref<8x32xf32, #tpu.memory_space<vmem>>, vector<8x32xf32>
    tpu.vector_store %arg16[%c0_394, %c0_395], %670 {strides = array<i32>} : memref<8x32xf32, #tpu.memory_space<vmem>>, vector<8x32xf32>,
    %c0_396 = arith.constant 0 : index
    %c0_397 = arith.constant 0 : index
    %675 = vector.load %arg15[%c0_396, %c0_397] : memref<8x32xf32, #tpu.memory_space<vmem>>, vector<8x32xf32>
    tpu.vector_store %arg15[%c0_396, %c0_397], %673 {strides = array<i32>} : memref<8x32xf32, #tpu.memory_space<vmem>>, vector<8x32xf32>,
    %676 = arith.index_cast %c4_i32_385 : i32 to index
    %c0_398 = arith.constant 0 : index
    %c0_399 = arith.constant 0 : index
    %677 = vector.load %arg14[%676, %c0_398, %c0_399] : memref<8x8x32xf32, #tpu.memory_space<vmem>>, vector<1x8x32xf32>
    %678 = vector.shape_cast %677 : vector<1x8x32xf32> to vector<8x32xf32>
    %679 = vector.shape_cast %673 : vector<8x32xf32> to vector<1x8x32xf32>
    tpu.vector_store %arg14[%676, %c0_398, %c0_399], %679 {strides = array<i32>} : memref<8x8x32xf32, #tpu.memory_space<vmem>>, vector<1x8x32xf32>,
    %c5_i32_400 = arith.constant 5 : i32
    %680 = arith.index_cast %c5_i32_400 : i32 to index
    %c0_401 = arith.constant 0 : index
    %c0_402 = arith.constant 0 : index
    %681 = vector.load %arg13[%680, %c0_401, %c0_402] : memref<8x8x128xf32, #tpu.memory_space<vmem>>, vector<1x8x128xf32>
    %682 = vector.shape_cast %681 : vector<1x8x128xf32> to vector<8x128xf32>
    %c0_403 = arith.constant 0 : index
    %c0_404 = arith.constant 0 : index
    %683 = vector.load %arg15[%c0_403, %c0_404] : memref<8x32xf32, #tpu.memory_space<vmem>>, vector<8x32xf32>
    %cst_405 = arith.constant dense<0.000000e+00> : vector<8x128xf32>
    %684 = tpu.matmul %683, %534, %cst_405 {dimension_numbers = #tpu.dot_dimension_numbers<[1], [0], [0], [1], [0, 0, 1, 1], [], []>} : vector<8x32xf32>, vector<32x128xf32>, vector<8x128xf32> -> vector<8x128xf32>
    %685 = arith.addf %682, %684 : vector<8x128xf32>
    %686 = vector.extract_strided_slice %685 {offsets = [0, 0], sizes = [8, 96], strides = [1, 1]} : vector<8x128xf32> to vector<8x96xf32>
    %687 = arith.negf %686 : vector<8x96xf32>
    %688 = math.exp %687 : vector<8x96xf32>
    %cst_406 = arith.constant 1.000000e+00 : f32
    %689 = vector.broadcast %cst_406 : f32 to vector<8x96xf32>
    %690 = arith.addf %689, %688 : vector<8x96xf32>
    %691 = arith.divf %689, %690 : vector<8x96xf32>
    %692 = vector.extract_strided_slice %685 {offsets = [0, 96], sizes = [8, 32], strides = [1, 1]} : vector<8x128xf32> to vector<8x32xf32>
    %693 = math.tanh %692 : vector<8x32xf32>
    %694 = vector.extract_strided_slice %691 {offsets = [0, 32], sizes = [8, 32], strides = [1, 1]} : vector<8x96xf32> to vector<8x32xf32>
    %c0_407 = arith.constant 0 : index
    %c0_408 = arith.constant 0 : index
    %695 = vector.load %arg16[%c0_407, %c0_408] : memref<8x32xf32, #tpu.memory_space<vmem>>, vector<8x32xf32>
    %696 = arith.mulf %694, %695 : vector<8x32xf32>
    %697 = vector.extract_strided_slice %691 {offsets = [0, 0], sizes = [8, 32], strides = [1, 1]} : vector<8x96xf32> to vector<8x32xf32>
    %698 = arith.mulf %697, %693 : vector<8x32xf32>
    %699 = arith.addf %696, %698 : vector<8x32xf32>
    %700 = vector.extract_strided_slice %691 {offsets = [0, 64], sizes = [8, 32], strides = [1, 1]} : vector<8x96xf32> to vector<8x32xf32>
    %701 = math.tanh %699 : vector<8x32xf32>
    %702 = arith.mulf %700, %701 : vector<8x32xf32>
    %c0_409 = arith.constant 0 : index
    %c0_410 = arith.constant 0 : index
    %703 = vector.load %arg16[%c0_409, %c0_410] : memref<8x32xf32, #tpu.memory_space<vmem>>, vector<8x32xf32>
    tpu.vector_store %arg16[%c0_409, %c0_410], %699 {strides = array<i32>} : memref<8x32xf32, #tpu.memory_space<vmem>>, vector<8x32xf32>,
    %c0_411 = arith.constant 0 : index
    %c0_412 = arith.constant 0 : index
    %704 = vector.load %arg15[%c0_411, %c0_412] : memref<8x32xf32, #tpu.memory_space<vmem>>, vector<8x32xf32>
    tpu.vector_store %arg15[%c0_411, %c0_412], %702 {strides = array<i32>} : memref<8x32xf32, #tpu.memory_space<vmem>>, vector<8x32xf32>,
    %705 = arith.index_cast %c5_i32_400 : i32 to index
    %c0_413 = arith.constant 0 : index
    %c0_414 = arith.constant 0 : index
    %706 = vector.load %arg14[%705, %c0_413, %c0_414] : memref<8x8x32xf32, #tpu.memory_space<vmem>>, vector<1x8x32xf32>
    %707 = vector.shape_cast %706 : vector<1x8x32xf32> to vector<8x32xf32>
    %708 = vector.shape_cast %702 : vector<8x32xf32> to vector<1x8x32xf32>
    tpu.vector_store %arg14[%705, %c0_413, %c0_414], %708 {strides = array<i32>} : memref<8x8x32xf32, #tpu.memory_space<vmem>>, vector<1x8x32xf32>,
    %c6_i32_415 = arith.constant 6 : i32
    %709 = arith.index_cast %c6_i32_415 : i32 to index
    %c0_416 = arith.constant 0 : index
    %c0_417 = arith.constant 0 : index
    %710 = vector.load %arg13[%709, %c0_416, %c0_417] : memref<8x8x128xf32, #tpu.memory_space<vmem>>, vector<1x8x128xf32>
    %711 = vector.shape_cast %710 : vector<1x8x128xf32> to vector<8x128xf32>
    %c0_418 = arith.constant 0 : index
    %c0_419 = arith.constant 0 : index
    %712 = vector.load %arg15[%c0_418, %c0_419] : memref<8x32xf32, #tpu.memory_space<vmem>>, vector<8x32xf32>
    %cst_420 = arith.constant dense<0.000000e+00> : vector<8x128xf32>
    %713 = tpu.matmul %712, %534, %cst_420 {dimension_numbers = #tpu.dot_dimension_numbers<[1], [0], [0], [1], [0, 0, 1, 1], [], []>} : vector<8x32xf32>, vector<32x128xf32>, vector<8x128xf32> -> vector<8x128xf32>
    %714 = arith.addf %711, %713 : vector<8x128xf32>
    %715 = vector.extract_strided_slice %714 {offsets = [0, 0], sizes = [8, 96], strides = [1, 1]} : vector<8x128xf32> to vector<8x96xf32>
    %716 = arith.negf %715 : vector<8x96xf32>
    %717 = math.exp %716 : vector<8x96xf32>
    %cst_421 = arith.constant 1.000000e+00 : f32
    %718 = vector.broadcast %cst_421 : f32 to vector<8x96xf32>
    %719 = arith.addf %718, %717 : vector<8x96xf32>
    %720 = arith.divf %718, %719 : vector<8x96xf32>
    %721 = vector.extract_strided_slice %714 {offsets = [0, 96], sizes = [8, 32], strides = [1, 1]} : vector<8x128xf32> to vector<8x32xf32>
    %722 = math.tanh %721 : vector<8x32xf32>
    %723 = vector.extract_strided_slice %720 {offsets = [0, 32], sizes = [8, 32], strides = [1, 1]} : vector<8x96xf32> to vector<8x32xf32>
    %c0_422 = arith.constant 0 : index
    %c0_423 = arith.constant 0 : index
    %724 = vector.load %arg16[%c0_422, %c0_423] : memref<8x32xf32, #tpu.memory_space<vmem>>, vector<8x32xf32>
    %725 = arith.mulf %723, %724 : vector<8x32xf32>
    %726 = vector.extract_strided_slice %720 {offsets = [0, 0], sizes = [8, 32], strides = [1, 1]} : vector<8x96xf32> to vector<8x32xf32>
    %727 = arith.mulf %726, %722 : vector<8x32xf32>
    %728 = arith.addf %725, %727 : vector<8x32xf32>
    %729 = vector.extract_strided_slice %720 {offsets = [0, 64], sizes = [8, 32], strides = [1, 1]} : vector<8x96xf32> to vector<8x32xf32>
    %730 = math.tanh %728 : vector<8x32xf32>
    %731 = arith.mulf %729, %730 : vector<8x32xf32>
    %c0_424 = arith.constant 0 : index
    %c0_425 = arith.constant 0 : index
    %732 = vector.load %arg16[%c0_424, %c0_425] : memref<8x32xf32, #tpu.memory_space<vmem>>, vector<8x32xf32>
    tpu.vector_store %arg16[%c0_424, %c0_425], %728 {strides = array<i32>} : memref<8x32xf32, #tpu.memory_space<vmem>>, vector<8x32xf32>,
    %c0_426 = arith.constant 0 : index
    %c0_427 = arith.constant 0 : index
    %733 = vector.load %arg15[%c0_426, %c0_427] : memref<8x32xf32, #tpu.memory_space<vmem>>, vector<8x32xf32>
    tpu.vector_store %arg15[%c0_426, %c0_427], %731 {strides = array<i32>} : memref<8x32xf32, #tpu.memory_space<vmem>>, vector<8x32xf32>,
    %734 = arith.index_cast %c6_i32_415 : i32 to index
    %c0_428 = arith.constant 0 : index
    %c0_429 = arith.constant 0 : index
    %735 = vector.load %arg14[%734, %c0_428, %c0_429] : memref<8x8x32xf32, #tpu.memory_space<vmem>>, vector<1x8x32xf32>
    %736 = vector.shape_cast %735 : vector<1x8x32xf32> to vector<8x32xf32>
    %737 = vector.shape_cast %731 : vector<8x32xf32> to vector<1x8x32xf32>
    tpu.vector_store %arg14[%734, %c0_428, %c0_429], %737 {strides = array<i32>} : memref<8x8x32xf32, #tpu.memory_space<vmem>>, vector<1x8x32xf32>,
    %c7_i32_430 = arith.constant 7 : i32
    %738 = arith.index_cast %c7_i32_430 : i32 to index
    %c0_431 = arith.constant 0 : index
    %c0_432 = arith.constant 0 : index
    %739 = vector.load %arg13[%738, %c0_431, %c0_432] : memref<8x8x128xf32, #tpu.memory_space<vmem>>, vector<1x8x128xf32>
    %740 = vector.shape_cast %739 : vector<1x8x128xf32> to vector<8x128xf32>
    %c0_433 = arith.constant 0 : index
    %c0_434 = arith.constant 0 : index
    %741 = vector.load %arg15[%c0_433, %c0_434] : memref<8x32xf32, #tpu.memory_space<vmem>>, vector<8x32xf32>
    %cst_435 = arith.constant dense<0.000000e+00> : vector<8x128xf32>
    %742 = tpu.matmul %741, %534, %cst_435 {dimension_numbers = #tpu.dot_dimension_numbers<[1], [0], [0], [1], [0, 0, 1, 1], [], []>} : vector<8x32xf32>, vector<32x128xf32>, vector<8x128xf32> -> vector<8x128xf32>
    %743 = arith.addf %740, %742 : vector<8x128xf32>
    %744 = vector.extract_strided_slice %743 {offsets = [0, 0], sizes = [8, 96], strides = [1, 1]} : vector<8x128xf32> to vector<8x96xf32>
    %745 = arith.negf %744 : vector<8x96xf32>
    %746 = math.exp %745 : vector<8x96xf32>
    %cst_436 = arith.constant 1.000000e+00 : f32
    %747 = vector.broadcast %cst_436 : f32 to vector<8x96xf32>
    %748 = arith.addf %747, %746 : vector<8x96xf32>
    %749 = arith.divf %747, %748 : vector<8x96xf32>
    %750 = vector.extract_strided_slice %743 {offsets = [0, 96], sizes = [8, 32], strides = [1, 1]} : vector<8x128xf32> to vector<8x32xf32>
    %751 = math.tanh %750 : vector<8x32xf32>
    %752 = vector.extract_strided_slice %749 {offsets = [0, 32], sizes = [8, 32], strides = [1, 1]} : vector<8x96xf32> to vector<8x32xf32>
    %c0_437 = arith.constant 0 : index
    %c0_438 = arith.constant 0 : index
    %753 = vector.load %arg16[%c0_437, %c0_438] : memref<8x32xf32, #tpu.memory_space<vmem>>, vector<8x32xf32>
    %754 = arith.mulf %752, %753 : vector<8x32xf32>
    %755 = vector.extract_strided_slice %749 {offsets = [0, 0], sizes = [8, 32], strides = [1, 1]} : vector<8x96xf32> to vector<8x32xf32>
    %756 = arith.mulf %755, %751 : vector<8x32xf32>
    %757 = arith.addf %754, %756 : vector<8x32xf32>
    %758 = vector.extract_strided_slice %749 {offsets = [0, 64], sizes = [8, 32], strides = [1, 1]} : vector<8x96xf32> to vector<8x32xf32>
    %759 = math.tanh %757 : vector<8x32xf32>
    %760 = arith.mulf %758, %759 : vector<8x32xf32>
    %c0_439 = arith.constant 0 : index
    %c0_440 = arith.constant 0 : index
    %761 = vector.load %arg16[%c0_439, %c0_440] : memref<8x32xf32, #tpu.memory_space<vmem>>, vector<8x32xf32>
    tpu.vector_store %arg16[%c0_439, %c0_440], %757 {strides = array<i32>} : memref<8x32xf32, #tpu.memory_space<vmem>>, vector<8x32xf32>,
    %c0_441 = arith.constant 0 : index
    %c0_442 = arith.constant 0 : index
    %762 = vector.load %arg15[%c0_441, %c0_442] : memref<8x32xf32, #tpu.memory_space<vmem>>, vector<8x32xf32>
    tpu.vector_store %arg15[%c0_441, %c0_442], %760 {strides = array<i32>} : memref<8x32xf32, #tpu.memory_space<vmem>>, vector<8x32xf32>,
    %763 = arith.index_cast %c7_i32_430 : i32 to index
    %c0_443 = arith.constant 0 : index
    %c0_444 = arith.constant 0 : index
    %764 = vector.load %arg14[%763, %c0_443, %c0_444] : memref<8x8x32xf32, #tpu.memory_space<vmem>>, vector<1x8x32xf32>
    %765 = vector.shape_cast %764 : vector<1x8x32xf32> to vector<8x32xf32>
    %766 = vector.shape_cast %760 : vector<8x32xf32> to vector<1x8x32xf32>
    tpu.vector_store %arg14[%763, %c0_443, %c0_444], %766 {strides = array<i32>} : memref<8x8x32xf32, #tpu.memory_space<vmem>>, vector<1x8x32xf32>,
    %c8_i32_445 = arith.constant 8 : i32
    %c0_446 = arith.constant 0 : index
    %c0_447 = arith.constant 0 : index
    %767 = vector.load %arg15[%c0_446, %c0_447] : memref<8x32xf32, #tpu.memory_space<vmem>>, vector<8x32xf32>
    %c2_448 = arith.constant 2 : index
    %c0_449 = arith.constant 0 : index
    %c0_450 = arith.constant 0 : index
    %768 = vector.load %arg11[%c2_448, %c0_449, %c0_450] : memref<3x8x32xf32, #tpu.memory_space<vmem>>, vector<1x8x32xf32>
    %769 = vector.shape_cast %768 : vector<1x8x32xf32> to vector<8x32xf32>
    %770 = vector.shape_cast %767 : vector<8x32xf32> to vector<1x8x32xf32>
    tpu.vector_store %arg11[%c2_448, %c0_449, %c0_450], %770 {strides = array<i32>} : memref<3x8x32xf32, #tpu.memory_space<vmem>>, vector<1x8x32xf32>,
    %c0_451 = arith.constant 0 : index
    %c0_452 = arith.constant 0 : index
    %771 = vector.load %arg16[%c0_451, %c0_452] : memref<8x32xf32, #tpu.memory_space<vmem>>, vector<8x32xf32>
    %c2_453 = arith.constant 2 : index
    %c0_454 = arith.constant 0 : index
    %c0_455 = arith.constant 0 : index
    %772 = vector.load %arg12[%c2_453, %c0_454, %c0_455] : memref<3x8x32xf32, #tpu.memory_space<vmem>>, vector<1x8x32xf32>
    %773 = vector.shape_cast %772 : vector<1x8x32xf32> to vector<8x32xf32>
    %774 = vector.shape_cast %771 : vector<8x32xf32> to vector<1x8x32xf32>
    tpu.vector_store %arg12[%c2_453, %c0_454, %c0_455], %774 {strides = array<i32>} : memref<3x8x32xf32, #tpu.memory_space<vmem>>, vector<1x8x32xf32>,
    %c0_456 = arith.constant 0 : index
    %c0_457 = arith.constant 0 : index
    %c0_458 = arith.constant 0 : index
    %775 = vector.load %arg14[%c0_456, %c0_457, %c0_458] : memref<8x8x32xf32, #tpu.memory_space<vmem>>, vector<8x8x32xf32>
    %776 = vector.shape_cast %775 : vector<8x8x32xf32> to vector<64x32xf32>
    %c0_459 = arith.constant 0 : index
    %c0_460 = arith.constant 0 : index
    %777 = vector.load %arg8[%c0_459, %c0_460] : memref<32x16xf32, #tpu.memory_space<vmem>>, vector<32x16xf32>
    %cst_461 = arith.constant dense<0.000000e+00> : vector<64x16xf32>
    %778 = tpu.matmul %776, %777, %cst_461 {dimension_numbers = #tpu.dot_dimension_numbers<[1], [0], [0], [1], [0, 0, 1, 1], [], []>} : vector<64x32xf32>, vector<32x16xf32>, vector<64x16xf32> -> vector<64x16xf32>
    %c0_462 = arith.constant 0 : index
    %c0_463 = arith.constant 0 : index
    %779 = vector.load %arg9[%c0_462, %c0_463] : memref<1x16xf32, #tpu.memory_space<vmem>>, vector<1x16xf32>
    %780 = vector.broadcast %779 : vector<1x16xf32> to vector<64x16xf32>
    %781 = arith.addf %778, %780 : vector<64x16xf32>
    %c0_464 = arith.constant 0 : index
    %c0_465 = arith.constant 0 : index
    %782 = vector.load %arg10[%c0_464, %c0_465] : memref<64x16xf32, #tpu.memory_space<vmem>>, vector<64x16xf32>
    tpu.vector_store %arg10[%c0_464, %c0_465], %781 {strides = array<i32>} : memref<64x16xf32, #tpu.memory_space<vmem>>, vector<64x16xf32>,
    return
  }
}

</mosaic_0001>

<bundles_post_ra>
// kernel: lstm_model_forward.1
= control target key start
LH: loop header
LB: loop body
LE: loop exit
PB: predicated region body
PF: predicated region fallthrough
CT: control target
= control target key end

     0   :  { %vm55_vm0 = vcmask 130048   ;;  %vm194_vm1 = vcmask 261120   ;;  %v4503_v11 = vmov 0.0|0.0   ;;  %vm4504_vm2 = vmmov 0   ;;  %s4506_s14 = smov 32   ;;  %s5296_s1 = inlined_call_operand.vmem [shape: f32[16,128], index: 1, kind: input, shape index: {}]   ;;  %s5297_s0 = inlined_call_operand.vmem [shape: f32[8,8,16], index: 0, kind: input, shape index: {}]   ;;  %s5298_s5 = inlined_call_operand.vmem [shape: f32[3,32,128], index: 5, kind: input, shape index: {}]   ;;  %s5299_s6 = inlined_call_operand.vmem [shape: f32[3,8,32], index: 6, kind: input, shape index: {}]   ;;  %s5300_s7 = inlined_call_operand.vmem [shape: f32[3,8,32], index: 7, kind: input, shape index: {}]   ;;  %s5301_s2 = inlined_call_operand.vmem [shape: f32[1,128], index: 2, kind: input, shape index: {}]   ;;  %s5302_s3 = inlined_call_operand.vmem [shape: f32[2,32,128], index: 3, kind: input, shape index: {}]   ;;  %s5303_s12 = inlined_call_operand.vmem [shape: f32[3,8,32], index: 12, kind: output, shape index: {2}]   ;;  %s5304_s11 = inlined_call_operand.vmem [shape: f32[3,8,32], index: 11, kind: output, shape index: {1}]   ;;  %s5305_s4 = inlined_call_operand.vmem [shape: f32[2,1,128], index: 4, kind: input, shape index: {}]   ;;  %s5306_s8 = inlined_call_operand.vmem [shape: f32[32,16], index: 8, kind: input, shape index: {}]   ;;  %s5307_s9 = inlined_call_operand.vmem [shape: f32[1,16], index: 9, kind: input, shape index: {}]   ;;  %s5308_s10 = inlined_call_operand.vmem [shape: f32[64,16], index: 10, kind: output, shape index: {0}]  }
   0x1   :  { %v46_v0 = vld [vmem:[%s5296_s1] sm:$0xff]  ;;  %v47_v1 = vld [vmem:[%s5296_s1 + $0x8] sm:$0xff]  ;;  %v44_v12 = vld [vmem:[%s5297_s0 + $0x30] sm:$0xff]  ;;  %v4505_v17 = vmov 0.0   ;;  %s4508_s1 = smov 64  }
   0x2   :  { %v42_v2 = vld [vmem:[%s5297_s0 + $0x20] sm:$0xff]  ;;  %v4131_v3 = vpack.c.bf16 %v47_v1, %v46_v0  ;;  %v199_v5 = vld [vmem:[%s5298_s5 + $0x8] sm:$0xff]  ;;  %v200_v13 = vld [vmem:[%s5298_s5 + $0x10] sm:$0xff] }
   0x3   :  { %3801 = vmatprep.mubr.msk.f32.mxu1 %vm55_vm0, %v42_v2  ;;  %v198_v4 = vld [vmem:[%s5298_s5] sm:$0xff]  ;;  %v43_v7 = vld [vmem:[%s5297_s0 + $0x28] sm:$0xff]  ;;  %v201_v14 = vld [vmem:[%s5298_s5 + $0x18] sm:$0xff] }
   0x4   :  { %v38_v6 = vld [vmem:[%s5297_s0] sm:$0xff]  ;;  %4303 = vmatprep.subr.bf16.mxu1 %v4131_v3  ;;  %4132 = vmatprep.subr.bf16.mxu0 %v4131_v3  ;;  %v4596_v8 = vpack.c.bf16 %v199_v5, %v198_v4  ;;  %v39_v9 = vld [vmem:[%s5297_s0 + $0x8] sm:$0xff]  ;;  %v45_v15 = vld [vmem:[%s5297_s0 + $0x38] sm:$0xff]  ;;  %v4624_v16 = vpack.c.bf16 %v201_v14, %v200_v13 }
   0x5   :  { %4304 = vmatpush3.bf16.msra.mxu1 %v4131_v3  ;;  %4134 = vmatpush3.bf16.msra.mxu0 %v4131_v3  ;;  %v193_v10 = vld [vmem:[%s5299_s6] sm:$0xff]  ;;  %v40_v2 = vld [vmem:[%s5297_s0 + $0x10] sm:$0xff]  ;;  %v41_v3 = vld [vmem:[%s5297_s0 + $0x18] sm:$0xff] }
   0x6   :  { %4135 = vmatprep.subr.bf16.mxu1 %v4503_v11  ;;  %3795 = vmatprep.mubr.msk.f32.mxu0 %vm55_vm0, %v38_v6  ;;  %195 = vst.msk [vmem:[#allocation4] sm:$0xff] %vm194_vm1, %v193_v10  ;;  %v196_v19 = vld [vmem:[%s5300_s7] sm:$0xff] }
   0x7   :  { %4147 = vmatprep.subr.bf16.mxu0 %v4503_v11  ;;  %197 = vst.msk [vmem:[#allocation5] sm:$0xff] %vm194_vm1, %v196_v19  ;;  %v4654_v24 = vld [vmem:[%s5301_s2] ss:$0 sm:$0xff]  ;;  %s4507_s2 = smov 96  }
   0x8   :  { %3802 = vmatmul.mubr.msk.f32.vlgmr.msra.gmra.mrb[0].mxu1 %vm55_vm0, %v43_v7  ;;  %3796 = vmatmul.mubr.msk.f32.vlgmr.msra.gmra.mrb[0].mxu0 %vm55_vm0, %v39_v9 }
   0x9   :  { %4137 = vmatpush3.bf16.msra.mxu1 %v4596_v8  ;;  %3804 = vmatprep.mubr.msk.f32.mxu1 %vm55_vm0, %v44_v12 }
   0xa   :  { %4138 = vmatprep.subr.bf16.mxu1 %v4503_v11  ;;  %4149 = vmatpush3.bf16.msra.mxu0 %v4596_v8 }
   0xb   :  { %4150 = vmatprep.subr.bf16.mxu0 %v4503_v11  ;;  %3798 = vmatprep.mubr.msk.f32.mxu0 %vm55_vm0, %v40_v2 }
   0xc   :  { %3805 = vmatmul.mubr.msk.f32.gmra.mrb[2].mxu1 %vm55_vm0, %v45_v15  ;;  %3799 = vmatmul.mubr.msk.f32.gmra.mrb[2].mxu0 %vm55_vm0, %v41_v3 }
   0xd   :  { %4140 = vmatpush3.bf16.msra.mxu1 %v4624_v16  ;;  %3815 = vmatprep.mubr.msk.f32.mxu1 %vm4504_vm2, %v4505_v17  ;;  %v203_v18 = vld [vmem:[#allocation4] sm:$0xff] }
   0xe   :  { %4141 = vmatprep.subr.bf16.mxu1 %v4503_v11  ;;  %4152 = vmatpush3.bf16.msra.mxu0 %v4624_v16  ;;  %v285_v32 = vld [vmem:[#allocation5] sm:$0xff] }
   0xf   :  { %4159 = vmatprep.subr.bf16.mxu0 %v4503_v11  ;;  %3837 = vmatprep.mubr.msk.f32.mxu0 %vm4504_vm2, %v4505_v17 }
  0x10   :  { %3816 = vmatmul.mubr.msk.f32.vlgmr.msra.gmra.mrb[4].mxu1 %vm194_vm1, %v203_v18 }
  0x11   :  { %4143 = vmatpush3.bf16.msra.mxu1 %v4596_v8  ;;  %3826 = vmatprep.mubr.msk.f32.mxu1 %vm4504_vm2, %v4505_v17 }
  0x12   :  { %4144 = vmatprep.subr.bf16.mxu1 %v4503_v11 }
  0x15   :  { %4146 = vmatpush3.bf16.msra.mxu1 %v4624_v16 }
  0x16   :  { %4153 = vmatprep.subr.bf16.mxu1 %v4503_v11 }
  0xdb   :  { %v4647_v20 = vpop.f32.mrb[0].mxu1  ;;  %v3797_v21 = vpop.f32.mrb[0].mxu0 }
  0xdc   :  { %v4649_v22 = vpop.f32.mrb[1].mxu1  ;;  %v146_v23 = vpop.f32.mrb[1].mxu0  ;;  %v152_v50 = vadd.f32 %v3797_v21, %v4654_v24 }
  0xdd   :  { %v147_v27 = vadd.f32 %v4654_v24, %v146_v23 }
  0xdf   :  { %v4656_v25 = vpop.f32.mrb[2].mxu1  ;;  %v3800_v12 = vpop.f32.mrb[2].mxu0 }
  0xe0   :  { %v4658_v26 = vpop.f32.mrb[3].mxu1  ;;  %v156_v13 = vpop.f32.mrb[3].mxu0 }
  0xe1   :  { %v157_v14 = vadd.f32 %v4654_v24, %v156_v13 }
  0xe3   :  { %v273_v28 = vpop.f32.mrb[4].mxu1 }
  0xe4   :  { %v277_v29 = vadd.f32 %v273_v28, %v147_v27  ;;  %v3817_v30 = vpop.f32.mrb[5].mxu1 }
  0xe6   :  { %4311 = vtanh.f32 %v277_v29  ;;  %v3530_v33 = vmul.f32 -1.442695, %v277_v29 }
  0xe8   :  { %4313 = vpow2.f32 %v3530_v33 }
  0xf0   :  { %v4312_v31 = vpop.eup %4311 }
  0xf1   :  { %292 = vrot.lane.b32.xlu0 %v4312_v31, %s4506_s14 }
  0xf2   :  { %v4314_v34 = vpop.eup %4313 }
  0xf3   :  { %v281_v35 = vadd.f32 1.0, %v4314_v34 }
  0xf5   :  { %287 = vrot.lane.b32.xlu0 %v285_v32, %s4506_s14  ;;  %4315 = vrcp.f32 %v281_v35 }
  0xff   :  { %v4316_v36 = vpop.eup %4315 }
 0x163   :  { %v293_v37 = vpop.permute.xlu0 %292 }
 0x164   :  { %v295_v38 = vmul.f32 %v4316_v36, %v293_v37 }
 0x166   :  { %297 = vrot.lane.b32.xlu1 %v295_v38, %s4506_s14 }
 0x167   :  { %v288_v39 = vpop.permute.xlu0 %287 }
 0x168   :  { %v290_v40 = vmul.f32 %v4316_v36, %v288_v39 }
 0x1d8   :  { %v298_v41 = vpop.permute.xlu1 %297 }
 0x1d9   :  { %v300_v42 = vadd.f32 %v298_v41, %v290_v40 }
 0x1db   :  { %4317 = vtanh.f32 %v300_v42 }
 0x1e5   :  { %v4318_v43 = vpop.eup %4317 }
 0x1e6   :  { %303 = vrot.lane.b32.xlu1 %v4318_v43, %s4506_s14  ;;  %v162_v43 = vadd.f32 %v3800_v12, %v4654_v24 }
 0x1ea   :  { %308 = vrot.lane.b32.xlu1 %v300_v42, %s4507_s2 }
 0x258   :  { %v304_v44 = vpop.permute.xlu1 %303 }
 0x259   :  { %v306_v45 = vmul.f32 %v4316_v36, %v304_v44 }
 0x25b   :  { %313 = vrot.lane.b32.xlu0 %v306_v45, %s4508_s1 }
 0x25c   :  { %v309_v46 = vpop.permute.xlu1 %308 }
 0x25d   :  { %311 = vst.msk [vmem:[#allocation5] sm:$0xff] %vm194_vm1, %v309_v46 }
 0x264   :  { %v402_v47 = vld [vmem:[#allocation5] sm:$0xff] }
 0x265   :  { %404 = vrot.lane.b32.xlu1 %v402_v47, %s4506_s14 }
 0x2cd   :  { %v314_v48 = vpop.permute.xlu0 %313 }
 0x2ce   :  { %316 = vst.msk [vmem:[#allocation4] sm:$0xff] %vm194_vm1, %v314_v48  ;;  %317 = vst.msk [vmem:[#allocation3] sm:$0xff] %vm194_vm1, %v314_v48 }
 0x2d5   :  { %v320_v49 = vld [vmem:[#allocation4] sm:$0xff] }
 0x2d6   :  { %3827 = vmatmul.mubr.msk.f32.vlgmr.msra.gmra.mrb[6].mxu1 %vm194_vm1, %v320_v49 }
 0x2d7   :  { %4155 = vmatpush3.bf16.msra.mxu1 %v4596_v8  ;;  %3848 = vmatprep.mubr.msk.f32.mxu1 %vm4504_vm2, %v4505_v17  ;;  %v405_v61 = vpop.permute.xlu1 %404 }
 0x2d8   :  { %4156 = vmatprep.subr.bf16.mxu1 %v4503_v11 }
 0x2db   :  { %4158 = vmatpush3.bf16.msra.mxu1 %v4624_v16 }
 0x2dc   :  { %4165 = vmatprep.subr.bf16.mxu1 %v4503_v11 }
 0x3a9   :  { %v390_v51 = vpop.f32.mrb[6].mxu1 }
 0x3aa   :  { %v394_v52 = vadd.f32 %v390_v51, %v152_v50  ;;  %v3828_v53 = vpop.f32.mrb[7].mxu1 }
 0x3ac   :  { %4319 = vtanh.f32 %v394_v52  ;;  %v3532_v55 = vmul.f32 -1.442695, %v394_v52 }
 0x3ae   :  { %4321 = vpow2.f32 %v3532_v55 }
 0x3b6   :  { %v4320_v54 = vpop.eup %4319 }
 0x3b7   :  { %409 = vrot.lane.b32.xlu0 %v4320_v54, %s4506_s14 }
 0x3b8   :  { %v4322_v56 = vpop.eup %4321 }
 0x3b9   :  { %v398_v57 = vadd.f32 1.0, %v4322_v56 }
 0x3bb   :  { %4323 = vrcp.f32 %v398_v57 }
 0x3c5   :  { %v4324_v58 = vpop.eup %4323 }
 0x3c6   :  { %v407_v62 = vmul.f32 %v4324_v58, %v405_v61 }
 0x429   :  { %v410_v59 = vpop.permute.xlu0 %409 }
 0x42a   :  { %v412_v60 = vmul.f32 %v4324_v58, %v410_v59 }
 0x42c   :  { %414 = vrot.lane.b32.xlu0 %v412_v60, %s4506_s14 }
 0x49e   :  { %v415_v63 = vpop.permute.xlu0 %414 }
 0x49f   :  { %v417_v0 = vadd.f32 %v415_v63, %v407_v62 }
 0x4a1   :  { %4325 = vtanh.f32 %v417_v0 }
 0x4ab   :  { %v4326_v1 = vpop.eup %4325 }
 0x4ac   :  { %420 = vrot.lane.b32.xlu1 %v4326_v1, %s4506_s14  ;;  %v167_v1 = vadd.f32 %v4654_v24, %v4649_v22 }
 0x4b0   :  { %425 = vrot.lane.b32.xlu1 %v417_v0, %s4507_s2 }
 0x51e   :  { %v421_v4 = vpop.permute.xlu1 %420 }
 0x51f   :  { %v423_v5 = vmul.f32 %v4324_v58, %v421_v4 }
 0x521   :  { %430 = vrot.lane.b32.xlu0 %v423_v5, %s4508_s1 }
 0x522   :  { %v426_v6 = vpop.permute.xlu1 %425 }
 0x523   :  { %428 = vst.msk [vmem:[#allocation5] sm:$0xff] %vm194_vm1, %v426_v6 }
 0x52a   :  { %v520_v7 = vld [vmem:[#allocation5] sm:$0xff] }
 0x52b   :  { %522 = vrot.lane.b32.xlu1 %v520_v7, %s4506_s14 }
 0x593   :  { %v431_v9 = vpop.permute.xlu0 %430 }
 0x594   :  { %433 = vst.msk [vmem:[#allocation4] sm:$0xff] %vm194_vm1, %v431_v9  ;;  %435 = vst.msk [vmem:[#allocation3 + $0x8] sm:$0xff] %vm194_vm1, %v431_v9 }
 0x59b   :  { %v438_v10 = vld [vmem:[#allocation4] sm:$0xff] }
 0x59c   :  { %3838 = vmatmul.mubr.msk.f32.vlgmr.msra.gmra.mrb[4].mxu0 %vm194_vm1, %v438_v10 }
 0x59d   :  { %4161 = vmatpush3.bf16.msra.mxu0 %v4596_v8  ;;  %3859 = vmatprep.mubr.msk.f32.mxu0 %vm4504_vm2, %v4505_v17  ;;  %v523_v32 = vpop.permute.xlu1 %522 }
 0x59e   :  { %4162 = vmatprep.subr.bf16.mxu0 %v4503_v11 }
 0x5a1   :  { %4164 = vmatpush3.bf16.msra.mxu0 %v4624_v16 }
 0x5a2   :  { %4171 = vmatprep.subr.bf16.mxu0 %v4503_v11 }
 0x66f   :  { %v508_v15 = vpop.f32.mrb[4].mxu0 }
 0x670   :  { %v512_v18 = vadd.f32 %v508_v15, %v157_v14  ;;  %v3839_v19 = vpop.f32.mrb[5].mxu0 }
 0x672   :  { %4327 = vtanh.f32 %v512_v18  ;;  %v3534_v23 = vmul.f32 -1.442695, %v512_v18 }
 0x674   :  { %4329 = vpow2.f32 %v3534_v23 }
 0x67c   :  { %v4328_v21 = vpop.eup %4327 }
 0x67d   :  { %527 = vrot.lane.b32.xlu0 %v4328_v21, %s4506_s14 }
 0x67e   :  { %v4330_v27 = vpop.eup %4329 }
 0x67f   :  { %v516_v28 = vadd.f32 1.0, %v4330_v27 }
 0x681   :  { %4331 = vrcp.f32 %v516_v28 }
 0x68b   :  { %v4332_v29 = vpop.eup %4331 }
 0x68c   :  { %v525_v33 = vmul.f32 %v4332_v29, %v523_v32 }
 0x6ef   :  { %v528_v30 = vpop.permute.xlu0 %527 }
 0x6f0   :  { %v530_v31 = vmul.f32 %v4332_v29, %v528_v30 }
 0x6f2   :  { %532 = vrot.lane.b32.xlu0 %v530_v31, %s4506_s14  ;;  %v172_v31 = vadd.f32 %v4647_v20, %v4654_v24 }
 0x764   :  { %v533_v34 = vpop.permute.xlu0 %532 }
 0x765   :  { %v535_v35 = vadd.f32 %v533_v34, %v525_v33 }
 0x767   :  { %4333 = vtanh.f32 %v535_v35 }
 0x771   :  { %v4334_v36 = vpop.eup %4333 }
 0x772   :  { %538 = vrot.lane.b32.xlu1 %v4334_v36, %s4506_s14 }
 0x776   :  { %543 = vrot.lane.b32.xlu1 %v535_v35, %s4507_s2 }
 0x7e4   :  { %v539_v37 = vpop.permute.xlu1 %538 }
 0x7e5   :  { %v541_v38 = vmul.f32 %v4332_v29, %v539_v37 }
 0x7e7   :  { %548 = vrot.lane.b32.xlu0 %v541_v38, %s4508_s1 }
 0x7e8   :  { %v544_v39 = vpop.permute.xlu1 %543 }
 0x7e9   :  { %546 = vst.msk [vmem:[#allocation5] sm:$0xff] %vm194_vm1, %v544_v39 }
 0x7f0   :  { %v638_v40 = vld [vmem:[#allocation5] sm:$0xff] }
 0x7f1   :  { %640 = vrot.lane.b32.xlu1 %v638_v40, %s4506_s14 }
 0x859   :  { %v549_v41 = vpop.permute.xlu0 %548 }
 0x85a   :  { %551 = vst.msk [vmem:[#allocation4] sm:$0xff] %vm194_vm1, %v549_v41  ;;  %553 = vst.msk [vmem:[#allocation3 + $0x10] sm:$0xff] %vm194_vm1, %v549_v41 }
 0x861   :  { %v556_v42 = vld [vmem:[#allocation4] sm:$0xff] }
 0x862   :  { %3849 = vmatmul.mubr.msk.f32.vlgmr.msra.gmra.mrb[8].mxu1 %vm194_vm1, %v556_v42 }
 0x863   :  { %4167 = vmatpush3.bf16.msra.mxu1 %v4596_v8  ;;  %3870 = vmatprep.mubr.msk.f32.mxu1 %vm4504_vm2, %v4505_v17  ;;  %v641_v54 = vpop.permute.xlu1 %640 }
 0x864   :  { %4168 = vmatprep.subr.bf16.mxu1 %v4503_v11 }
 0x867   :  { %4170 = vmatpush3.bf16.msra.mxu1 %v4624_v16 }
 0x868   :  { %4177 = vmatprep.subr.bf16.mxu1 %v4503_v11 }
 0x935   :  { %v626_v44 = vpop.f32.mrb[8].mxu1 }
 0x936   :  { %v630_v45 = vadd.f32 %v626_v44, %v162_v43  ;;  %v3850_v46 = vpop.f32.mrb[9].mxu1  ;;  %v1156_v44 = vld [vmem:[%s5302_s3] sm:$0xff] }
 0x938   :  { %4335 = vtanh.f32 %v630_v45  ;;  %v3536_v48 = vmul.f32 -1.442695, %v630_v45  ;;  %v1157_v45 = vld [vmem:[%s5302_s3 + $0x8] sm:$0xff] }
 0x939   :  { %v4183_v46 = vpack.c.bf16 %v1157_v45, %v1156_v44  ;;  %v3556_v45 = vld [vmem:[%s5298_s5 + $0x20] sm:$0xff] }
 0x93a   :  { %4337 = vpow2.f32 %v3536_v48 }
 0x942   :  { %v4336_v47 = vpop.eup %4335 }
 0x943   :  { %645 = vrot.lane.b32.xlu0 %v4336_v47, %s4506_s14 }
 0x944   :  { %v4338_v49 = vpop.eup %4337 }
 0x945   :  { %v634_v50 = vadd.f32 1.0, %v4338_v49 }
 0x947   :  { %4339 = vrcp.f32 %v634_v50 }
 0x951   :  { %v4340_v51 = vpop.eup %4339 }
 0x952   :  { %v643_v55 = vmul.f32 %v4340_v51, %v641_v54 }
 0x9b5   :  { %v646_v52 = vpop.permute.xlu0 %645 }
 0x9b6   :  { %v648_v53 = vmul.f32 %v4340_v51, %v646_v52  ;;  %v1158_v52 = vld [vmem:[%s5302_s3 + $0x10] sm:$0xff] }
 0x9b8   :  { %650 = vrot.lane.b32.xlu0 %v648_v53, %s4506_s14  ;;  %v1159_v53 = vld [vmem:[%s5302_s3 + $0x18] sm:$0xff] }
 0x9b9   :  { %v4187_v54 = vpack.c.bf16 %v1159_v53, %v1158_v52 }
 0xa2a   :  { %v651_v56 = vpop.permute.xlu0 %650 }
 0xa2b   :  { %v653_v57 = vadd.f32 %v651_v56, %v643_v55  ;;  %v1148_v56 = vld [vmem:[#allocation3] sm:$0xff] }
 0xa2d   :  { %4341 = vtanh.f32 %v653_v57 }
 0xa37   :  { %v4342_v58 = vpop.eup %4341 }
 0xa38   :  { %656 = vrot.lane.b32.xlu1 %v4342_v58, %s4506_s14  ;;  %v1150_v58 = vld [vmem:[#allocation3 + $0x10] sm:$0xff] }
 0xa3c   :  { %661 = vrot.lane.b32.xlu1 %v653_v57, %s4507_s2  ;;  %v1149_v57 = vld [vmem:[#allocation3 + $0x8] sm:$0xff] }
 0xaaa   :  { %v657_v59 = vpop.permute.xlu1 %656 }
 0xaab   :  { %v659_v60 = vmul.f32 %v4340_v51, %v657_v59 }
 0xaad   :  { %666 = vrot.lane.b32.xlu0 %v659_v60, %s4508_s1 }
 0xaae   :  { %v662_v61 = vpop.permute.xlu1 %661 }
 0xaaf   :  { %664 = vst.msk [vmem:[#allocation5] sm:$0xff] %vm194_vm1, %v662_v61 }
 0xab6   :  { %v756_v62 = vld [vmem:[#allocation5] sm:$0xff] }
 0xab7   :  { %758 = vrot.lane.b32.xlu1 %v756_v62, %s4506_s14  ;;  %v177_v62 = vadd.f32 %v4654_v24, %v4658_v26 }
 0xb1f   :  { %v667_v63 = vpop.permute.xlu0 %666 }
 0xb20   :  { %669 = vst.msk [vmem:[#allocation4] sm:$0xff] %vm194_vm1, %v667_v63  ;;  %671 = vst.msk [vmem:[#allocation3 + $0x18] sm:$0xff] %vm194_vm1, %v667_v63 }
 0xb27   :  { %v674_v0 = vld [vmem:[#allocation4] sm:$0xff]  ;;  %v1151_v59 = vld [vmem:[#allocation3 + $0x18] sm:$0xff] }
 0xb28   :  { %3860 = vmatmul.mubr.msk.f32.vlgmr.msra.gmra.mrb[6].mxu0 %vm194_vm1, %v674_v0 }
 0xb29   :  { %4173 = vmatpush3.bf16.msra.mxu0 %v4596_v8  ;;  %3881 = vmatprep.mubr.msk.f32.mxu0 %vm4504_vm2, %v4505_v17  ;;  %v759_v14 = vpop.permute.xlu1 %758 }
 0xb2a   :  { %4174 = vmatprep.subr.bf16.mxu0 %v4503_v11 }
 0xb2d   :  { %4176 = vmatpush3.bf16.msra.mxu0 %v4624_v16 }
 0xb2e   :  { %4184 = vmatprep.subr.bf16.mxu0 %v4183_v46 }
 0xbfb   :  { %v744_v2 = vpop.f32.mrb[6].mxu0 }
 0xbfc   :  { %v748_v3 = vadd.f32 %v744_v2, %v167_v1  ;;  %v3861_v4 = vpop.f32.mrb[7].mxu0 }
 0xbfe   :  { %4343 = vtanh.f32 %v748_v3  ;;  %v3538_v6 = vmul.f32 -1.442695, %v748_v3 }
 0xc00   :  { %4345 = vpow2.f32 %v3538_v6 }
 0xc08   :  { %v4344_v5 = vpop.eup %4343 }
 0xc09   :  { %763 = vrot.lane.b32.xlu0 %v4344_v5, %s4506_s14 }
 0xc0a   :  { %v4346_v7 = vpop.eup %4345 }
 0xc0b   :  { %v752_v9 = vadd.f32 1.0, %v4346_v7 }
 0xc0d   :  { %4347 = vrcp.f32 %v752_v9 }
 0xc17   :  { %v4348_v10 = vpop.eup %4347 }
 0xc18   :  { %v761_v15 = vmul.f32 %v4348_v10, %v759_v14 }
 0xc7b   :  { %v764_v12 = vpop.permute.xlu0 %763 }
 0xc7c   :  { %v766_v13 = vmul.f32 %v4348_v10, %v764_v12 }
 0xc7e   :  { %768 = vrot.lane.b32.xlu0 %v766_v13, %s4506_s14 }
 0xcf0   :  { %v769_v22 = vpop.permute.xlu0 %768 }
 0xcf1   :  { %v771_v18 = vadd.f32 %v769_v22, %v761_v15 }
 0xcf3   :  { %4349 = vtanh.f32 %v771_v18 }
 0xcfd   :  { %v4350_v19 = vpop.eup %4349 }
 0xcfe   :  { %774 = vrot.lane.b32.xlu1 %v4350_v19, %s4506_s14 }
 0xd02   :  { %779 = vrot.lane.b32.xlu1 %v771_v18, %s4507_s2 }
 0xd70   :  { %v775_v21 = vpop.permute.xlu1 %774 }
 0xd71   :  { %v777_v23 = vmul.f32 %v4348_v10, %v775_v21 }
 0xd73   :  { %784 = vrot.lane.b32.xlu0 %v777_v23, %s4508_s1 }
 0xd74   :  { %v780_v27 = vpop.permute.xlu1 %779 }
 0xd75   :  { %782 = vst.msk [vmem:[#allocation5] sm:$0xff] %vm194_vm1, %v780_v27 }
 0xd7c   :  { %v874_v28 = vld [vmem:[#allocation5] sm:$0xff] }
 0xd7d   :  { %876 = vrot.lane.b32.xlu1 %v874_v28, %s4506_s14 }
 0xde5   :  { %v785_v29 = vpop.permute.xlu0 %784 }
 0xde6   :  { %787 = vst.msk [vmem:[#allocation4] sm:$0xff] %vm194_vm1, %v785_v29  ;;  %789 = vst.msk [vmem:[#allocation3 + $0x20] sm:$0xff] %vm194_vm1, %v785_v29 }
 0xded   :  { %v792_v30 = vld [vmem:[#allocation4] sm:$0xff] }
 0xdee   :  { %3871 = vmatmul.mubr.msk.f32.vlgmr.msra.gmra.mrb[10].mxu1 %vm194_vm1, %v792_v30  ;;  %v1152_v60 = vld [vmem:[#allocation3 + $0x20] sm:$0xff] }
 0xdef   :  { %4179 = vmatpush3.bf16.msra.mxu1 %v4596_v8  ;;  %3892 = vmatprep.mubr.msk.f32.mxu1 %vm4504_vm2, %v4505_v17  ;;  %v877_v40 = vpop.permute.xlu1 %876 }
 0xdf0   :  { %4180 = vmatprep.subr.bf16.mxu1 %v4503_v11 }
 0xdf3   :  { %4182 = vmatpush3.bf16.msra.mxu1 %v4624_v16 }
 0xdf4   :  { %4191 = vmatprep.subr.bf16.mxu1 %v4503_v11 }
 0xec1   :  { %v862_v32 = vpop.f32.mrb[10].mxu1 }
 0xec2   :  { %v866_v33 = vadd.f32 %v862_v32, %v172_v31  ;;  %v3872_v34 = vpop.f32.mrb[11].mxu1 }
 0xec3   :  { %v182_v34 = vadd.f32 %v4656_v25, %v4654_v24 }
 0xec4   :  { %4351 = vtanh.f32 %v866_v33  ;;  %v3540_v8 = vmul.f32 -1.442695, %v866_v33 }
 0xec6   :  { %4353 = vpow2.f32 %v3540_v8 }
 0xece   :  { %v4352_v35 = vpop.eup %4351 }
 0xecf   :  { %881 = vrot.lane.b32.xlu0 %v4352_v35, %s4506_s14 }
 0xed0   :  { %v4354_v36 = vpop.eup %4353 }
 0xed1   :  { %v870_v37 = vadd.f32 1.0, %v4354_v36 }
 0xed3   :  { %4355 = vrcp.f32 %v870_v37 }
 0xedd   :  { %v4356_v38 = vpop.eup %4355 }
 0xede   :  { %v879_v41 = vmul.f32 %v4356_v38, %v877_v40 }
 0xf41   :  { %v882_v39 = vpop.permute.xlu0 %881 }
 0xf42   :  { %v884_v16 = vmul.f32 %v4356_v38, %v882_v39 }
 0xf44   :  { %886 = vrot.lane.b32.xlu0 %v884_v16, %s4506_s14 }
 0xfb6   :  { %v887_v20 = vpop.permute.xlu0 %886 }
 0xfb7   :  { %v889_v42 = vadd.f32 %v887_v20, %v879_v41 }
 0xfb9   :  { %4357 = vtanh.f32 %v889_v42 }
 0xfc3   :  { %v4358_v43 = vpop.eup %4357 }
 0xfc4   :  { %892 = vrot.lane.b32.xlu1 %v4358_v43, %s4506_s14 }
 0xfc8   :  { %897 = vrot.lane.b32.xlu1 %v889_v42, %s4507_s2 }
0x1036   :  { %v893_v47 = vpop.permute.xlu1 %892 }
0x1037   :  { %v895_v48 = vmul.f32 %v4356_v38, %v893_v47 }
0x1039   :  { %902 = vrot.lane.b32.xlu0 %v895_v48, %s4508_s1  ;;  %v3558_v48 = vld [vmem:[%s5298_s5 + $0x30] sm:$0xff] }
0x103a   :  { %v898_v49 = vpop.permute.xlu1 %897 }
0x103b   :  { %900 = vst.msk [vmem:[#allocation5] sm:$0xff] %vm194_vm1, %v898_v49  ;;  %v3559_v49 = vld [vmem:[%s5298_s5 + $0x38] sm:$0xff] }
0x1042   :  { %v992_v50 = vld [vmem:[#allocation5] sm:$0xff] }
0x1043   :  { %994 = vrot.lane.b32.xlu1 %v992_v50, %s4506_s14 }
0x10ab   :  { %v903_v51 = vpop.permute.xlu0 %902 }
0x10ac   :  { %905 = vst.msk [vmem:[#allocation4] sm:$0xff] %vm194_vm1, %v903_v51  ;;  %907 = vst.msk [vmem:[#allocation3 + $0x28] sm:$0xff] %vm194_vm1, %v903_v51  ;;  %v4835_v51 = vpack.c.bf16 %v3559_v49, %v3558_v48 }
0x10b3   :  { %v910_v55 = vld [vmem:[#allocation4] sm:$0xff]  ;;  %v1153_v61 = vld [vmem:[#allocation3 + $0x28] sm:$0xff] }
0x10b4   :  { %3882 = vmatmul.mubr.msk.f32.vlgmr.msra.gmra.mrb[8].mxu0 %vm194_vm1, %v910_v55 }
0x10b5   :  { %4186 = vmatpush3.bf16.msra.mxu0 %v4183_v46  ;;  %3903 = vmatprep.mubr.msk.f32.mxu0 %vm194_vm1, %v1148_v56  ;;  %v995_v22 = vpop.permute.xlu1 %994  ;;  %v3557_v46 = vld [vmem:[%s5298_s5 + $0x28] sm:$0xff] }
0x10b6   :  { %4188 = vmatprep.subr.bf16.mxu0 %v4187_v54  ;;  %v4826_v47 = vpack.c.bf16 %v3557_v46, %v3556_v45 }
0x10b9   :  { %4190 = vmatpush3.bf16.msra.mxu0 %v4187_v54  ;;  %v3555_v54 = vld [vmem:[%s5300_s7 + $0x8] sm:$0xff] }
0x10ba   :  { %4203 = vmatprep.subr.bf16.mxu0 %v4503_v11 }
0x10bc   :  { %3904 = vmatmul.mubr.msk.f32.vlgmr.msra.gmra.mrb[10].mxu0 %vm194_vm1, %v1149_v57 }
0x10bd   :  { %3906 = vmatprep.mubr.msk.f32.mxu0 %vm194_vm1, %v1150_v58  ;;  %4205 = vmatpush3.bf16.msra.mxu0 %v4826_v47  ;;  %v3554_v58 = vld [vmem:[%s5299_s6 + $0x8] sm:$0xff] }
0x10be   :  { %4206 = vmatprep.subr.bf16.mxu0 %v4503_v11 }
0x10c0   :  { %3907 = vmatmul.mubr.msk.f32.gmra.mrb[12].mxu0 %vm194_vm1, %v1151_v59 }
0x10c1   :  { %3909 = vmatprep.mubr.msk.f32.mxu0 %vm194_vm1, %v1152_v60  ;;  %4208 = vmatpush3.bf16.msra.mxu0 %v4835_v51 }
0x10c2   :  { %4215 = vmatprep.subr.bf16.mxu0 %v4503_v11 }
0x10c4   :  { %3910 = vmatmul.mubr.msk.f32.gmra.mrb[14].mxu0 %vm194_vm1, %v1153_v61 }
0x1187   :  { %v980_v63 = vpop.f32.mrb[8].mxu0 }
0x1188   :  { %v984_v0 = vadd.f32 %v980_v63, %v177_v62  ;;  %v3883_v1 = vpop.f32.mrb[9].mxu0 }
0x118a   :  { %4359 = vtanh.f32 %v984_v0  ;;  %v3542_v26 = vmul.f32 -1.442695, %v984_v0  ;;  %v4882_v0 = vld [vmem:[%s5305_s4] ss:$0 sm:$0xff] }
0x118c   :  { %4361 = vpow2.f32 %v3542_v26 }
0x118f   :  { %v4789_v2 = vpop.f32.mrb[10].mxu0 }
0x1190   :  { %v4791_v3 = vpop.f32.mrb[11].mxu0 }
0x1191   :  { %v1258_v1 = vadd.f32 %v4882_v0, %v4791_v3 }
0x1193   :  { %v4793_v4 = vpop.f32.mrb[12].mxu0 }
0x1194   :  { %v4360_v5 = vpop.eup %4359  ;;  %v4795_v6 = vpop.f32.mrb[13].mxu0 }
0x1195   :  { %999 = vrot.lane.b32.xlu0 %v4360_v5, %s4506_s14 }
0x1196   :  { %v4362_v10 = vpop.eup %4361 }
0x1197   :  { %v4798_v7 = vpop.f32.mrb[14].mxu0  ;;  %v988_v12 = vadd.f32 1.0, %v4362_v10 }
0x1198   :  { %v4800_v9 = vpop.f32.mrb[15].mxu0 }
0x1199   :  { %4363 = vrcp.f32 %v988_v12 }
0x11a3   :  { %v4364_v13 = vpop.eup %4363 }
0x11a4   :  { %v997_v18 = vmul.f32 %v4364_v13, %v995_v22 }
0x1207   :  { %v1000_v14 = vpop.permute.xlu0 %999 }
0x1208   :  { %v1002_v15 = vmul.f32 %v4364_v13, %v1000_v14 }
0x120a   :  { %1004 = vrot.lane.b32.xlu0 %v1002_v15, %s4506_s14 }
0x127c   :  { %v1005_v19 = vpop.permute.xlu0 %1004 }
0x127d   :  { %v1007_v21 = vadd.f32 %v1005_v19, %v997_v18 }
0x127f   :  { %4365 = vtanh.f32 %v1007_v21 }
0x1289   :  { %v4366_v23 = vpop.eup %4365 }
0x128a   :  { %1010 = vrot.lane.b32.xlu1 %v4366_v23, %s4506_s14 }
0x128e   :  { %1015 = vrot.lane.b32.xlu1 %v1007_v21, %s4507_s2 }
0x12fc   :  { %v1011_v27 = vpop.permute.xlu1 %1010 }
0x12fd   :  { %v1013_v28 = vmul.f32 %v4364_v13, %v1011_v27 }
0x12ff   :  { %1020 = vrot.lane.b32.xlu0 %v1013_v28, %s4508_s1 }
0x1300   :  { %v1016_v29 = vpop.permute.xlu1 %1015 }
0x1301   :  { %1018 = vst.msk [vmem:[#allocation5] sm:$0xff] %vm194_vm1, %v1016_v29 }
0x1308   :  { %v1110_v30 = vld [vmem:[#allocation5] sm:$0xff] }
0x1309   :  { %1112 = vrot.lane.b32.xlu1 %v1110_v30, %s4506_s14 }
0x1371   :  { %v1021_v31 = vpop.permute.xlu0 %1020 }
0x1372   :  { %1023 = vst.msk [vmem:[#allocation4] sm:$0xff] %vm194_vm1, %v1021_v31  ;;  %1025 = vst.msk [vmem:[#allocation3 + $0x30] sm:$0xff] %vm194_vm1, %v1021_v31 }
0x1379   :  { %v1028_v32 = vld [vmem:[#allocation4] sm:$0xff]  ;;  %v1154_v33 = vld [vmem:[#allocation3 + $0x30] sm:$0xff] }
0x137a   :  { %3893 = vmatmul.mubr.msk.f32.vlgmr.msra.gmra.mrb[12].mxu1 %vm194_vm1, %v1028_v32  ;;  %3912 = vmatprep.mubr.msk.f32.mxu0 %vm194_vm1, %v1154_v33 }
0x137b   :  { %3923 = vmatprep.mubr.msk.f32.mxu1 %vm4504_vm2, %v4505_v17  ;;  %v1113_v42 = vpop.permute.xlu1 %1112  ;;  %4193 = vmatpush3.bf16.msra.mxu1 %v4826_v47 }
0x137c   :  { %4194 = vmatprep.subr.bf16.mxu1 %v4503_v11 }
0x137f   :  { %4196 = vmatpush3.bf16.msra.mxu1 %v4835_v51 }
0x1380   :  { %4197 = vmatprep.subr.bf16.mxu1 %v4503_v11 }
0x144d   :  { %v1098_v35 = vpop.f32.mrb[12].mxu1 }
0x144e   :  { %v1102_v8 = vadd.f32 %v1098_v35, %v182_v34  ;;  %v3894_v36 = vpop.f32.mrb[13].mxu1  ;;  %v1263_v35 = vadd.f32 %v4789_v2, %v4882_v0 }
0x1450   :  { %4367 = vtanh.f32 %v1102_v8  ;;  %v3544_v38 = vmul.f32 -1.442695, %v1102_v8 }
0x1452   :  { %4369 = vpow2.f32 %v3544_v38 }
0x145a   :  { %v4368_v37 = vpop.eup %4367 }
0x145b   :  { %1117 = vrot.lane.b32.xlu0 %v4368_v37, %s4506_s14 }
0x145c   :  { %v4370_v39 = vpop.eup %4369 }
0x145d   :  { %v1106_v16 = vadd.f32 1.0, %v4370_v39 }
0x145f   :  { %4371 = vrcp.f32 %v1106_v16 }
0x1469   :  { %v4372_v40 = vpop.eup %4371 }
0x146a   :  { %v1115_v43 = vmul.f32 %v4372_v40, %v1113_v42 }
0x14cd   :  { %v1118_v41 = vpop.permute.xlu0 %1117 }
0x14ce   :  { %v1120_v20 = vmul.f32 %v4372_v40, %v1118_v41 }
0x14d0   :  { %1122 = vrot.lane.b32.xlu0 %v1120_v20, %s4506_s14 }
0x1542   :  { %v1123_v24 = vpop.permute.xlu0 %1122 }
0x1543   :  { %v1125_v25 = vadd.f32 %v1123_v24, %v1115_v43 }
0x1545   :  { %4373 = vtanh.f32 %v1125_v25 }
0x154f   :  { %v4374_v44 = vpop.eup %4373 }
0x1550   :  { %1128 = vrot.lane.b32.xlu1 %v4374_v44, %s4506_s14 }
0x1554   :  { %1133 = vrot.lane.b32.xlu1 %v1125_v25, %s4507_s2 }
0x15c2   :  { %v1129_v50 = vpop.permute.xlu1 %1128 }
0x15c3   :  { %v1131_v52 = vmul.f32 %v4372_v40, %v1129_v50 }
0x15c5   :  { %1138 = vrot.lane.b32.xlu0 %v1131_v52, %s4508_s1 }
0x15c6   :  { %v1134_v53 = vpop.permute.xlu1 %1133 }
0x15c7   :  { %1136 = vst.msk [vmem:[#allocation5] sm:$0xff] %vm194_vm1, %v1134_v53  ;;  %v1268_v53 = vadd.f32 %v4882_v0, %v4795_v6 }
0x15ce   :  { %v1146_v55 = vld [vmem:[#allocation5] sm:$0xff] }
0x15cf   :  { %1147 = vst.msk [vmem:[%s5303_s12] sm:$0xff] %vm194_vm1, %v1146_v55  ;;  %1309 = vst.msk [vmem:[#allocation5] sm:$0xff] %vm194_vm1, %v3555_v54 }
0x15d6   :  { %v1398_v56 = vld [vmem:[#allocation5] sm:$0xff] }
0x15d7   :  { %1400 = vrot.lane.b32.xlu1 %v1398_v56, %s4506_s14 }
0x1637   :  { %v1139_v57 = vpop.permute.xlu0 %1138 }
0x1638   :  { %1141 = vst.msk [vmem:[#allocation4] sm:$0xff] %vm194_vm1, %v1139_v57  ;;  %1143 = vst.msk [vmem:[#allocation3 + $0x38] sm:$0xff] %vm194_vm1, %v1139_v57 }
0x163f   :  { %v1144_v59 = vld [vmem:[#allocation4] sm:$0xff]  ;;  %v1155_v60 = vld [vmem:[#allocation3 + $0x38] sm:$0xff] }
0x1640   :  { %1145 = vst.msk [vmem:[%s5304_s11] sm:$0xff] %vm194_vm1, %v1144_v59  ;;  %1306 = vst.msk [vmem:[#allocation4] sm:$0xff] %vm194_vm1, %v3554_v58  ;;  %3913 = vmatmul.mubr.msk.f32.gmra.mrb[16].mxu0 %vm194_vm1, %v1155_v60 }
0x1641   :  { %3945 = vmatprep.mubr.msk.f32.mxu0 %vm4504_vm2, %v4505_v17 }
0x1647   :  { %v1316_v61 = vld [vmem:[#allocation4] sm:$0xff] }
0x1648   :  { %3924 = vmatmul.mubr.msk.f32.vlgmr.msra.gmra.mrb[14].mxu1 %vm194_vm1, %v1316_v61 }
0x1649   :  { %4199 = vmatpush3.bf16.msra.mxu1 %v4826_v47  ;;  %3934 = vmatprep.mubr.msk.f32.mxu1 %vm4504_vm2, %v4505_v17  ;;  %v1401_v21 = vpop.permute.xlu1 %1400 }
0x164a   :  { %4200 = vmatprep.subr.bf16.mxu1 %v4503_v11 }
0x164d   :  { %4202 = vmatpush3.bf16.msra.mxu1 %v4835_v51 }
0x164e   :  { %4209 = vmatprep.subr.bf16.mxu1 %v4503_v11 }
0x1713   :  { %v4875_v62 = vpop.f32.mrb[16].mxu0 }
0x1714   :  { %v4877_v63 = vpop.f32.mrb[17].mxu0 }
0x171b   :  { %v1386_v5 = vpop.f32.mrb[14].mxu1 }
0x171c   :  { %v1390_v26 = vadd.f32 %v1386_v5, %v1258_v1  ;;  %v3925_v10 = vpop.f32.mrb[15].mxu1 }
0x171e   :  { %4375 = vtanh.f32 %v1390_v26  ;;  %v3561_v13 = vmul.f32 -1.442695, %v1390_v26 }
0x1720   :  { %4377 = vpow2.f32 %v3561_v13 }
0x1728   :  { %v4376_v12 = vpop.eup %4375 }
0x1729   :  { %1405 = vrot.lane.b32.xlu0 %v4376_v12, %s4506_s14 }
0x172a   :  { %v4378_v14 = vpop.eup %4377 }
0x172b   :  { %v1394_v15 = vadd.f32 1.0, %v4378_v14 }
0x172d   :  { %4379 = vrcp.f32 %v1394_v15 }
0x1737   :  { %v4380_v22 = vpop.eup %4379 }
0x1738   :  { %v1403_v23 = vmul.f32 %v4380_v22, %v1401_v21 }
0x179b   :  { %v1406_v18 = vpop.permute.xlu0 %1405 }
0x179c   :  { %v1408_v19 = vmul.f32 %v4380_v22, %v1406_v18 }
0x179e   :  { %1410 = vrot.lane.b32.xlu0 %v1408_v19, %s4506_s14 }
0x1810   :  { %v1411_v3 = vpop.permute.xlu0 %1410 }
0x1811   :  { %v1413_v27 = vadd.f32 %v1411_v3, %v1403_v23  ;;  %v1273_v23 = vadd.f32 %v4793_v4, %v4882_v0 }
0x1813   :  { %4381 = vtanh.f32 %v1413_v27 }
0x181d   :  { %v4382_v28 = vpop.eup %4381 }
0x181e   :  { %1416 = vrot.lane.b32.xlu1 %v4382_v28, %s4506_s14 }
0x1822   :  { %1421 = vrot.lane.b32.xlu1 %v1413_v27, %s4507_s2 }
0x1890   :  { %v1417_v29 = vpop.permute.xlu1 %1416 }
0x1891   :  { %v1419_v30 = vmul.f32 %v4380_v22, %v1417_v29 }
0x1893   :  { %1426 = vrot.lane.b32.xlu0 %v1419_v30, %s4508_s1 }
0x1894   :  { %v1422_v31 = vpop.permute.xlu1 %1421 }
0x1895   :  { %1424 = vst.msk [vmem:[#allocation5] sm:$0xff] %vm194_vm1, %v1422_v31 }
0x189c   :  { %v1514_v32 = vld [vmem:[#allocation5] sm:$0xff] }
0x189d   :  { %1516 = vrot.lane.b32.xlu1 %v1514_v32, %s4506_s14 }
0x1905   :  { %v1427_v33 = vpop.permute.xlu0 %1426 }
0x1906   :  { %1429 = vst.msk [vmem:[#allocation4] sm:$0xff] %vm194_vm1, %v1427_v33  ;;  %1430 = vst.msk [vmem:[#allocation3] sm:$0xff] %vm194_vm1, %v1427_v33 }
0x190d   :  { %v1432_v34 = vld [vmem:[#allocation4] sm:$0xff] }
0x190e   :  { %3935 = vmatmul.mubr.msk.f32.vlgmr.msra.gmra.mrb[16].mxu1 %vm194_vm1, %v1432_v34 }
0x190f   :  { %4211 = vmatpush3.bf16.msra.mxu1 %v4826_v47  ;;  %3956 = vmatprep.mubr.msk.f32.mxu1 %vm4504_vm2, %v4505_v17  ;;  %v1517_v43 = vpop.permute.xlu1 %1516 }
0x1910   :  { %4212 = vmatprep.subr.bf16.mxu1 %v4503_v11 }
0x1913   :  { %4214 = vmatpush3.bf16.msra.mxu1 %v4835_v51 }
0x1914   :  { %4221 = vmatprep.subr.bf16.mxu1 %v4503_v11 }
0x19e1   :  { %v1502_v8 = vpop.f32.mrb[16].mxu1 }
0x19e2   :  { %v1506_v36 = vadd.f32 %v1502_v8, %v1263_v35  ;;  %v3936_v37 = vpop.f32.mrb[17].mxu1 }
0x19e4   :  { %4383 = vtanh.f32 %v1506_v36  ;;  %v3563_v39 = vmul.f32 -1.442695, %v1506_v36 }
0x19e6   :  { %4385 = vpow2.f32 %v3563_v39 }
0x19ee   :  { %v4384_v38 = vpop.eup %4383 }
0x19ef   :  { %1521 = vrot.lane.b32.xlu0 %v4384_v38, %s4506_s14 }
0x19f0   :  { %v4386_v16 = vpop.eup %4385 }
0x19f1   :  { %v1510_v40 = vadd.f32 1.0, %v4386_v16 }
0x19f3   :  { %4387 = vrcp.f32 %v1510_v40 }
0x19fd   :  { %v4388_v41 = vpop.eup %4387 }
0x19fe   :  { %v1519_v24 = vmul.f32 %v4388_v41, %v1517_v43  ;;  %v1278_v43 = vadd.f32 %v4882_v0, %v4800_v9 }
0x1a61   :  { %v1522_v20 = vpop.permute.xlu0 %1521 }
0x1a62   :  { %v1524_v42 = vmul.f32 %v4388_v41, %v1522_v20 }
0x1a64   :  { %1526 = vrot.lane.b32.xlu0 %v1524_v42, %s4506_s14 }
0x1ad6   :  { %v1527_v2 = vpop.permute.xlu0 %1526 }
0x1ad7   :  { %v1529_v25 = vadd.f32 %v1527_v2, %v1519_v24 }
0x1ad9   :  { %4389 = vtanh.f32 %v1529_v25 }
0x1ae3   :  { %v4390_v44 = vpop.eup %4389 }
0x1ae4   :  { %1532 = vrot.lane.b32.xlu1 %v4390_v44, %s4506_s14 }
0x1ae8   :  { %1537 = vrot.lane.b32.xlu1 %v1529_v25, %s4507_s2 }
0x1b56   :  { %v1533_v45 = vpop.permute.xlu1 %1532 }
0x1b57   :  { %v1535_v46 = vmul.f32 %v4388_v41, %v1533_v45 }
0x1b59   :  { %1542 = vrot.lane.b32.xlu0 %v1535_v46, %s4508_s1 }
0x1b5a   :  { %v1538_v48 = vpop.permute.xlu1 %1537 }
0x1b5b   :  { %1540 = vst.msk [vmem:[#allocation5] sm:$0xff] %vm194_vm1, %v1538_v48 }
0x1b62   :  { %v1630_v49 = vld [vmem:[#allocation5] sm:$0xff] }
0x1b63   :  { %1632 = vrot.lane.b32.xlu1 %v1630_v49, %s4506_s14 }
0x1bcb   :  { %v1543_v50 = vpop.permute.xlu0 %1542 }
0x1bcc   :  { %1545 = vst.msk [vmem:[#allocation4] sm:$0xff] %vm194_vm1, %v1543_v50  ;;  %1546 = vst.msk [vmem:[#allocation3 + $0x8] sm:$0xff] %vm194_vm1, %v1543_v50 }
0x1bd3   :  { %v1548_v52 = vld [vmem:[#allocation4] sm:$0xff] }
0x1bd4   :  { %3946 = vmatmul.mubr.msk.f32.vlgmr.msra.gmra.mrb[18].mxu0 %vm194_vm1, %v1548_v52 }
0x1bd5   :  { %4217 = vmatpush3.bf16.msra.mxu0 %v4826_v47  ;;  %3967 = vmatprep.mubr.msk.f32.mxu0 %vm4504_vm2, %v4505_v17  ;;  %v1633_v26 = vpop.permute.xlu1 %1632 }
0x1bd6   :  { %4218 = vmatprep.subr.bf16.mxu0 %v4503_v11 }
0x1bd9   :  { %4220 = vmatpush3.bf16.msra.mxu0 %v4835_v51 }
0x1bda   :  { %4227 = vmatprep.subr.bf16.mxu0 %v4503_v11 }
0x1ca7   :  { %v1618_v54 = vpop.f32.mrb[18].mxu0 }
0x1ca8   :  { %v1622_v55 = vadd.f32 %v1618_v54, %v1268_v53  ;;  %v3947_v56 = vpop.f32.mrb[19].mxu0 }
0x1caa   :  { %4391 = vtanh.f32 %v1622_v55  ;;  %v3565_v58 = vmul.f32 -1.442695, %v1622_v55 }
0x1cac   :  { %4393 = vpow2.f32 %v3565_v58 }
0x1cb4   :  { %v4392_v57 = vpop.eup %4391 }
0x1cb5   :  { %1637 = vrot.lane.b32.xlu0 %v4392_v57, %s4506_s14 }
0x1cb6   :  { %v4394_v59 = vpop.eup %4393 }
0x1cb7   :  { %v1626_v60 = vadd.f32 1.0, %v4394_v59 }
0x1cb9   :  { %4395 = vrcp.f32 %v1626_v60 }
0x1cc3   :  { %v4396_v61 = vpop.eup %4395 }
0x1cc4   :  { %v1635_v10 = vmul.f32 %v4396_v61, %v1633_v26 }
0x1d27   :  { %v1638_v1 = vpop.permute.xlu0 %1637 }
0x1d28   :  { %v1640_v5 = vmul.f32 %v4396_v61, %v1638_v1 }
0x1d2a   :  { %1642 = vrot.lane.b32.xlu0 %v1640_v5, %s4506_s14  ;;  %v1283_v5 = vadd.f32 %v4798_v7, %v4882_v0 }
0x1d9c   :  { %v1643_v6 = vpop.permute.xlu0 %1642 }
0x1d9d   :  { %v1645_v12 = vadd.f32 %v1643_v6, %v1635_v10 }
0x1d9f   :  { %4397 = vtanh.f32 %v1645_v12 }
0x1da9   :  { %v4398_v13 = vpop.eup %4397 }
0x1daa   :  { %1648 = vrot.lane.b32.xlu1 %v4398_v13, %s4506_s14 }
0x1dae   :  { %1653 = vrot.lane.b32.xlu1 %v1645_v12, %s4507_s2 }
0x1e1c   :  { %v1649_v14 = vpop.permute.xlu1 %1648 }
0x1e1d   :  { %v1651_v15 = vmul.f32 %v4396_v61, %v1649_v14 }
0x1e1f   :  { %1658 = vrot.lane.b32.xlu0 %v1651_v15, %s4508_s1 }
0x1e20   :  { %v1654_v22 = vpop.permute.xlu1 %1653 }
0x1e21   :  { %1656 = vst.msk [vmem:[#allocation5] sm:$0xff] %vm194_vm1, %v1654_v22 }
0x1e28   :  { %v1746_v18 = vld [vmem:[#allocation5] sm:$0xff] }
0x1e29   :  { %1748 = vrot.lane.b32.xlu1 %v1746_v18, %s4506_s14 }
0x1e91   :  { %v1659_v19 = vpop.permute.xlu0 %1658 }
0x1e92   :  { %1661 = vst.msk [vmem:[#allocation4] sm:$0xff] %vm194_vm1, %v1659_v19  ;;  %1662 = vst.msk [vmem:[#allocation3 + $0x10] sm:$0xff] %vm194_vm1, %v1659_v19 }
0x1e99   :  { %v1664_v21 = vld [vmem:[#allocation4] sm:$0xff] }
0x1e9a   :  { %3957 = vmatmul.mubr.msk.f32.vlgmr.msra.gmra.mrb[18].mxu1 %vm194_vm1, %v1664_v21 }
0x1e9b   :  { %4223 = vmatpush3.bf16.msra.mxu1 %v4826_v47  ;;  %3978 = vmatprep.mubr.msk.f32.mxu1 %vm4504_vm2, %v4505_v17  ;;  %v1749_v8 = vpop.permute.xlu1 %1748 }
0x1e9c   :  { %4224 = vmatprep.subr.bf16.mxu1 %v4503_v11 }
0x1e9f   :  { %4226 = vmatpush3.bf16.msra.mxu1 %v4835_v51 }
0x1ea0   :  { %4233 = vmatprep.subr.bf16.mxu1 %v4503_v11 }
0x1f6d   :  { %v1734_v3 = vpop.f32.mrb[18].mxu1 }
0x1f6e   :  { %v1738_v27 = vadd.f32 %v1734_v3, %v1273_v23  ;;  %v3958_v28 = vpop.f32.mrb[19].mxu1  ;;  %v3578_v3 = vld [vmem:[%s5302_s3 + $0x20] sm:$0xff] }
0x1f70   :  { %4399 = vtanh.f32 %v1738_v27  ;;  %v3567_v30 = vmul.f32 -1.442695, %v1738_v27  ;;  %v3579_v27 = vld [vmem:[%s5302_s3 + $0x28] sm:$0xff] }
0x1f71   :  { %v4239_v28 = vpack.c.bf16 %v3579_v27, %v3578_v3  ;;  %v3594_v27 = vld [vmem:[%s5298_s5 + $0x40] sm:$0xff] }
0x1f72   :  { %4401 = vpow2.f32 %v3567_v30 }
0x1f7a   :  { %v4400_v29 = vpop.eup %4399 }
0x1f7b   :  { %1753 = vrot.lane.b32.xlu0 %v4400_v29, %s4506_s14 }
0x1f7c   :  { %v4402_v31 = vpop.eup %4401 }
0x1f7d   :  { %v1742_v32 = vadd.f32 1.0, %v4402_v31 }
0x1f7f   :  { %4403 = vrcp.f32 %v1742_v32 }
0x1f89   :  { %v4404_v33 = vpop.eup %4403 }
0x1f8a   :  { %v1751_v36 = vmul.f32 %v4404_v33, %v1749_v8 }
0x1fed   :  { %v1754_v34 = vpop.permute.xlu0 %1753 }
0x1fee   :  { %v1756_v35 = vmul.f32 %v4404_v33, %v1754_v34  ;;  %v3580_v34 = vld [vmem:[%s5302_s3 + $0x30] sm:$0xff] }
0x1ff0   :  { %1758 = vrot.lane.b32.xlu0 %v1756_v35, %s4506_s14  ;;  %v3581_v35 = vld [vmem:[%s5302_s3 + $0x38] sm:$0xff] }
0x1ff1   :  { %v4243_v8 = vpack.c.bf16 %v3581_v35, %v3580_v34 }
0x2062   :  { %v1759_v4 = vpop.permute.xlu0 %1758 }
0x2063   :  { %v1761_v37 = vadd.f32 %v1759_v4, %v1751_v36  ;;  %v2249_v4 = vld [vmem:[#allocation3] sm:$0xff] }
0x2065   :  { %4405 = vtanh.f32 %v1761_v37 }
0x206f   :  { %v4406_v38 = vpop.eup %4405 }
0x2070   :  { %1764 = vrot.lane.b32.xlu1 %v4406_v38, %s4506_s14  ;;  %v2251_v38 = vld [vmem:[#allocation3 + $0x10] sm:$0xff] }
0x2074   :  { %1769 = vrot.lane.b32.xlu1 %v1761_v37, %s4507_s2  ;;  %v2250_v37 = vld [vmem:[#allocation3 + $0x8] sm:$0xff] }
0x20e2   :  { %v1765_v39 = vpop.permute.xlu1 %1764 }
0x20e3   :  { %v1767_v16 = vmul.f32 %v4404_v33, %v1765_v39 }
0x20e5   :  { %1774 = vrot.lane.b32.xlu0 %v1767_v16, %s4508_s1 }
0x20e6   :  { %v1770_v40 = vpop.permute.xlu1 %1769 }
0x20e7   :  { %1772 = vst.msk [vmem:[#allocation5] sm:$0xff] %vm194_vm1, %v1770_v40 }
0x20ee   :  { %v1862_v41 = vld [vmem:[#allocation5] sm:$0xff] }
0x20ef   :  { %1864 = vrot.lane.b32.xlu1 %v1862_v41, %s4506_s14  ;;  %v1288_v41 = vadd.f32 %v4882_v0, %v4877_v63 }
0x2157   :  { %v1775_v20 = vpop.permute.xlu0 %1774 }
0x2158   :  { %1777 = vst.msk [vmem:[#allocation4] sm:$0xff] %vm194_vm1, %v1775_v20  ;;  %1778 = vst.msk [vmem:[#allocation3 + $0x18] sm:$0xff] %vm194_vm1, %v1775_v20 }
0x215f   :  { %v1780_v42 = vld [vmem:[#allocation4] sm:$0xff]  ;;  %v2252_v39 = vld [vmem:[#allocation3 + $0x18] sm:$0xff] }
0x2160   :  { %3968 = vmatmul.mubr.msk.f32.vlgmr.msra.gmra.mrb[20].mxu0 %vm194_vm1, %v1780_v42 }
0x2161   :  { %4229 = vmatpush3.bf16.msra.mxu0 %v4826_v47  ;;  %3989 = vmatprep.mubr.msk.f32.mxu0 %vm4504_vm2, %v4505_v17  ;;  %v1865_v53 = vpop.permute.xlu1 %1864 }
0x2162   :  { %4230 = vmatprep.subr.bf16.mxu0 %v4503_v11 }
0x2165   :  { %4232 = vmatpush3.bf16.msra.mxu0 %v4835_v51 }
0x2166   :  { %4240 = vmatprep.subr.bf16.mxu0 %v4239_v28 }
0x2233   :  { %v1850_v24 = vpop.f32.mrb[20].mxu0 }
0x2234   :  { %v1854_v2 = vadd.f32 %v1850_v24, %v1278_v43  ;;  %v3969_v25 = vpop.f32.mrb[21].mxu0 }
0x2236   :  { %4407 = vtanh.f32 %v1854_v2  ;;  %v3569_v45 = vmul.f32 -1.442695, %v1854_v2 }
0x2238   :  { %4409 = vpow2.f32 %v3569_v45 }
0x2240   :  { %v4408_v44 = vpop.eup %4407 }
0x2241   :  { %1869 = vrot.lane.b32.xlu0 %v4408_v44, %s4506_s14 }
0x2242   :  { %v4410_v46 = vpop.eup %4409 }
0x2243   :  { %v1858_v48 = vadd.f32 1.0, %v4410_v46 }
0x2245   :  { %4411 = vrcp.f32 %v1858_v48 }
0x224f   :  { %v4412_v49 = vpop.eup %4411 }
0x2250   :  { %v1867_v54 = vmul.f32 %v4412_v49, %v1865_v53 }
0x22b3   :  { %v1870_v50 = vpop.permute.xlu0 %1869 }
0x22b4   :  { %v1872_v52 = vmul.f32 %v4412_v49, %v1870_v50 }
0x22b6   :  { %1874 = vrot.lane.b32.xlu0 %v1872_v52, %s4506_s14 }
0x2328   :  { %v1875_v9 = vpop.permute.xlu0 %1874 }
0x2329   :  { %v1877_v55 = vadd.f32 %v1875_v9, %v1867_v54 }
0x232b   :  { %4413 = vtanh.f32 %v1877_v55 }
0x2335   :  { %v4414_v56 = vpop.eup %4413 }
0x2336   :  { %1880 = vrot.lane.b32.xlu1 %v4414_v56, %s4506_s14 }
0x233a   :  { %1885 = vrot.lane.b32.xlu1 %v1877_v55, %s4507_s2 }
0x23a8   :  { %v1881_v57 = vpop.permute.xlu1 %1880 }
0x23a9   :  { %v1883_v58 = vmul.f32 %v4412_v49, %v1881_v57 }
0x23ab   :  { %1890 = vrot.lane.b32.xlu0 %v1883_v58, %s4508_s1 }
0x23ac   :  { %v1886_v59 = vpop.permute.xlu1 %1885 }
0x23ad   :  { %1888 = vst.msk [vmem:[#allocation5] sm:$0xff] %vm194_vm1, %v1886_v59 }
0x23b4   :  { %v1978_v60 = vld [vmem:[#allocation5] sm:$0xff] }
0x23b5   :  { %1980 = vrot.lane.b32.xlu1 %v1978_v60, %s4506_s14 }
0x241d   :  { %v1891_v61 = vpop.permute.xlu0 %1890 }
0x241e   :  { %1893 = vst.msk [vmem:[#allocation4] sm:$0xff] %vm194_vm1, %v1891_v61  ;;  %1894 = vst.msk [vmem:[#allocation3 + $0x20] sm:$0xff] %vm194_vm1, %v1891_v61 }
0x2425   :  { %v1896_v1 = vld [vmem:[#allocation4] sm:$0xff] }
0x2426   :  { %3979 = vmatmul.mubr.msk.f32.vlgmr.msra.gmra.mrb[20].mxu1 %vm194_vm1, %v1896_v1  ;;  %v2253_v16 = vld [vmem:[#allocation3 + $0x20] sm:$0xff] }
0x2427   :  { %4235 = vmatpush3.bf16.msra.mxu1 %v4826_v47  ;;  %4000 = vmatprep.mubr.msk.f32.mxu1 %vm4504_vm2, %v4505_v17  ;;  %v1981_v18 = vpop.permute.xlu1 %1980 }
0x2428   :  { %4236 = vmatprep.subr.bf16.mxu1 %v4503_v11 }
0x242b   :  { %4238 = vmatpush3.bf16.msra.mxu1 %v4835_v51 }
0x242c   :  { %4247 = vmatprep.subr.bf16.mxu1 %v4503_v11 }
0x24f9   :  { %v1966_v26 = vpop.f32.mrb[20].mxu1 }
0x24fa   :  { %v1970_v10 = vadd.f32 %v1966_v26, %v1283_v5  ;;  %v3980_v6 = vpop.f32.mrb[21].mxu1 }
0x24fb   :  { %v1293_v6 = vadd.f32 %v4875_v62, %v4882_v0 }
0x24fc   :  { %4415 = vtanh.f32 %v1970_v10  ;;  %v3571_v47 = vmul.f32 -1.442695, %v1970_v10 }
0x24fe   :  { %4417 = vpow2.f32 %v3571_v47 }
0x2506   :  { %v4416_v12 = vpop.eup %4415 }
0x2507   :  { %1985 = vrot.lane.b32.xlu0 %v4416_v12, %s4506_s14 }
0x2508   :  { %v4418_v13 = vpop.eup %4417 }
0x2509   :  { %v1974_v14 = vadd.f32 1.0, %v4418_v13 }
0x250b   :  { %4419 = vrcp.f32 %v1974_v14 }
0x2515   :  { %v4420_v15 = vpop.eup %4419 }
0x2516   :  { %v1983_v19 = vmul.f32 %v4420_v15, %v1981_v18 }
0x2579   :  { %v1986_v22 = vpop.permute.xlu0 %1985 }
0x257a   :  { %v1988_v51 = vmul.f32 %v4420_v15, %v1986_v22 }
0x257c   :  { %1990 = vrot.lane.b32.xlu0 %v1988_v51, %s4506_s14 }
0x25ee   :  { %v1991_v7 = vpop.permute.xlu0 %1990 }
0x25ef   :  { %v1993_v21 = vadd.f32 %v1991_v7, %v1983_v19 }
0x25f1   :  { %4421 = vtanh.f32 %v1993_v21 }
0x25fb   :  { %v4422_v23 = vpop.eup %4421 }
0x25fc   :  { %1996 = vrot.lane.b32.xlu1 %v4422_v23, %s4506_s14 }
0x2600   :  { %2001 = vrot.lane.b32.xlu1 %v1993_v21, %s4507_s2 }
0x266e   :  { %v1997_v29 = vpop.permute.xlu1 %1996 }
0x266f   :  { %v1999_v30 = vmul.f32 %v4420_v15, %v1997_v29 }
0x2671   :  { %2006 = vrot.lane.b32.xlu0 %v1999_v30, %s4508_s1  ;;  %v3596_v30 = vld [vmem:[%s5298_s5 + $0x50] sm:$0xff] }
0x2672   :  { %v2002_v31 = vpop.permute.xlu1 %2001 }
0x2673   :  { %2004 = vst.msk [vmem:[#allocation5] sm:$0xff] %vm194_vm1, %v2002_v31  ;;  %v3597_v31 = vld [vmem:[%s5298_s5 + $0x58] sm:$0xff] }
0x267a   :  { %v2094_v32 = vld [vmem:[#allocation5] sm:$0xff] }
0x267b   :  { %2096 = vrot.lane.b32.xlu1 %v2094_v32, %s4506_s14 }
0x26e3   :  { %v2007_v33 = vpop.permute.xlu0 %2006 }
0x26e4   :  { %2009 = vst.msk [vmem:[#allocation4] sm:$0xff] %vm194_vm1, %v2007_v33  ;;  %2010 = vst.msk [vmem:[#allocation3 + $0x28] sm:$0xff] %vm194_vm1, %v2007_v33  ;;  %v5052_v33 = vpack.c.bf16 %v3597_v31, %v3596_v30 }
0x26eb   :  { %v2012_v36 = vld [vmem:[#allocation4] sm:$0xff]  ;;  %v2254_v40 = vld [vmem:[#allocation3 + $0x28] sm:$0xff] }
0x26ec   :  { %3990 = vmatmul.mubr.msk.f32.vlgmr.msra.gmra.mrb[22].mxu0 %vm194_vm1, %v2012_v36 }
0x26ed   :  { %4242 = vmatpush3.bf16.msra.mxu0 %v4239_v28  ;;  %4011 = vmatprep.mubr.msk.f32.mxu0 %vm194_vm1, %v2249_v4  ;;  %v2097_v9 = vpop.permute.xlu1 %2096  ;;  %v3595_v28 = vld [vmem:[%s5298_s5 + $0x48] sm:$0xff] }
0x26ee   :  { %4244 = vmatprep.subr.bf16.mxu0 %v4243_v8  ;;  %v5043_v29 = vpack.c.bf16 %v3595_v28, %v3594_v27 }
0x26f1   :  { %4246 = vmatpush3.bf16.msra.mxu0 %v4243_v8  ;;  %v3593_v8 = vld [vmem:[%s5300_s7 + $0x10] sm:$0xff] }
0x26f2   :  { %4259 = vmatprep.subr.bf16.mxu0 %v4503_v11 }
0x26f4   :  { %4012 = vmatmul.mubr.msk.f32.vlgmr.msra.gmra.mrb[24].mxu0 %vm194_vm1, %v2250_v37 }
0x26f5   :  { %4014 = vmatprep.mubr.msk.f32.mxu0 %vm194_vm1, %v2251_v38  ;;  %4261 = vmatpush3.bf16.msra.mxu0 %v5043_v29  ;;  %v3592_v38 = vld [vmem:[%s5299_s6 + $0x10] sm:$0xff] }
0x26f6   :  { %4262 = vmatprep.subr.bf16.mxu0 %v4503_v11 }
0x26f8   :  { %4015 = vmatmul.mubr.msk.f32.gmra.mrb[26].mxu0 %vm194_vm1, %v2252_v39 }
0x26f9   :  { %4017 = vmatprep.mubr.msk.f32.mxu0 %vm194_vm1, %v2253_v16  ;;  %4264 = vmatpush3.bf16.msra.mxu0 %v5052_v33 }
0x26fa   :  { %4271 = vmatprep.subr.bf16.mxu0 %v4503_v11 }
0x26fc   :  { %4018 = vmatmul.mubr.msk.f32.gmra.mrb[28].mxu0 %vm194_vm1, %v2254_v40 }
0x27bf   :  { %v2082_v20 = vpop.f32.mrb[22].mxu0 }
0x27c0   :  { %v2086_v42 = vadd.f32 %v2082_v20, %v1288_v41  ;;  %v3991_v43 = vpop.f32.mrb[23].mxu0 }
0x27c2   :  { %4423 = vtanh.f32 %v2086_v42  ;;  %v3573_v63 = vmul.f32 -1.442695, %v2086_v42  ;;  %v5099_v42 = vld [vmem:[%s5305_s4 + $0x1] ss:$0 sm:$0xff] }
0x27c4   :  { %4425 = vpow2.f32 %v3573_v63 }
0x27c7   :  { %v5006_v24 = vpop.f32.mrb[24].mxu0 }
0x27c8   :  { %v5008_v2 = vpop.f32.mrb[25].mxu0 }
0x27c9   :  { %v2361_v43 = vadd.f32 %v5099_v42, %v5008_v2 }
0x27cb   :  { %v5010_v25 = vpop.f32.mrb[26].mxu0 }
0x27cc   :  { %v4424_v44 = vpop.eup %4423  ;;  %v5012_v45 = vpop.f32.mrb[27].mxu0 }
0x27cd   :  { %2101 = vrot.lane.b32.xlu0 %v4424_v44, %s4506_s14 }
0x27ce   :  { %v4426_v49 = vpop.eup %4425 }
0x27cf   :  { %v5015_v46 = vpop.f32.mrb[28].mxu0  ;;  %v2090_v50 = vadd.f32 1.0, %v4426_v49 }
0x27d0   :  { %v5017_v48 = vpop.f32.mrb[29].mxu0 }
0x27d1   :  { %4427 = vrcp.f32 %v2090_v50 }
0x27db   :  { %v4428_v52 = vpop.eup %4427 }
0x27dc   :  { %v2099_v55 = vmul.f32 %v4428_v52, %v2097_v9 }
0x283f   :  { %v2102_v53 = vpop.permute.xlu0 %2101 }
0x2840   :  { %v2104_v54 = vmul.f32 %v4428_v52, %v2102_v53 }
0x2842   :  { %2106 = vrot.lane.b32.xlu0 %v2104_v54, %s4506_s14 }
0x28b4   :  { %v2107_v56 = vpop.permute.xlu0 %2106 }
0x28b5   :  { %v2109_v57 = vadd.f32 %v2107_v56, %v2099_v55 }
0x28b7   :  { %4429 = vtanh.f32 %v2109_v57 }
0x28c1   :  { %v4430_v58 = vpop.eup %4429 }
0x28c2   :  { %2112 = vrot.lane.b32.xlu1 %v4430_v58, %s4506_s14 }
0x28c6   :  { %2117 = vrot.lane.b32.xlu1 %v2109_v57, %s4507_s2 }
0x2934   :  { %v2113_v59 = vpop.permute.xlu1 %2112 }
0x2935   :  { %v2115_v60 = vmul.f32 %v4428_v52, %v2113_v59 }
0x2937   :  { %2122 = vrot.lane.b32.xlu0 %v2115_v60, %s4508_s1 }
0x2938   :  { %v2118_v61 = vpop.permute.xlu1 %2117 }
0x2939   :  { %2120 = vst.msk [vmem:[#allocation5] sm:$0xff] %vm194_vm1, %v2118_v61 }
0x2940   :  { %v2210_v1 = vld [vmem:[#allocation5] sm:$0xff] }
0x2941   :  { %2212 = vrot.lane.b32.xlu1 %v2210_v1, %s4506_s14 }
0x29a9   :  { %v2123_v5 = vpop.permute.xlu0 %2122 }
0x29aa   :  { %2125 = vst.msk [vmem:[#allocation4] sm:$0xff] %vm194_vm1, %v2123_v5  ;;  %2126 = vst.msk [vmem:[#allocation3 + $0x30] sm:$0xff] %vm194_vm1, %v2123_v5 }
0x29b1   :  { %v2128_v26 = vld [vmem:[#allocation4] sm:$0xff]  ;;  %v2255_v10 = vld [vmem:[#allocation3 + $0x30] sm:$0xff] }
0x29b2   :  { %4001 = vmatmul.mubr.msk.f32.vlgmr.msra.gmra.mrb[22].mxu1 %vm194_vm1, %v2128_v26  ;;  %4020 = vmatprep.mubr.msk.f32.mxu0 %vm194_vm1, %v2255_v10 }
0x29b3   :  { %4031 = vmatprep.mubr.msk.f32.mxu1 %vm4504_vm2, %v4505_v17  ;;  %v2213_v21 = vpop.permute.xlu1 %2212  ;;  %4249 = vmatpush3.bf16.msra.mxu1 %v5043_v29 }
0x29b4   :  { %4250 = vmatprep.subr.bf16.mxu1 %v4503_v11 }
0x29b7   :  { %4252 = vmatpush3.bf16.msra.mxu1 %v5052_v33 }
0x29b8   :  { %4253 = vmatprep.subr.bf16.mxu1 %v4503_v11 }
0x2a85   :  { %v2198_v12 = vpop.f32.mrb[22].mxu1 }
0x2a86   :  { %v2202_v47 = vadd.f32 %v2198_v12, %v1293_v6  ;;  %v4002_v13 = vpop.f32.mrb[23].mxu1  ;;  %v2366_v12 = vadd.f32 %v5006_v24, %v5099_v42 }
0x2a88   :  { %4431 = vtanh.f32 %v2202_v47  ;;  %v3575_v15 = vmul.f32 -1.442695, %v2202_v47 }
0x2a8a   :  { %4433 = vpow2.f32 %v3575_v15 }
0x2a92   :  { %v4432_v14 = vpop.eup %4431 }
0x2a93   :  { %2217 = vrot.lane.b32.xlu0 %v4432_v14, %s4506_s14 }
0x2a94   :  { %v4434_v22 = vpop.eup %4433 }
0x2a95   :  { %v2206_v51 = vadd.f32 1.0, %v4434_v22 }
0x2a97   :  { %4435 = vrcp.f32 %v2206_v51 }
0x2aa1   :  { %v4436_v18 = vpop.eup %4435 }
0x2aa2   :  { %v2215_v23 = vmul.f32 %v4436_v18, %v2213_v21 }
0x2b05   :  { %v2218_v19 = vpop.permute.xlu0 %2217 }
0x2b06   :  { %v2220_v7 = vmul.f32 %v4436_v18, %v2218_v19 }
0x2b08   :  { %2222 = vrot.lane.b32.xlu0 %v2220_v7, %s4506_s14 }
0x2b7a   :  { %v2223_v62 = vpop.permute.xlu0 %2222 }
0x2b7b   :  { %v2225_v0 = vadd.f32 %v2223_v62, %v2215_v23 }
0x2b7d   :  { %4437 = vtanh.f32 %v2225_v0 }
0x2b87   :  { %v4438_v3 = vpop.eup %4437 }
0x2b88   :  { %2228 = vrot.lane.b32.xlu1 %v4438_v3, %s4506_s14 }
0x2b8c   :  { %2233 = vrot.lane.b32.xlu1 %v2225_v0, %s4507_s2 }
0x2bfa   :  { %v2229_v32 = vpop.permute.xlu1 %2228 }
0x2bfb   :  { %v2231_v34 = vmul.f32 %v4436_v18, %v2229_v32 }
0x2bfd   :  { %2238 = vrot.lane.b32.xlu0 %v2231_v34, %s4508_s1 }
0x2bfe   :  { %v2234_v35 = vpop.permute.xlu1 %2233 }
0x2bff   :  { %2236 = vst.msk [vmem:[#allocation5] sm:$0xff] %vm194_vm1, %v2234_v35  ;;  %v2371_v35 = vadd.f32 %v5099_v42, %v5012_v45 }
0x2c06   :  { %v2246_v36 = vld [vmem:[#allocation5] sm:$0xff] }
0x2c07   :  { %3577 = vst.msk [vmem:[%s5303_s12 + $0x8] sm:$0xff] %vm194_vm1, %v2246_v36  ;;  %2412 = vst.msk [vmem:[#allocation5] sm:$0xff] %vm194_vm1, %v3593_v8 }
0x2c0e   :  { %v2501_v4 = vld [vmem:[#allocation5] sm:$0xff] }
0x2c0f   :  { %2503 = vrot.lane.b32.xlu1 %v2501_v4, %s4506_s14 }
0x2c6f   :  { %v2239_v37 = vpop.permute.xlu0 %2238 }
0x2c70   :  { %2241 = vst.msk [vmem:[#allocation4] sm:$0xff] %vm194_vm1, %v2239_v37  ;;  %2242 = vst.msk [vmem:[#allocation3 + $0x38] sm:$0xff] %vm194_vm1, %v2239_v37 }
0x2c77   :  { %v2243_v39 = vld [vmem:[#allocation4] sm:$0xff]  ;;  %v2256_v16 = vld [vmem:[#allocation3 + $0x38] sm:$0xff] }
0x2c78   :  { %3576 = vst.msk [vmem:[%s5304_s11 + $0x8] sm:$0xff] %vm194_vm1, %v2243_v39  ;;  %2409 = vst.msk [vmem:[#allocation4] sm:$0xff] %vm194_vm1, %v3592_v38  ;;  %4021 = vmatmul.mubr.msk.f32.gmra.mrb[30].mxu0 %vm194_vm1, %v2256_v16 }
0x2c79   :  { %4053 = vmatprep.mubr.msk.f32.mxu0 %vm4504_vm2, %v4505_v17 }
0x2c7f   :  { %v2419_v40 = vld [vmem:[#allocation4] sm:$0xff] }
0x2c80   :  { %4032 = vmatmul.mubr.msk.f32.vlgmr.msra.gmra.mrb[24].mxu1 %vm194_vm1, %v2419_v40 }
0x2c81   :  { %4255 = vmatpush3.bf16.msra.mxu1 %v5043_v29  ;;  %4042 = vmatprep.mubr.msk.f32.mxu1 %vm4504_vm2, %v4505_v17  ;;  %v2504_v57 = vpop.permute.xlu1 %2503 }
0x2c82   :  { %4256 = vmatprep.subr.bf16.mxu1 %v4503_v11 }
0x2c85   :  { %4258 = vmatpush3.bf16.msra.mxu1 %v5052_v33 }
0x2c86   :  { %4265 = vmatprep.subr.bf16.mxu1 %v4503_v11 }
0x2d4b   :  { %v5092_v41 = vpop.f32.mrb[30].mxu0 }
0x2d4c   :  { %v5094_v20 = vpop.f32.mrb[31].mxu0 }
0x2d53   :  { %v2489_v44 = vpop.f32.mrb[24].mxu1 }
0x2d54   :  { %v2493_v63 = vadd.f32 %v2489_v44, %v2361_v43  ;;  %v4033_v49 = vpop.f32.mrb[25].mxu1 }
0x2d56   :  { %4439 = vtanh.f32 %v2493_v63  ;;  %v3599_v52 = vmul.f32 -1.442695, %v2493_v63 }
0x2d58   :  { %4441 = vpow2.f32 %v3599_v52 }
0x2d60   :  { %v4440_v50 = vpop.eup %4439 }
0x2d61   :  { %2508 = vrot.lane.b32.xlu0 %v4440_v50, %s4506_s14 }
0x2d62   :  { %v4442_v53 = vpop.eup %4441 }
0x2d63   :  { %v2497_v54 = vadd.f32 1.0, %v4442_v53 }
0x2d65   :  { %4443 = vrcp.f32 %v2497_v54 }
0x2d6f   :  { %v4444_v9 = vpop.eup %4443 }
0x2d70   :  { %v2506_v58 = vmul.f32 %v4444_v9, %v2504_v57 }
0x2dd3   :  { %v2509_v55 = vpop.permute.xlu0 %2508 }
0x2dd4   :  { %v2511_v56 = vmul.f32 %v4444_v9, %v2509_v55 }
0x2dd6   :  { %2513 = vrot.lane.b32.xlu0 %v2511_v56, %s4506_s14 }
0x2e48   :  { %v2514_v2 = vpop.permute.xlu0 %2513 }
0x2e49   :  { %v2516_v59 = vadd.f32 %v2514_v2, %v2506_v58  ;;  %v2376_v58 = vadd.f32 %v5010_v25, %v5099_v42 }
0x2e4b   :  { %4445 = vtanh.f32 %v2516_v59 }
0x2e55   :  { %v4446_v60 = vpop.eup %4445 }
0x2e56   :  { %2519 = vrot.lane.b32.xlu1 %v4446_v60, %s4506_s14 }
0x2e5a   :  { %2524 = vrot.lane.b32.xlu1 %v2516_v59, %s4507_s2 }
0x2ec8   :  { %v2520_v61 = vpop.permute.xlu1 %2519 }
0x2ec9   :  { %v2522_v1 = vmul.f32 %v4444_v9, %v2520_v61 }
0x2ecb   :  { %2529 = vrot.lane.b32.xlu0 %v2522_v1, %s4508_s1 }
0x2ecc   :  { %v2525_v5 = vpop.permute.xlu1 %2524 }
0x2ecd   :  { %2527 = vst.msk [vmem:[#allocation5] sm:$0xff] %vm194_vm1, %v2525_v5 }
0x2ed4   :  { %v2617_v26 = vld [vmem:[#allocation5] sm:$0xff] }
0x2ed5   :  { %2619 = vrot.lane.b32.xlu1 %v2617_v26, %s4506_s14 }
0x2f3d   :  { %v2530_v10 = vpop.permute.xlu0 %2529 }
0x2f3e   :  { %2532 = vst.msk [vmem:[#allocation4] sm:$0xff] %vm194_vm1, %v2530_v10  ;;  %2533 = vst.msk [vmem:[#allocation3] sm:$0xff] %vm194_vm1, %v2530_v10 }
0x2f45   :  { %v2535_v6 = vld [vmem:[#allocation4] sm:$0xff] }
0x2f46   :  { %4043 = vmatmul.mubr.msk.f32.vlgmr.msra.gmra.mrb[26].mxu1 %vm194_vm1, %v2535_v6 }
0x2f47   :  { %4267 = vmatpush3.bf16.msra.mxu1 %v5043_v29  ;;  %4064 = vmatprep.mubr.msk.f32.mxu1 %vm4504_vm2, %v4505_v17  ;;  %v2620_v23 = vpop.permute.xlu1 %2619 }
0x2f48   :  { %4268 = vmatprep.subr.bf16.mxu1 %v4503_v11 }
0x2f4b   :  { %4270 = vmatpush3.bf16.msra.mxu1 %v5052_v33 }
0x2f4c   :  { %4277 = vmatprep.subr.bf16.mxu1 %v4503_v11 }
0x3019   :  { %v2605_v47 = vpop.f32.mrb[26].mxu1 }
0x301a   :  { %v2609_v13 = vadd.f32 %v2605_v47, %v2366_v12  ;;  %v4044_v14 = vpop.f32.mrb[27].mxu1 }
0x301c   :  { %4447 = vtanh.f32 %v2609_v13  ;;  %v3601_v22 = vmul.f32 -1.442695, %v2609_v13 }
0x301e   :  { %4449 = vpow2.f32 %v3601_v22 }
0x3026   :  { %v4448_v15 = vpop.eup %4447 }
0x3027   :  { %2624 = vrot.lane.b32.xlu0 %v4448_v15, %s4506_s14 }
0x3028   :  { %v4450_v51 = vpop.eup %4449 }
0x3029   :  { %v2613_v18 = vadd.f32 1.0, %v4450_v51 }
0x302b   :  { %4451 = vrcp.f32 %v2613_v18 }
0x3035   :  { %v4452_v19 = vpop.eup %4451 }
0x3036   :  { %v2622_v62 = vmul.f32 %v4452_v19, %v2620_v23  ;;  %v2381_v23 = vadd.f32 %v5099_v42, %v5017_v48 }
0x3099   :  { %v2625_v7 = vpop.permute.xlu0 %2624 }
0x309a   :  { %v2627_v21 = vmul.f32 %v4452_v19, %v2625_v7 }
0x309c   :  { %2629 = vrot.lane.b32.xlu0 %v2627_v21, %s4506_s14 }
0x310e   :  { %v2630_v24 = vpop.permute.xlu0 %2629 }
0x310f   :  { %v2632_v0 = vadd.f32 %v2630_v24, %v2622_v62 }
0x3111   :  { %4453 = vtanh.f32 %v2632_v0 }
0x311b   :  { %v4454_v3 = vpop.eup %4453 }
0x311c   :  { %2635 = vrot.lane.b32.xlu1 %v4454_v3, %s4506_s14 }
0x3120   :  { %2640 = vrot.lane.b32.xlu1 %v2632_v0, %s4507_s2 }
0x318e   :  { %v2636_v27 = vpop.permute.xlu1 %2635 }
0x318f   :  { %v2638_v28 = vmul.f32 %v4452_v19, %v2636_v27 }
0x3191   :  { %2645 = vrot.lane.b32.xlu0 %v2638_v28, %s4508_s1 }
0x3192   :  { %v2641_v30 = vpop.permute.xlu1 %2640 }
0x3193   :  { %2643 = vst.msk [vmem:[#allocation5] sm:$0xff] %vm194_vm1, %v2641_v30 }
0x319a   :  { %v2733_v31 = vld [vmem:[#allocation5] sm:$0xff] }
0x319b   :  { %2735 = vrot.lane.b32.xlu1 %v2733_v31, %s4506_s14 }
0x3203   :  { %v2646_v32 = vpop.permute.xlu0 %2645 }
0x3204   :  { %2648 = vst.msk [vmem:[#allocation4] sm:$0xff] %vm194_vm1, %v2646_v32  ;;  %2649 = vst.msk [vmem:[#allocation3 + $0x8] sm:$0xff] %vm194_vm1, %v2646_v32 }
0x320b   :  { %v2651_v34 = vld [vmem:[#allocation4] sm:$0xff] }
0x320c   :  { %4054 = vmatmul.mubr.msk.f32.vlgmr.msra.gmra.mrb[32].mxu0 %vm194_vm1, %v2651_v34 }
0x320d   :  { %4273 = vmatpush3.bf16.msra.mxu0 %v5043_v29  ;;  %4075 = vmatprep.mubr.msk.f32.mxu0 %vm4504_vm2, %v4505_v17  ;;  %v2736_v63 = vpop.permute.xlu1 %2735 }
0x320e   :  { %4274 = vmatprep.subr.bf16.mxu0 %v4503_v11 }
0x3211   :  { %4276 = vmatpush3.bf16.msra.mxu0 %v5052_v33 }
0x3212   :  { %4283 = vmatprep.subr.bf16.mxu0 %v4503_v11 }
0x32df   :  { %v2721_v8 = vpop.f32.mrb[32].mxu0 }
0x32e0   :  { %v2725_v36 = vadd.f32 %v2721_v8, %v2371_v35  ;;  %v4055_v4 = vpop.f32.mrb[33].mxu0 }
0x32e2   :  { %4455 = vtanh.f32 %v2725_v36  ;;  %v3603_v38 = vmul.f32 -1.442695, %v2725_v36 }
0x32e4   :  { %4457 = vpow2.f32 %v3603_v38 }
0x32ec   :  { %v4456_v37 = vpop.eup %4455 }
0x32ed   :  { %2740 = vrot.lane.b32.xlu0 %v4456_v37, %s4506_s14 }
0x32ee   :  { %v4458_v39 = vpop.eup %4457 }
0x32ef   :  { %v2729_v16 = vadd.f32 1.0, %v4458_v39 }
0x32f1   :  { %4459 = vrcp.f32 %v2729_v16 }
0x32fb   :  { %v4460_v40 = vpop.eup %4459 }
0x32fc   :  { %v2738_v49 = vmul.f32 %v4460_v40, %v2736_v63 }
0x335f   :  { %v2741_v43 = vpop.permute.xlu0 %2740 }
0x3360   :  { %v2743_v44 = vmul.f32 %v4460_v40, %v2741_v43 }
0x3362   :  { %2745 = vrot.lane.b32.xlu0 %v2743_v44, %s4506_s14  ;;  %v2386_v44 = vadd.f32 %v5015_v46, %v5099_v42 }
0x33d4   :  { %v2746_v45 = vpop.permute.xlu0 %2745 }
0x33d5   :  { %v2748_v50 = vadd.f32 %v2746_v45, %v2738_v49 }
0x33d7   :  { %4461 = vtanh.f32 %v2748_v50 }
0x33e1   :  { %v4462_v52 = vpop.eup %4461 }
0x33e2   :  { %2751 = vrot.lane.b32.xlu1 %v4462_v52, %s4506_s14 }
0x33e6   :  { %2756 = vrot.lane.b32.xlu1 %v2748_v50, %s4507_s2 }
0x3454   :  { %v2752_v53 = vpop.permute.xlu1 %2751 }
0x3455   :  { %v2754_v54 = vmul.f32 %v4460_v40, %v2752_v53 }
0x3457   :  { %2761 = vrot.lane.b32.xlu0 %v2754_v54, %s4508_s1 }
0x3458   :  { %v2757_v9 = vpop.permute.xlu1 %2756 }
0x3459   :  { %2759 = vst.msk [vmem:[#allocation5] sm:$0xff] %vm194_vm1, %v2757_v9 }
0x3460   :  { %v2849_v55 = vld [vmem:[#allocation5] sm:$0xff] }
0x3461   :  { %2851 = vrot.lane.b32.xlu1 %v2849_v55, %s4506_s14 }
0x34c9   :  { %v2762_v56 = vpop.permute.xlu0 %2761 }
0x34ca   :  { %2764 = vst.msk [vmem:[#allocation4] sm:$0xff] %vm194_vm1, %v2762_v56  ;;  %2765 = vst.msk [vmem:[#allocation3 + $0x10] sm:$0xff] %vm194_vm1, %v2762_v56 }
0x34d1   :  { %v2767_v57 = vld [vmem:[#allocation4] sm:$0xff] }
0x34d2   :  { %4065 = vmatmul.mubr.msk.f32.vlgmr.msra.gmra.mrb[28].mxu1 %vm194_vm1, %v2767_v57  ;;  %v3360_v57 = vld [vmem:[%s5306_s8] sm:$0xff] }
0x34d3   :  { %4279 = vmatpush3.bf16.msra.mxu1 %v5043_v29  ;;  %4086 = vmatprep.mubr.msk.f32.mxu1 %vm4504_vm2, %v4505_v17  ;;  %v2852_v47 = vpop.permute.xlu1 %2851 }
0x34d4   :  { %4280 = vmatprep.subr.bf16.mxu1 %v4503_v11 }
0x34d7   :  { %4282 = vmatpush3.bf16.msra.mxu1 %v5052_v33 }
0x34d8   :  { %4289 = vmatprep.subr.bf16.mxu1 %v4503_v11 }
0x35a5   :  { %v2837_v2 = vpop.f32.mrb[28].mxu1 }
0x35a6   :  { %v2841_v59 = vadd.f32 %v2837_v2, %v2376_v58  ;;  %v4066_v60 = vpop.f32.mrb[29].mxu1  ;;  %v3361_v58 = vld [vmem:[%s5306_s8 + $0x8] sm:$0xff] }
0x35a7   :  { %v4295_v2 = vpack.c.bf16 %v3361_v58, %v3360_v57 }
0x35a8   :  { %4463 = vtanh.f32 %v2841_v59  ;;  %v3605_v1 = vmul.f32 -1.442695, %v2841_v59 }
0x35aa   :  { %4465 = vpow2.f32 %v3605_v1 }
0x35b2   :  { %v4464_v61 = vpop.eup %4463 }
0x35b3   :  { %2856 = vrot.lane.b32.xlu0 %v4464_v61, %s4506_s14 }
0x35b4   :  { %v4466_v5 = vpop.eup %4465 }
0x35b5   :  { %v2845_v26 = vadd.f32 1.0, %v4466_v5 }
0x35b7   :  { %4467 = vrcp.f32 %v2845_v26  ;;  %v3362_v26 = vld [vmem:[%s5306_s8 + $0x10] sm:$0xff] }
0x35c1   :  { %v4468_v10 = vpop.eup %4467 }
0x35c2   :  { %v2854_v13 = vmul.f32 %v4468_v10, %v2852_v47  ;;  %v3352_v47 = vld [vmem:[#allocation3] sm:$0xff] }
0x3625   :  { %v2857_v6 = vpop.permute.xlu0 %2856 }
0x3626   :  { %v2859_v12 = vmul.f32 %v4468_v10, %v2857_v6 }
0x3628   :  { %2861 = vrot.lane.b32.xlu0 %v2859_v12, %s4506_s14 }
0x369a   :  { %v2862_v25 = vpop.permute.xlu0 %2861 }
0x369b   :  { %v2864_v14 = vadd.f32 %v2862_v25, %v2854_v13  ;;  %v3353_v13 = vld [vmem:[#allocation3 + $0x8] sm:$0xff]  ;;  %v3354_v25 = vld [vmem:[#allocation3 + $0x10] sm:$0xff] }
0x369d   :  { %4469 = vtanh.f32 %v2864_v14 }
0x36a7   :  { %v4470_v15 = vpop.eup %4469 }
0x36a8   :  { %2867 = vrot.lane.b32.xlu1 %v4470_v15, %s4506_s14 }
0x36ac   :  { %2872 = vrot.lane.b32.xlu1 %v2864_v14, %s4507_s2 }
0x371a   :  { %v2868_v22 = vpop.permute.xlu1 %2867 }
0x371b   :  { %v2870_v51 = vmul.f32 %v4468_v10, %v2868_v22  ;;  %v3363_v10 = vld [vmem:[%s5306_s8 + $0x18] sm:$0xff] }
0x371c   :  { %v4299_v6 = vpack.c.bf16 %v3363_v10, %v3362_v26 }
0x371d   :  { %2877 = vrot.lane.b32.xlu0 %v2870_v51, %s4508_s1  ;;  %v2391_v51 = vadd.f32 %v5099_v42, %v5094_v20 }
0x371e   :  { %v2873_v18 = vpop.permute.xlu1 %2872 }
0x371f   :  { %2875 = vst.msk [vmem:[#allocation5] sm:$0xff] %vm194_vm1, %v2873_v18 }
0x3726   :  { %v2965_v19 = vld [vmem:[#allocation5] sm:$0xff] }
0x3727   :  { %2967 = vrot.lane.b32.xlu1 %v2965_v19, %s4506_s14 }
0x378f   :  { %v2878_v7 = vpop.permute.xlu0 %2877 }
0x3790   :  { %2880 = vst.msk [vmem:[#allocation4] sm:$0xff] %vm194_vm1, %v2878_v7  ;;  %2881 = vst.msk [vmem:[#allocation3 + $0x18] sm:$0xff] %vm194_vm1, %v2878_v7 }
0x3797   :  { %v2883_v21 = vld [vmem:[#allocation4] sm:$0xff]  ;;  %v3355_v14 = vld [vmem:[#allocation3 + $0x18] sm:$0xff] }
0x3798   :  { %4076 = vmatmul.mubr.msk.f32.vlgmr.msra.gmra.mrb[34].mxu0 %vm194_vm1, %v2883_v21  ;;  %v5224_v21 = vld [vmem:[%s5307_s9] ss:$0 sm:$0xff] }
0x3799   :  { %4285 = vmatpush3.bf16.msra.mxu0 %v5043_v29  ;;  %4097 = vmatprep.mubr.msk.f32.mxu0 %vm4504_vm2, %v4505_v17  ;;  %v2968_v35 = vpop.permute.xlu1 %2967 }
0x379a   :  { %4286 = vmatprep.subr.bf16.mxu0 %v4503_v11 }
0x379d   :  { %4288 = vmatpush3.bf16.msra.mxu0 %v5052_v33 }
0x379e   :  { %4296 = vmatprep.subr.bf16.mxu0 %v4295_v2 }
0x386b   :  { %v2953_v62 = vpop.f32.mrb[34].mxu0 }
0x386c   :  { %v2957_v24 = vadd.f32 %v2953_v62, %v2381_v23  ;;  %v4077_v0 = vpop.f32.mrb[35].mxu0 }
0x386e   :  { %4471 = vtanh.f32 %v2957_v24  ;;  %v3607_v27 = vmul.f32 -1.442695, %v2957_v24 }
0x3870   :  { %4473 = vpow2.f32 %v3607_v27 }
0x3878   :  { %v4472_v3 = vpop.eup %4471 }
0x3879   :  { %2972 = vrot.lane.b32.xlu0 %v4472_v3, %s4506_s14 }
0x387a   :  { %v4474_v28 = vpop.eup %4473 }
0x387b   :  { %v2961_v30 = vadd.f32 1.0, %v4474_v28 }
0x387d   :  { %4475 = vrcp.f32 %v2961_v30 }
0x3887   :  { %v4476_v31 = vpop.eup %4475 }
0x3888   :  { %v2970_v8 = vmul.f32 %v4476_v31, %v2968_v35 }
0x38eb   :  { %v2973_v32 = vpop.permute.xlu0 %2972 }
0x38ec   :  { %v2975_v34 = vmul.f32 %v4476_v31, %v2973_v32 }
0x38ee   :  { %2977 = vrot.lane.b32.xlu0 %v2975_v34, %s4506_s14 }
0x3960   :  { %v2978_v48 = vpop.permute.xlu0 %2977 }
0x3961   :  { %v2980_v36 = vadd.f32 %v2978_v48, %v2970_v8 }
0x3963   :  { %4477 = vtanh.f32 %v2980_v36 }
0x396d   :  { %v4478_v4 = vpop.eup %4477 }
0x396e   :  { %2983 = vrot.lane.b32.xlu1 %v4478_v4, %s4506_s14 }
0x3972   :  { %2988 = vrot.lane.b32.xlu1 %v2980_v36, %s4507_s2 }
0x39e0   :  { %v2984_v37 = vpop.permute.xlu1 %2983 }
0x39e1   :  { %v2986_v38 = vmul.f32 %v4476_v31, %v2984_v37 }
0x39e3   :  { %2993 = vrot.lane.b32.xlu0 %v2986_v38, %s4508_s1 }
0x39e4   :  { %v2989_v39 = vpop.permute.xlu1 %2988 }
0x39e5   :  { %2991 = vst.msk [vmem:[#allocation5] sm:$0xff] %vm194_vm1, %v2989_v39 }
0x39ec   :  { %v3081_v16 = vld [vmem:[#allocation5] sm:$0xff] }
0x39ed   :  { %3083 = vrot.lane.b32.xlu1 %v3081_v16, %s4506_s14 }
0x3a55   :  { %v2994_v40 = vpop.permute.xlu0 %2993 }
0x3a56   :  { %2996 = vst.msk [vmem:[#allocation4] sm:$0xff] %vm194_vm1, %v2994_v40  ;;  %2997 = vst.msk [vmem:[#allocation3 + $0x20] sm:$0xff] %vm194_vm1, %v2994_v40 }
0x3a5d   :  { %v2999_v43 = vld [vmem:[#allocation4] sm:$0xff] }
0x3a5e   :  { %4087 = vmatmul.mubr.msk.f32.vlgmr.msra.gmra.mrb[30].mxu1 %vm194_vm1, %v2999_v43  ;;  %v3356_v15 = vld [vmem:[#allocation3 + $0x20] sm:$0xff] }
0x3a5f   :  { %4291 = vmatpush3.bf16.msra.mxu1 %v5043_v29  ;;  %4108 = vmatprep.mubr.msk.f32.mxu1 %vm4504_vm2, %v4505_v17 }
0x3a60   :  { %4292 = vmatprep.subr.bf16.mxu1 %v4503_v11 }
0x3a63   :  { %4294 = vmatpush3.bf16.msra.mxu1 %v5052_v33  ;;  %v3084_v33 = vpop.permute.xlu1 %3083 }
0x3b31   :  { %v3069_v63 = vpop.f32.mrb[30].mxu1 }
0x3b32   :  { %v3073_v49 = vadd.f32 %v3069_v63, %v2386_v44  ;;  %v4088_v45 = vpop.f32.mrb[31].mxu1 }
0x3b34   :  { %4479 = vtanh.f32 %v3073_v49  ;;  %v3609_v52 = vmul.f32 -1.442695, %v3073_v49 }
0x3b36   :  { %4481 = vpow2.f32 %v3609_v52 }
0x3b3e   :  { %v4480_v50 = vpop.eup %4479 }
0x3b3f   :  { %3088 = vrot.lane.b32.xlu0 %v4480_v50, %s4506_s14 }
0x3b40   :  { %v4482_v29 = vpop.eup %4481 }
0x3b41   :  { %v3077_v53 = vadd.f32 1.0, %v4482_v29 }
0x3b43   :  { %4483 = vrcp.f32 %v3077_v53 }
0x3b4d   :  { %v4484_v17 = vpop.eup %4483 }
0x3b4e   :  { %v3086_v9 = vmul.f32 %v4484_v17, %v3084_v33 }
0x3bb1   :  { %v3089_v54 = vpop.permute.xlu0 %3088 }
0x3bb2   :  { %v3091_v11 = vmul.f32 %v4484_v17, %v3089_v54 }
0x3bb4   :  { %3093 = vrot.lane.b32.xlu0 %v3091_v11, %s4506_s14 }
0x3c26   :  { %v3094_v46 = vpop.permute.xlu0 %3093 }
0x3c27   :  { %v3096_v55 = vadd.f32 %v3094_v46, %v3086_v9 }
0x3c29   :  { %4485 = vtanh.f32 %v3096_v55 }
0x3c33   :  { %v4486_v56 = vpop.eup %4485 }
0x3c34   :  { %3099 = vrot.lane.b32.xlu1 %v4486_v56, %s4506_s14 }
0x3c38   :  { %3104 = vrot.lane.b32.xlu1 %v3096_v55, %s4507_s2 }
0x3ca6   :  { %v3100_v59 = vpop.permute.xlu1 %3099 }
0x3ca7   :  { %v3102_v60 = vmul.f32 %v4484_v17, %v3100_v59  ;;  %v2396_v17 = vadd.f32 %v5092_v41, %v5099_v42 }
0x3ca9   :  { %3109 = vrot.lane.b32.xlu0 %v3102_v60, %s4508_s1 }
0x3caa   :  { %v3105_v61 = vpop.permute.xlu1 %3104 }
0x3cab   :  { %3107 = vst.msk [vmem:[#allocation5] sm:$0xff] %vm194_vm1, %v3105_v61 }
0x3cb2   :  { %v3197_v1 = vld [vmem:[#allocation5] sm:$0xff] }
0x3cb3   :  { %3199 = vrot.lane.b32.xlu1 %v3197_v1, %s4506_s14 }
0x3d1b   :  { %v3110_v5 = vpop.permute.xlu0 %3109 }
0x3d1c   :  { %3112 = vst.msk [vmem:[#allocation4] sm:$0xff] %vm194_vm1, %v3110_v5  ;;  %3113 = vst.msk [vmem:[#allocation3 + $0x28] sm:$0xff] %vm194_vm1, %v3110_v5 }
0x3d23   :  { %v3115_v12 = vld [vmem:[#allocation4] sm:$0xff]  ;;  %v3357_v22 = vld [vmem:[#allocation3 + $0x28] sm:$0xff] }
0x3d24   :  { %4098 = vmatmul.mubr.msk.f32.vlgmr.msra.gmra.mrb[36].mxu0 %vm194_vm1, %v3115_v12 }
0x3d25   :  { %4298 = vmatpush3.bf16.msra.mxu0 %v4295_v2  ;;  %4119 = vmatprep.mubr.msk.f32.mxu0 %vm194_vm1, %v3352_v47  ;;  %v3200_v39 = vpop.permute.xlu1 %3199 }
0x3d26   :  { %4300 = vmatprep.subr.bf16.mxu0 %v4299_v6 }
0x3d29   :  { %4302 = vmatpush3.bf16.msra.mxu0 %v4299_v6 }
0x3d2c   :  { %4120 = vmatmul.mubr.msk.f32.vlgmr.msra.gmra.mrb[38].mxu0 %vm194_vm1, %v3353_v13 }
0x3d2d   :  { %4122 = vmatprep.mubr.msk.f32.mxu0 %vm194_vm1, %v3354_v25 }
0x3d30   :  { %4123 = vmatmul.mubr.msk.f32.gmra.mrb[40].mxu0 %vm194_vm1, %v3355_v14 }
0x3d31   :  { %4125 = vmatprep.mubr.msk.f32.mxu0 %vm194_vm1, %v3356_v15 }
0x3d34   :  { %4126 = vmatmul.mubr.msk.f32.gmra.mrb[42].mxu0 %vm194_vm1, %v3357_v22 }
0x3df7   :  { %v3185_v18 = vpop.f32.mrb[36].mxu0 }
0x3df8   :  { %v3189_v19 = vadd.f32 %v3185_v18, %v2391_v51  ;;  %v4099_v7 = vpop.f32.mrb[37].mxu0 }
0x3dfa   :  { %4487 = vtanh.f32 %v3189_v19  ;;  %v3611_v8 = vmul.f32 -1.442695, %v3189_v19 }
0x3dfc   :  { %4489 = vpow2.f32 %v3611_v8 }
0x3dff   :  { %v4121_v23 = vpop.f32.mrb[38].mxu0 }
0x3e00   :  { %v3467_v62 = vadd.f32 %v4121_v23, %v5224_v21  ;;  %v3461_v24 = vpop.f32.mrb[39].mxu0 }
0x3e01   :  { %v3462_v0 = vadd.f32 %v5224_v21, %v3461_v24 }
0x3e02   :  { %3501 = vst.msk [vmem:[%s5308_s10 + $0x8] sm:$0xff] %vm55_vm0, %v3467_v62 }
0x3e03   :  { %3500 = vst.msk [vmem:[%s5308_s10] sm:$0xff] %vm55_vm0, %v3462_v0  ;;  %v4124_v20 = vpop.f32.mrb[40].mxu0 }
0x3e04   :  { %v4488_v3 = vpop.eup %4487  ;;  %v3477_v27 = vadd.f32 %v4124_v20, %v5224_v21  ;;  %v3471_v28 = vpop.f32.mrb[41].mxu0 }
0x3e05   :  { %v3472_v30 = vadd.f32 %v5224_v21, %v3471_v28  ;;  %3204 = vrot.lane.b32.xlu0 %v4488_v3, %s4506_s14 }
0x3e06   :  { %3503 = vst.msk [vmem:[%s5308_s10 + $0x18] sm:$0xff] %vm55_vm0, %v3477_v27  ;;  %v4490_v48 = vpop.eup %4489 }
0x3e07   :  { %3502 = vst.msk [vmem:[%s5308_s10 + $0x10] sm:$0xff] %vm55_vm0, %v3472_v30  ;;  %v4127_v31 = vpop.f32.mrb[42].mxu0  ;;  %v3193_v36 = vadd.f32 1.0, %v4490_v48 }
0x3e08   :  { %v3487_v32 = vadd.f32 %v4127_v31, %v5224_v21  ;;  %v3481_v34 = vpop.f32.mrb[43].mxu0 }
0x3e09   :  { %v3482_v35 = vadd.f32 %v5224_v21, %v3481_v34  ;;  %4491 = vrcp.f32 %v3193_v36 }
0x3e0a   :  { %3505 = vst.msk [vmem:[%s5308_s10 + $0x28] sm:$0xff] %vm55_vm0, %v3487_v32 }
0x3e0b   :  { %3504 = vst.msk [vmem:[%s5308_s10 + $0x20] sm:$0xff] %vm55_vm0, %v3482_v35 }
0x3e13   :  { %v4492_v4 = vpop.eup %4491 }
0x3e14   :  { %v3202_v16 = vmul.f32 %v4492_v4, %v3200_v39 }
0x3e77   :  { %v3205_v37 = vpop.permute.xlu0 %3204 }
0x3e78   :  { %v3207_v38 = vmul.f32 %v4492_v4, %v3205_v37 }
0x3e7a   :  { %3209 = vrot.lane.b32.xlu0 %v3207_v38, %s4506_s14 }
0x3eec   :  { %v3210_v40 = vpop.permute.xlu0 %3209 }
0x3eed   :  { %v3212_v43 = vadd.f32 %v3210_v40, %v3202_v16 }
0x3eef   :  { %4493 = vtanh.f32 %v3212_v43 }
0x3ef9   :  { %v4494_v44 = vpop.eup %4493 }
0x3efa   :  { %3215 = vrot.lane.b32.xlu1 %v4494_v44, %s4506_s14 }
0x3efe   :  { %3220 = vrot.lane.b32.xlu1 %v3212_v43, %s4507_s2 }
0x3f6c   :  { %v3216_v63 = vpop.permute.xlu1 %3215 }
0x3f6d   :  { %v3218_v49 = vmul.f32 %v4492_v4, %v3216_v63 }
0x3f6f   :  { %3225 = vrot.lane.b32.xlu0 %v3218_v49, %s4508_s1 }
0x3f70   :  { %v3221_v45 = vpop.permute.xlu1 %3220 }
0x3f71   :  { %3223 = vst.msk [vmem:[#allocation5] sm:$0xff] %vm194_vm1, %v3221_v45 }
0x3f78   :  { %v3313_v50 = vld [vmem:[#allocation5] sm:$0xff] }
0x3f79   :  { %3315 = vrot.lane.b32.xlu1 %v3313_v50, %s4506_s14 }
0x3fe1   :  { %v3226_v52 = vpop.permute.xlu0 %3225 }
0x3fe2   :  { %3228 = vst.msk [vmem:[#allocation4] sm:$0xff] %vm194_vm1, %v3226_v52  ;;  %3229 = vst.msk [vmem:[#allocation3 + $0x30] sm:$0xff] %vm194_vm1, %v3226_v52 }
0x3fe9   :  { %v3231_v29 = vld [vmem:[#allocation4] sm:$0xff]  ;;  %v3358_v53 = vld [vmem:[#allocation3 + $0x30] sm:$0xff] }
0x3fea   :  { %4109 = vmatmul.mubr.msk.f32.vlgmr.msra.gmra.mrb[32].mxu1 %vm194_vm1, %v3231_v29  ;;  %4128 = vmatprep.mubr.msk.f32.mxu0 %vm194_vm1, %v3358_v53 }
0x3feb   :  { %v3316_v59 = vpop.permute.xlu1 %3315 }
0x40bd   :  { %v3301_v54 = vpop.f32.mrb[32].mxu1 }
0x40be   :  { %v3305_v11 = vadd.f32 %v3301_v54, %v2396_v17  ;;  %v4110_v33 = vpop.f32.mrb[33].mxu1 }
0x40c0   :  { %4495 = vtanh.f32 %v3305_v11  ;;  %v3613_v46 = vmul.f32 -1.442695, %v3305_v11 }
0x40c2   :  { %4497 = vpow2.f32 %v3613_v46 }
0x40ca   :  { %v4496_v9 = vpop.eup %4495 }
0x40cb   :  { %3320 = vrot.lane.b32.xlu0 %v4496_v9, %s4506_s14 }
0x40cc   :  { %v4498_v55 = vpop.eup %4497 }
0x40cd   :  { %v3309_v56 = vadd.f32 1.0, %v4498_v55 }
0x40cf   :  { %4499 = vrcp.f32 %v3309_v56 }
0x40d9   :  { %v4500_v57 = vpop.eup %4499 }
0x40da   :  { %v3318_v60 = vmul.f32 %v4500_v57, %v3316_v59 }
0x413d   :  { %v3321_v58 = vpop.permute.xlu0 %3320 }
0x413e   :  { %v3323_v2 = vmul.f32 %v4500_v57, %v3321_v58 }
0x4140   :  { %3325 = vrot.lane.b32.xlu0 %v3323_v2, %s4506_s14 }
0x41b2   :  { %v3326_v41 = vpop.permute.xlu0 %3325 }
0x41b3   :  { %v3328_v42 = vadd.f32 %v3326_v41, %v3318_v60 }
0x41b5   :  { %4501 = vtanh.f32 %v3328_v42 }
0x41bf   :  { %v4502_v61 = vpop.eup %4501 }
0x41c0   :  { %3331 = vrot.lane.b32.xlu1 %v4502_v61, %s4506_s14 }
0x41c4   :  { %3336 = vrot.lane.b32.xlu1 %v3328_v42, %s4507_s2 }
0x4232   :  { %v3332_v1 = vpop.permute.xlu1 %3331 }
0x4233   :  { %v3334_v5 = vmul.f32 %v4500_v57, %v3332_v1 }
0x4235   :  { %3341 = vrot.lane.b32.xlu0 %v3334_v5, %s4508_s1 }
0x4236   :  { %v3337_v26 = vpop.permute.xlu1 %3336 }
0x4237   :  { %3339 = vst.msk [vmem:[#allocation5] sm:$0xff] %vm194_vm1, %v3337_v26 }
0x423e   :  { %v3349_v10 = vld [vmem:[#allocation5] sm:$0xff] }
0x423f   :  { %3615 = vst.msk [vmem:[%s5303_s12 + $0x10] sm:$0xff] %vm194_vm1, %v3349_v10 }
0x42a7   :  { %v3342_v6 = vpop.permute.xlu0 %3341 }
0x42a8   :  { %3344 = vst.msk [vmem:[#allocation4] sm:$0xff] %vm194_vm1, %v3342_v6  ;;  %3345 = vst.msk [vmem:[#allocation3 + $0x38] sm:$0xff] %vm194_vm1, %v3342_v6 }
0x42af   :  { %v3346_v12 = vld [vmem:[#allocation4] sm:$0xff]  ;;  %v3359_v47 = vld [vmem:[#allocation3 + $0x38] sm:$0xff] }
0x42b0   :  { %3614 = vst.msk [vmem:[%s5304_s11 + $0x10] sm:$0xff] %vm194_vm1, %v3346_v12  ;;  %4129 = vmatmul.mubr.msk.f32.gmra.mrb[44].mxu0 %vm194_vm1, %v3359_v47 }
0x4383   :  { %v4130_v13 = vpop.f32.mrb[44].mxu0 }
0x4384   :  { %v3497_v25 = vadd.f32 %v4130_v13, %v5224_v21  ;;  %v3491_v14 = vpop.f32.mrb[45].mxu0 }
0x4385   :  { %v3492_v15 = vadd.f32 %v5224_v21, %v3491_v14 }
0x4386   :  { %3507 = vst.msk [vmem:[%s5308_s10 + $0x38] sm:$0xff] %vm55_vm0, %v3497_v25 }
0x4387   :  { %3506 = vst.msk [vmem:[%s5308_s10 + $0x30] sm:$0xff] %vm55_vm0, %v3492_v15 }

</bundles_post_ra>
